<compile_context>
chip_gen: v7x
topology: tpu7x:2x2x1
jax: 0.10.0
libtpu: 0.0.40
codegen_flags: <defaults>
</compile_context>

<pallas_src>
import jax
import jax.numpy as jnp
from jax.experimental import pallas as pl
from jax.experimental.pallas import tpu as pltpu


# --------------------------------------------------------------------------
# Padding helpers (lane / sublane alignment).
# --------------------------------------------------------------------------
def _round_up(x, m):
    return ((x + m - 1) // m) * m


def _pad_2d(a, rows, cols):
    r, c = a.shape
    return jnp.zeros((rows, cols), a.dtype).at[:r, :c].set(a)


def _pad_gate_cols(w, h, h_pad):
    """(rows, 4*h) -> (rows, 4*h_pad): each LSTM gate block zero-padded to h_pad lanes."""
    rows = w.shape[0]
    out = jnp.zeros((rows, 4 * h_pad), w.dtype)
    for g in range(4):
        out = out.at[:, g * h_pad:g * h_pad + h].set(w[:, g * h:(g + 1) * h])
    return out


def _pick_tile_n(n):
    """Largest (8-divisible) N-tile that divides N; full slab otherwise.

    Kept conservative so double-buffered f32 tiles stay well inside the
    default scoped-VMEM limit on v5e (16 MiB), v6e (32 MiB) and v7x (64 MiB
    physical VMEM).
    """
    for t in (512, 256, 128, 64, 32, 16, 8):
        if n % t == 0:
            return t
    return n


# --------------------------------------------------------------------------
# Kernel 1: single-layer unidirectional LSTM, single invocation, in-kernel
# time loop.  All channel dims padded to 128 lanes; zero-padded lanes of the
# gates evaluate to i=f=o=sigmoid(0), g=tanh(0)=0 so padded h/c stay exactly 0.
# --------------------------------------------------------------------------
def lstm_kernel(x_ref, w_ih_ref, w_hh_ref, b_ref, out_ref,
                gx_scr, hs_scr, h_scr, c_scr):
    b_pad, seq_len, _ = x_ref.shape
    h_pad = h_scr.shape[-1]

    # Hoisted input projection: one (T, D_in) x (D_in, 4*H_pad) matmul per
    # batch row, stored time-major so the recurrence reads contiguous tiles.
    for bb in range(b_pad):                              # static, unrolled
        gx_scr[:, bb, :] = (
            jnp.dot(x_ref[bb], w_ih_ref[...], preferred_element_type=jnp.float32)
            + b_ref[...])

    h_scr[...] = jnp.zeros_like(h_scr)
    c_scr[...] = jnp.zeros_like(c_scr)

    def step(t, carry):
        # Serial critical path: only the recurrent matmul + pointwise math.
        gates = gx_scr[t] + jnp.dot(h_scr[...], w_hh_ref[...],
                                    preferred_element_type=jnp.float32)
        i = jax.nn.sigmoid(gates[:, 0 * h_pad:1 * h_pad])   # full 128-lane views
        f = jax.nn.sigmoid(gates[:, 1 * h_pad:2 * h_pad])
        g = jnp.tanh(gates[:, 2 * h_pad:3 * h_pad])
        o = jax.nn.sigmoid(gates[:, 3 * h_pad:4 * h_pad])
        c = f * c_scr[...] + i * g
        h = o * jnp.tanh(c)
        c_scr[...] = c
        h_scr[...] = h
        hs_scr[t] = h
        return carry

    jax.lax.fori_loop(0, seq_len, step, 0, unroll=seq_len <= 32)

    # Single lane-dense (H_pad = 128) batch-first output store.
    for bb in range(out_ref.shape[0]):                   # only real batch rows
        out_ref[bb] = hs_scr[:, bb, :].astype(out_ref.dtype)


def run_lstm(x, w_ih, w_hh, bias, hidden, h_pad):
    """x: (B, T, D_in) batch-first.  Returns (B, T, H_pad), zeros in pad lanes."""
    batch, seq_len, d_in = x.shape
    b_pad = _round_up(batch, 8)
    g = 4 * h_pad

    w_ih_p = _pad_gate_cols(w_ih, hidden, h_pad)                     # (D_in, 4*H_pad)
    w_hh_p = _pad_2d(_pad_gate_cols(w_hh, hidden, h_pad), h_pad, g)  # (H_pad, 4*H_pad)
    bias_p = _pad_gate_cols(bias, hidden, h_pad)                     # (1, 4*H_pad)
    x_p = jnp.zeros((b_pad, seq_len, d_in), x.dtype).at[:batch].set(x)

    return pl.pallas_call(
        lstm_kernel,
        out_shape=jax.ShapeDtypeStruct((batch, seq_len, h_pad), jnp.float32),
        scratch_shapes=[
            pltpu.VMEM((seq_len, b_pad, g), jnp.float32),      # hoisted gates_x
            pltpu.VMEM((seq_len, b_pad, h_pad), jnp.float32),  # all hidden states
            pltpu.VMEM((b_pad, h_pad), jnp.float32),           # h state
            pltpu.VMEM((b_pad, h_pad), jnp.float32),           # c state
        ],
    )(x_p, w_ih_p, w_hh_p, bias_p)


# --------------------------------------------------------------------------
# Kernel 2a: CrossChannelBlock MLP, tiled over N = B*T, accumulating the
# per-channel sum / sum-of-squares for the two-pass BatchNorm.
# --------------------------------------------------------------------------
def cross_mlp_stats_kernel(seq_ref, mark_ref, w1s_ref, w1m_ref, b1_ref,
                           w2_ref, b2_ref, cross_ref, sum_ref, ssq_ref):
    @pl.when(pl.program_id(0) == 0)
    def _():
        sum_ref[...] = jnp.zeros_like(sum_ref)
        ssq_ref[...] = jnp.zeros_like(ssq_ref)

    # concat([seq, mark]) @ W1 == seq @ W1[:H] + mark @ W1[H:]  (no HBM concat)
    h1 = (jnp.dot(seq_ref[...], w1s_ref[...], preferred_element_type=jnp.float32)
          + jnp.dot(mark_ref[...], w1m_ref[...], preferred_element_type=jnp.float32)
          + b1_ref[...])
    h1 = jnp.maximum(h1, 0.0)                           # ReLU (dropout = identity)
    cross = (jnp.dot(h1, w2_ref[...], preferred_element_type=jnp.float32)
             + b2_ref[...])
    cross_ref[...] = cross
    sum_ref[...] += jnp.sum(cross, axis=0, keepdims=True)
    ssq_ref[...] += jnp.sum(cross * cross, axis=0, keepdims=True)


# --------------------------------------------------------------------------
# Kernel 2b: normalize with full-batch statistics + gamma/beta + residual.
# --------------------------------------------------------------------------
def bn_residual_kernel(cross_ref, seq_ref, mean_ref, var_ref,
                       gamma_ref, beta_ref, out_ref):
    scale = jax.lax.rsqrt(var_ref[...] + 1e-5) * gamma_ref[...]   # EUP rsqrt
    out_ref[...] = ((cross_ref[...] - mean_ref[...]) * scale + beta_ref[...]
                    + seq_ref[...]).astype(out_ref.dtype)


# --------------------------------------------------------------------------
# Full CombinedBlock forward.
# --------------------------------------------------------------------------
@jax.jit
def combined_block_forward(x, x_mark, params):
    batch, seq_len, _ = x.shape
    hidden = params["w_hh"].shape[0]
    h_pad = _round_up(hidden, 128)
    m = x_mark.shape[-1]
    n = batch * seq_len

    # ---- sequence block (LSTM) ----
    seq_pad = run_lstm(x, params["w_ih"], params["w_hh"], params["b_lstm"],
                       hidden, h_pad)                    # (B, T, H_pad)
    seq_flat = seq_pad.reshape(n, h_pad)

    # ---- padded cross-channel / BN parameters ----
    w1 = params["w1"]
    w1s_p = _pad_2d(w1[:hidden], h_pad, h_pad)
    b1_p = _pad_2d(params["b1"], 1, h_pad)
    w2_p = _pad_2d(params["w2"], h_pad, h_pad)
    b2_p = _pad_2d(params["b2"], 1, h_pad)
    gamma_p = _pad_2d(params["gamma"], 1, h_pad)
    beta_p = _pad_2d(params["beta"], 1, h_pad)

    if m > 0:
        mark_flat = x_mark.reshape(n, m)
        w1m_p = _pad_2d(w1[hidden:], m, h_pad)
    else:                                                # x_mark may have 0 channels
        m = 1
        mark_flat = jnp.zeros((n, 1), jnp.float32)
        w1m_p = jnp.zeros((1, h_pad), jnp.float32)

    tile_n = _pick_tile_n(n)
    grid = (n // tile_n,)
    row_spec = pl.BlockSpec((tile_n, h_pad), lambda i: (i, 0))
    vec_spec = pl.BlockSpec((1, h_pad), lambda i: (0, 0))
    w_spec = pl.BlockSpec((h_pad, h_pad), lambda i: (0, 0))

    # ---- pass 1: MLP tiles + per-channel sum / sum-of-squares ----
    cross_flat, csum, cssq = pl.pallas_call(
        cross_mlp_stats_kernel,
        grid_spec=pltpu.PrefetchScalarGridSpec(
            num_scalar_prefetch=0,
            grid=grid,
            in_specs=[
                row_spec,                                        # seq tile
                pl.BlockSpec((tile_n, m), lambda i: (i, 0)),     # mark tile
                w_spec,                                          # w1 (seq part)
                pl.BlockSpec((m, h_pad), lambda i: (0, 0)),      # w1 (mark part)
                vec_spec,                                        # b1
                w_spec,                                          # w2
                vec_spec,                                        # b2
            ],
            out_specs=(row_spec, vec_spec, vec_spec),
        ),
        out_shape=(
            jax.ShapeDtypeStruct((n, h_pad), jnp.float32),
            jax.ShapeDtypeStruct((1, h_pad), jnp.float32),
            jax.ShapeDtypeStruct((1, h_pad), jnp.float32),
        ),
        compiler_params=pltpu.CompilerParams(
            dimension_semantics=("arbitrary",)),   # resident stat accumulators
    )(seq_flat, mark_flat, w1s_p, w1m_p, b1_p, w2_p, b2_p)

    mean = csum / n
    var = jnp.maximum(cssq / n - mean * mean, 0.0)       # biased var (BN train fwd)

    # ---- pass 2: normalize + gamma/beta + residual ----
    out_flat = pl.pallas_call(
        bn_residual_kernel,
        grid_spec=pltpu.PrefetchScalarGridSpec(
            num_scalar_prefetch=0,
            grid=grid,
            in_specs=[row_spec, row_spec, vec_spec, vec_spec, vec_spec, vec_spec],
            out_specs=row_spec,
        ),
        out_shape=jax.ShapeDtypeStruct((n, h_pad), jnp.float32),
        compiler_params=pltpu.CompilerParams(
            dimension_semantics=("parallel",)),    # independent rows -> 2 TCs on v7x
    )(cross_flat, seq_flat, mean, var, gamma_p, beta_p)

    return out_flat.reshape(batch, seq_len, h_pad)[..., :hidden].astype(x.dtype)


# --------------------------------------------------------------------------
# Pure-JAX reference (for correctness check).
# --------------------------------------------------------------------------
def reference_forward(x, x_mark, params):
    B, T, _ = x.shape
    H = params["w_hh"].shape[0]
    w_ih, w_hh, b = params["w_ih"], params["w_hh"], params["b_lstm"]

    def step(carry, x_t):
        h, c = carry
        gates = x_t @ w_ih + h @ w_hh + b[0]
        i = jax.nn.sigmoid(gates[:, :H])
        f = jax.nn.sigmoid(gates[:, H:2 * H])
        g = jnp.tanh(gates[:, 2 * H:3 * H])
        o = jax.nn.sigmoid(gates[:, 3 * H:])
        c = f * c + i * g
        h = o * jnp.tanh(c)
        return (h, c), h

    init = (jnp.zeros((B, H), jnp.float32), jnp.zeros((B, H), jnp.float32))
    _, hs = jax.lax.scan(step, init, jnp.transpose(x, (1, 0, 2)))
    seq_out = jnp.transpose(hs, (1, 0, 2))

    combined = (jnp.concatenate([seq_out, x_mark], axis=-1)
                if x_mark.shape[-1] > 0 else seq_out)
    h1 = jnp.maximum(combined @ params["w1"] + params["b1"][0], 0.0)
    cross = h1 @ params["w2"] + params["b2"][0]
    flat = cross.reshape(-1, H)
    mean = flat.mean(axis=0)
    var = ((flat - mean) ** 2).mean(axis=0)
    norm = (cross - mean) / jnp.sqrt(var + 1e-5) * params["gamma"][0] + params["beta"][0]
    return norm + seq_out


# --------------------------------------------------------------------------
def init_params(key, seq_input_dim, cross_input_dim, hidden):
    ks = jax.random.split(key, 8)
    s_lstm = 1.0 / jnp.sqrt(hidden)
    s_fc1 = 1.0 / jnp.sqrt(hidden + cross_input_dim)
    s_fc2 = 1.0 / jnp.sqrt(hidden)
    u = lambda k, shape, s: jax.random.uniform(k, shape, jnp.float32, -s, s)
    return {
        "w_ih": u(ks[0], (seq_input_dim, 4 * hidden), s_lstm),
        "w_hh": u(ks[1], (hidden, 4 * hidden), s_lstm),
        "b_lstm": u(ks[2], (1, 4 * hidden), s_lstm),          # b_ih + b_hh folded
        "w1": u(ks[3], (hidden + cross_input_dim, hidden), s_fc1),
        "b1": u(ks[4], (1, hidden), s_fc1),
        "w2": u(ks[5], (hidden, hidden), s_fc2),
        "b2": u(ks[6], (1, hidden), s_fc2),
        "gamma": jnp.ones((1, hidden), jnp.float32),
        "beta": jnp.zeros((1, hidden), jnp.float32),
    }


if __name__ == "__main__":
    B, T = 2, 8
    seq_input_dim, cross_input_dim, hidden = 4, 4, 32

    key = jax.random.PRNGKey(0)
    kx, km, kp = jax.random.split(key, 3)
    x = jax.random.normal(kx, (B, T, seq_input_dim), jnp.float32)
    x_mark = jax.random.normal(km, (B, T, cross_input_dim), jnp.float32)
    params = init_params(kp, seq_input_dim, cross_input_dim, hidden)

    out = combined_block_forward(x, x_mark, params)
    out = jax.block_until_ready(out)

    ref = reference_forward(x, x_mark, params)
    assert out.shape == (B, T, hidden)
    assert jnp.allclose(out, ref, rtol=1e-3, atol=1e-3), "mismatch vs reference"

    print("KERNEL_OK")
</pallas_src>

<mosaic_0001>
module attributes {stable_mosaic.version = 11 : i64} {
  func.func @lstm_kernel(%arg0: memref<8x8x4xf32, #tpu.memory_space<vmem>>, %arg1: memref<4x512xf32, #tpu.memory_space<vmem>>, %arg2: memref<128x512xf32, #tpu.memory_space<vmem>>, %arg3: memref<1x512xf32, #tpu.memory_space<vmem>>, %arg4: memref<2x8x128xf32, #tpu.memory_space<vmem>>, %arg5: memref<8x8x512xf32, #tpu.memory_space<vmem>>, %arg6: memref<8x8x128xf32, #tpu.memory_space<vmem>>, %arg7: memref<8x128xf32, #tpu.memory_space<vmem>>, %arg8: memref<8x128xf32, #tpu.memory_space<vmem>>) attributes {dimension_semantics = [], scalar_prefetch = 0 : i64, scratch_operands = 4 : i64, tpu.core_type = #tpu.core_type<tc>} {
    %c0 = arith.constant 0 : index
    %c0_0 = arith.constant 0 : index
    %c0_1 = arith.constant 0 : index
    %0 = vector.load %arg0[%c0, %c0_0, %c0_1] : memref<8x8x4xf32, #tpu.memory_space<vmem>>, vector<1x8x4xf32>
    %1 = vector.shape_cast %0 : vector<1x8x4xf32> to vector<8x4xf32>
    %c0_2 = arith.constant 0 : index
    %c0_3 = arith.constant 0 : index
    %2 = vector.load %arg1[%c0_2, %c0_3] : memref<4x512xf32, #tpu.memory_space<vmem>>, vector<4x512xf32>
    %cst = arith.constant dense<0.000000e+00> : vector<8x512xf32>
    %3 = tpu.matmul %1, %2, %cst {dimension_numbers = #tpu.dot_dimension_numbers<[1], [0], [0], [1], [0, 0, 1, 1], [], []>} : vector<8x4xf32>, vector<4x512xf32>, vector<8x512xf32> -> vector<8x512xf32>
    %c0_4 = arith.constant 0 : index
    %c0_5 = arith.constant 0 : index
    %4 = vector.load %arg3[%c0_4, %c0_5] : memref<1x512xf32, #tpu.memory_space<vmem>>, vector<1x512xf32>
    %5 = vector.broadcast %4 : vector<1x512xf32> to vector<8x512xf32>
    %6 = arith.addf %3, %5 : vector<8x512xf32>
    %c0_6 = arith.constant 0 : index
    %c0_7 = arith.constant 0 : index
    %c0_8 = arith.constant 0 : index
    %7 = vector.load %arg5[%c0_6, %c0_7, %c0_8] : memref<8x8x512xf32, #tpu.memory_space<vmem>>, vector<8x1x512xf32>
    %8 = vector.shape_cast %7 : vector<8x1x512xf32> to vector<8x512xf32>
    %9 = vector.shape_cast %6 : vector<8x512xf32> to vector<8x1x512xf32>
    tpu.vector_store %arg5[%c0_6, %c0_7, %c0_8], %9 {strides = array<i32>} : memref<8x8x512xf32, #tpu.memory_space<vmem>>, vector<8x1x512xf32>,
    %c1 = arith.constant 1 : index
    %c0_9 = arith.constant 0 : index
    %c0_10 = arith.constant 0 : index
    %10 = vector.load %arg0[%c1, %c0_9, %c0_10] : memref<8x8x4xf32, #tpu.memory_space<vmem>>, vector<1x8x4xf32>
    %11 = vector.shape_cast %10 : vector<1x8x4xf32> to vector<8x4xf32>
    %c0_11 = arith.constant 0 : index
    %c0_12 = arith.constant 0 : index
    %12 = vector.load %arg1[%c0_11, %c0_12] : memref<4x512xf32, #tpu.memory_space<vmem>>, vector<4x512xf32>
    %cst_13 = arith.constant dense<0.000000e+00> : vector<8x512xf32>
    %13 = tpu.matmul %11, %12, %cst_13 {dimension_numbers = #tpu.dot_dimension_numbers<[1], [0], [0], [1], [0, 0, 1, 1], [], []>} : vector<8x4xf32>, vector<4x512xf32>, vector<8x512xf32> -> vector<8x512xf32>
    %c0_14 = arith.constant 0 : index
    %c0_15 = arith.constant 0 : index
    %14 = vector.load %arg3[%c0_14, %c0_15] : memref<1x512xf32, #tpu.memory_space<vmem>>, vector<1x512xf32>
    %15 = vector.broadcast %14 : vector<1x512xf32> to vector<8x512xf32>
    %16 = arith.addf %13, %15 : vector<8x512xf32>
    %c0_16 = arith.constant 0 : index
    %c1_17 = arith.constant 1 : index
    %c0_18 = arith.constant 0 : index
    %17 = vector.load %arg5[%c0_16, %c1_17, %c0_18] : memref<8x8x512xf32, #tpu.memory_space<vmem>>, vector<8x1x512xf32>
    %18 = vector.shape_cast %17 : vector<8x1x512xf32> to vector<8x512xf32>
    %19 = vector.shape_cast %16 : vector<8x512xf32> to vector<8x1x512xf32>
    tpu.vector_store %arg5[%c0_16, %c1_17, %c0_18], %19 {strides = array<i32>} : memref<8x8x512xf32, #tpu.memory_space<vmem>>, vector<8x1x512xf32>,
    %c2 = arith.constant 2 : index
    %c0_19 = arith.constant 0 : index
    %c0_20 = arith.constant 0 : index
    %20 = vector.load %arg0[%c2, %c0_19, %c0_20] : memref<8x8x4xf32, #tpu.memory_space<vmem>>, vector<1x8x4xf32>
    %21 = vector.shape_cast %20 : vector<1x8x4xf32> to vector<8x4xf32>
    %c0_21 = arith.constant 0 : index
    %c0_22 = arith.constant 0 : index
    %22 = vector.load %arg1[%c0_21, %c0_22] : memref<4x512xf32, #tpu.memory_space<vmem>>, vector<4x512xf32>
    %cst_23 = arith.constant dense<0.000000e+00> : vector<8x512xf32>
    %23 = tpu.matmul %21, %22, %cst_23 {dimension_numbers = #tpu.dot_dimension_numbers<[1], [0], [0], [1], [0, 0, 1, 1], [], []>} : vector<8x4xf32>, vector<4x512xf32>, vector<8x512xf32> -> vector<8x512xf32>
    %c0_24 = arith.constant 0 : index
    %c0_25 = arith.constant 0 : index
    %24 = vector.load %arg3[%c0_24, %c0_25] : memref<1x512xf32, #tpu.memory_space<vmem>>, vector<1x512xf32>
    %25 = vector.broadcast %24 : vector<1x512xf32> to vector<8x512xf32>
    %26 = arith.addf %23, %25 : vector<8x512xf32>
    %c0_26 = arith.constant 0 : index
    %c2_27 = arith.constant 2 : index
    %c0_28 = arith.constant 0 : index
    %27 = vector.load %arg5[%c0_26, %c2_27, %c0_28] : memref<8x8x512xf32, #tpu.memory_space<vmem>>, vector<8x1x512xf32>
    %28 = vector.shape_cast %27 : vector<8x1x512xf32> to vector<8x512xf32>
    %29 = vector.shape_cast %26 : vector<8x512xf32> to vector<8x1x512xf32>
    tpu.vector_store %arg5[%c0_26, %c2_27, %c0_28], %29 {strides = array<i32>} : memref<8x8x512xf32, #tpu.memory_space<vmem>>, vector<8x1x512xf32>,
    %c3 = arith.constant 3 : index
    %c0_29 = arith.constant 0 : index
    %c0_30 = arith.constant 0 : index
    %30 = vector.load %arg0[%c3, %c0_29, %c0_30] : memref<8x8x4xf32, #tpu.memory_space<vmem>>, vector<1x8x4xf32>
    %31 = vector.shape_cast %30 : vector<1x8x4xf32> to vector<8x4xf32>
    %c0_31 = arith.constant 0 : index
    %c0_32 = arith.constant 0 : index
    %32 = vector.load %arg1[%c0_31, %c0_32] : memref<4x512xf32, #tpu.memory_space<vmem>>, vector<4x512xf32>
    %cst_33 = arith.constant dense<0.000000e+00> : vector<8x512xf32>
    %33 = tpu.matmul %31, %32, %cst_33 {dimension_numbers = #tpu.dot_dimension_numbers<[1], [0], [0], [1], [0, 0, 1, 1], [], []>} : vector<8x4xf32>, vector<4x512xf32>, vector<8x512xf32> -> vector<8x512xf32>
    %c0_34 = arith.constant 0 : index
    %c0_35 = arith.constant 0 : index
    %34 = vector.load %arg3[%c0_34, %c0_35] : memref<1x512xf32, #tpu.memory_space<vmem>>, vector<1x512xf32>
    %35 = vector.broadcast %34 : vector<1x512xf32> to vector<8x512xf32>
    %36 = arith.addf %33, %35 : vector<8x512xf32>
    %c0_36 = arith.constant 0 : index
    %c3_37 = arith.constant 3 : index
    %c0_38 = arith.constant 0 : index
    %37 = vector.load %arg5[%c0_36, %c3_37, %c0_38] : memref<8x8x512xf32, #tpu.memory_space<vmem>>, vector<8x1x512xf32>
    %38 = vector.shape_cast %37 : vector<8x1x512xf32> to vector<8x512xf32>
    %39 = vector.shape_cast %36 : vector<8x512xf32> to vector<8x1x512xf32>
    tpu.vector_store %arg5[%c0_36, %c3_37, %c0_38], %39 {strides = array<i32>} : memref<8x8x512xf32, #tpu.memory_space<vmem>>, vector<8x1x512xf32>,
    %c4 = arith.constant 4 : index
    %c0_39 = arith.constant 0 : index
    %c0_40 = arith.constant 0 : index
    %40 = vector.load %arg0[%c4, %c0_39, %c0_40] : memref<8x8x4xf32, #tpu.memory_space<vmem>>, vector<1x8x4xf32>
    %41 = vector.shape_cast %40 : vector<1x8x4xf32> to vector<8x4xf32>
    %c0_41 = arith.constant 0 : index
    %c0_42 = arith.constant 0 : index
    %42 = vector.load %arg1[%c0_41, %c0_42] : memref<4x512xf32, #tpu.memory_space<vmem>>, vector<4x512xf32>
    %cst_43 = arith.constant dense<0.000000e+00> : vector<8x512xf32>
    %43 = tpu.matmul %41, %42, %cst_43 {dimension_numbers = #tpu.dot_dimension_numbers<[1], [0], [0], [1], [0, 0, 1, 1], [], []>} : vector<8x4xf32>, vector<4x512xf32>, vector<8x512xf32> -> vector<8x512xf32>
    %c0_44 = arith.constant 0 : index
    %c0_45 = arith.constant 0 : index
    %44 = vector.load %arg3[%c0_44, %c0_45] : memref<1x512xf32, #tpu.memory_space<vmem>>, vector<1x512xf32>
    %45 = vector.broadcast %44 : vector<1x512xf32> to vector<8x512xf32>
    %46 = arith.addf %43, %45 : vector<8x512xf32>
    %c0_46 = arith.constant 0 : index
    %c4_47 = arith.constant 4 : index
    %c0_48 = arith.constant 0 : index
    %47 = vector.load %arg5[%c0_46, %c4_47, %c0_48] : memref<8x8x512xf32, #tpu.memory_space<vmem>>, vector<8x1x512xf32>
    %48 = vector.shape_cast %47 : vector<8x1x512xf32> to vector<8x512xf32>
    %49 = vector.shape_cast %46 : vector<8x512xf32> to vector<8x1x512xf32>
    tpu.vector_store %arg5[%c0_46, %c4_47, %c0_48], %49 {strides = array<i32>} : memref<8x8x512xf32, #tpu.memory_space<vmem>>, vector<8x1x512xf32>,
    %c5 = arith.constant 5 : index
    %c0_49 = arith.constant 0 : index
    %c0_50 = arith.constant 0 : index
    %50 = vector.load %arg0[%c5, %c0_49, %c0_50] : memref<8x8x4xf32, #tpu.memory_space<vmem>>, vector<1x8x4xf32>
    %51 = vector.shape_cast %50 : vector<1x8x4xf32> to vector<8x4xf32>
    %c0_51 = arith.constant 0 : index
    %c0_52 = arith.constant 0 : index
    %52 = vector.load %arg1[%c0_51, %c0_52] : memref<4x512xf32, #tpu.memory_space<vmem>>, vector<4x512xf32>
    %cst_53 = arith.constant dense<0.000000e+00> : vector<8x512xf32>
    %53 = tpu.matmul %51, %52, %cst_53 {dimension_numbers = #tpu.dot_dimension_numbers<[1], [0], [0], [1], [0, 0, 1, 1], [], []>} : vector<8x4xf32>, vector<4x512xf32>, vector<8x512xf32> -> vector<8x512xf32>
    %c0_54 = arith.constant 0 : index
    %c0_55 = arith.constant 0 : index
    %54 = vector.load %arg3[%c0_54, %c0_55] : memref<1x512xf32, #tpu.memory_space<vmem>>, vector<1x512xf32>
    %55 = vector.broadcast %54 : vector<1x512xf32> to vector<8x512xf32>
    %56 = arith.addf %53, %55 : vector<8x512xf32>
    %c0_56 = arith.constant 0 : index
    %c5_57 = arith.constant 5 : index
    %c0_58 = arith.constant 0 : index
    %57 = vector.load %arg5[%c0_56, %c5_57, %c0_58] : memref<8x8x512xf32, #tpu.memory_space<vmem>>, vector<8x1x512xf32>
    %58 = vector.shape_cast %57 : vector<8x1x512xf32> to vector<8x512xf32>
    %59 = vector.shape_cast %56 : vector<8x512xf32> to vector<8x1x512xf32>
    tpu.vector_store %arg5[%c0_56, %c5_57, %c0_58], %59 {strides = array<i32>} : memref<8x8x512xf32, #tpu.memory_space<vmem>>, vector<8x1x512xf32>,
    %c6 = arith.constant 6 : index
    %c0_59 = arith.constant 0 : index
    %c0_60 = arith.constant 0 : index
    %60 = vector.load %arg0[%c6, %c0_59, %c0_60] : memref<8x8x4xf32, #tpu.memory_space<vmem>>, vector<1x8x4xf32>
    %61 = vector.shape_cast %60 : vector<1x8x4xf32> to vector<8x4xf32>
    %c0_61 = arith.constant 0 : index
    %c0_62 = arith.constant 0 : index
    %62 = vector.load %arg1[%c0_61, %c0_62] : memref<4x512xf32, #tpu.memory_space<vmem>>, vector<4x512xf32>
    %cst_63 = arith.constant dense<0.000000e+00> : vector<8x512xf32>
    %63 = tpu.matmul %61, %62, %cst_63 {dimension_numbers = #tpu.dot_dimension_numbers<[1], [0], [0], [1], [0, 0, 1, 1], [], []>} : vector<8x4xf32>, vector<4x512xf32>, vector<8x512xf32> -> vector<8x512xf32>
    %c0_64 = arith.constant 0 : index
    %c0_65 = arith.constant 0 : index
    %64 = vector.load %arg3[%c0_64, %c0_65] : memref<1x512xf32, #tpu.memory_space<vmem>>, vector<1x512xf32>
    %65 = vector.broadcast %64 : vector<1x512xf32> to vector<8x512xf32>
    %66 = arith.addf %63, %65 : vector<8x512xf32>
    %c0_66 = arith.constant 0 : index
    %c6_67 = arith.constant 6 : index
    %c0_68 = arith.constant 0 : index
    %67 = vector.load %arg5[%c0_66, %c6_67, %c0_68] : memref<8x8x512xf32, #tpu.memory_space<vmem>>, vector<8x1x512xf32>
    %68 = vector.shape_cast %67 : vector<8x1x512xf32> to vector<8x512xf32>
    %69 = vector.shape_cast %66 : vector<8x512xf32> to vector<8x1x512xf32>
    tpu.vector_store %arg5[%c0_66, %c6_67, %c0_68], %69 {strides = array<i32>} : memref<8x8x512xf32, #tpu.memory_space<vmem>>, vector<8x1x512xf32>,
    %c7 = arith.constant 7 : index
    %c0_69 = arith.constant 0 : index
    %c0_70 = arith.constant 0 : index
    %70 = vector.load %arg0[%c7, %c0_69, %c0_70] : memref<8x8x4xf32, #tpu.memory_space<vmem>>, vector<1x8x4xf32>
    %71 = vector.shape_cast %70 : vector<1x8x4xf32> to vector<8x4xf32>
    %c0_71 = arith.constant 0 : index
    %c0_72 = arith.constant 0 : index
    %72 = vector.load %arg1[%c0_71, %c0_72] : memref<4x512xf32, #tpu.memory_space<vmem>>, vector<4x512xf32>
    %cst_73 = arith.constant dense<0.000000e+00> : vector<8x512xf32>
    %73 = tpu.matmul %71, %72, %cst_73 {dimension_numbers = #tpu.dot_dimension_numbers<[1], [0], [0], [1], [0, 0, 1, 1], [], []>} : vector<8x4xf32>, vector<4x512xf32>, vector<8x512xf32> -> vector<8x512xf32>
    %c0_74 = arith.constant 0 : index
    %c0_75 = arith.constant 0 : index
    %74 = vector.load %arg3[%c0_74, %c0_75] : memref<1x512xf32, #tpu.memory_space<vmem>>, vector<1x512xf32>
    %75 = vector.broadcast %74 : vector<1x512xf32> to vector<8x512xf32>
    %76 = arith.addf %73, %75 : vector<8x512xf32>
    %c0_76 = arith.constant 0 : index
    %c7_77 = arith.constant 7 : index
    %c0_78 = arith.constant 0 : index
    %77 = vector.load %arg5[%c0_76, %c7_77, %c0_78] : memref<8x8x512xf32, #tpu.memory_space<vmem>>, vector<8x1x512xf32>
    %78 = vector.shape_cast %77 : vector<8x1x512xf32> to vector<8x512xf32>
    %79 = vector.shape_cast %76 : vector<8x512xf32> to vector<8x1x512xf32>
    tpu.vector_store %arg5[%c0_76, %c7_77, %c0_78], %79 {strides = array<i32>} : memref<8x8x512xf32, #tpu.memory_space<vmem>>, vector<8x1x512xf32>,
    %cst_79 = arith.constant 0.000000e+00 : f32
    %80 = vector.broadcast %cst_79 : f32 to vector<8x128xf32>
    %c0_80 = arith.constant 0 : index
    %c0_81 = arith.constant 0 : index
    %81 = vector.load %arg7[%c0_80, %c0_81] : memref<8x128xf32, #tpu.memory_space<vmem>>, vector<8x128xf32>
    tpu.vector_store %arg7[%c0_80, %c0_81], %80 {strides = array<i32>} : memref<8x128xf32, #tpu.memory_space<vmem>>, vector<8x128xf32>,
    %cst_82 = arith.constant 0.000000e+00 : f32
    %82 = vector.broadcast %cst_82 : f32 to vector<8x128xf32>
    %c0_83 = arith.constant 0 : index
    %c0_84 = arith.constant 0 : index
    %83 = vector.load %arg8[%c0_83, %c0_84] : memref<8x128xf32, #tpu.memory_space<vmem>>, vector<8x128xf32>
    tpu.vector_store %arg8[%c0_83, %c0_84], %82 {strides = array<i32>} : memref<8x128xf32, #tpu.memory_space<vmem>>, vector<8x128xf32>,
    %c0_i32 = arith.constant 0 : i32
    %84 = arith.index_cast %c0_i32 : i32 to index
    %c0_85 = arith.constant 0 : index
    %c0_86 = arith.constant 0 : index
    %85 = vector.load %arg5[%84, %c0_85, %c0_86] : memref<8x8x512xf32, #tpu.memory_space<vmem>>, vector<1x8x512xf32>
    %86 = vector.shape_cast %85 : vector<1x8x512xf32> to vector<8x512xf32>
    %c0_87 = arith.constant 0 : index
    %c0_88 = arith.constant 0 : index
    %87 = vector.load %arg7[%c0_87, %c0_88] : memref<8x128xf32, #tpu.memory_space<vmem>>, vector<8x128xf32>
    %c0_89 = arith.constant 0 : index
    %c0_90 = arith.constant 0 : index
    %88 = vector.load %arg2[%c0_89, %c0_90] : memref<128x512xf32, #tpu.memory_space<vmem>>, vector<128x512xf32>
    %cst_91 = arith.constant dense<0.000000e+00> : vector<8x512xf32>
    %89 = tpu.matmul %87, %88, %cst_91 {dimension_numbers = #tpu.dot_dimension_numbers<[1], [0], [0], [1], [0, 0, 1, 1], [], []>} : vector<8x128xf32>, vector<128x512xf32>, vector<8x512xf32> -> vector<8x512xf32>
    %90 = arith.addf %86, %89 : vector<8x512xf32>
    %91 = vector.extract_strided_slice %90 {offsets = [0, 0], sizes = [8, 128], strides = [1, 1]} : vector<8x512xf32> to vector<8x128xf32>
    %92 = arith.negf %91 : vector<8x128xf32>
    %93 = math.exp %92 : vector<8x128xf32>
    %cst_92 = arith.constant 1.000000e+00 : f32
    %94 = vector.broadcast %cst_92 : f32 to vector<8x128xf32>
    %95 = arith.addf %94, %93 : vector<8x128xf32>
    %96 = arith.divf %94, %95 : vector<8x128xf32>
    %97 = vector.extract_strided_slice %90 {offsets = [0, 128], sizes = [8, 128], strides = [1, 1]} : vector<8x512xf32> to vector<8x128xf32>
    %98 = arith.negf %97 : vector<8x128xf32>
    %99 = math.exp %98 : vector<8x128xf32>
    %cst_93 = arith.constant 1.000000e+00 : f32
    %100 = vector.broadcast %cst_93 : f32 to vector<8x128xf32>
    %101 = arith.addf %100, %99 : vector<8x128xf32>
    %102 = arith.divf %100, %101 : vector<8x128xf32>
    %103 = vector.extract_strided_slice %90 {offsets = [0, 256], sizes = [8, 128], strides = [1, 1]} : vector<8x512xf32> to vector<8x128xf32>
    %104 = math.tanh %103 : vector<8x128xf32>
    %105 = vector.extract_strided_slice %90 {offsets = [0, 384], sizes = [8, 128], strides = [1, 1]} : vector<8x512xf32> to vector<8x128xf32>
    %106 = arith.negf %105 : vector<8x128xf32>
    %107 = math.exp %106 : vector<8x128xf32>
    %cst_94 = arith.constant 1.000000e+00 : f32
    %108 = vector.broadcast %cst_94 : f32 to vector<8x128xf32>
    %109 = arith.addf %108, %107 : vector<8x128xf32>
    %110 = arith.divf %108, %109 : vector<8x128xf32>
    %c0_95 = arith.constant 0 : index
    %c0_96 = arith.constant 0 : index
    %111 = vector.load %arg8[%c0_95, %c0_96] : memref<8x128xf32, #tpu.memory_space<vmem>>, vector<8x128xf32>
    %112 = arith.mulf %102, %111 : vector<8x128xf32>
    %113 = arith.mulf %96, %104 : vector<8x128xf32>
    %114 = arith.addf %112, %113 : vector<8x128xf32>
    %115 = math.tanh %114 : vector<8x128xf32>
    %116 = arith.mulf %110, %115 : vector<8x128xf32>
    %c0_97 = arith.constant 0 : index
    %c0_98 = arith.constant 0 : index
    %117 = vector.load %arg8[%c0_97, %c0_98] : memref<8x128xf32, #tpu.memory_space<vmem>>, vector<8x128xf32>
    tpu.vector_store %arg8[%c0_97, %c0_98], %114 {strides = array<i32>} : memref<8x128xf32, #tpu.memory_space<vmem>>, vector<8x128xf32>,
    %c0_99 = arith.constant 0 : index
    %c0_100 = arith.constant 0 : index
    %118 = vector.load %arg7[%c0_99, %c0_100] : memref<8x128xf32, #tpu.memory_space<vmem>>, vector<8x128xf32>
    tpu.vector_store %arg7[%c0_99, %c0_100], %116 {strides = array<i32>} : memref<8x128xf32, #tpu.memory_space<vmem>>, vector<8x128xf32>,
    %119 = arith.index_cast %c0_i32 : i32 to index
    %c0_101 = arith.constant 0 : index
    %c0_102 = arith.constant 0 : index
    %120 = vector.load %arg6[%119, %c0_101, %c0_102] : memref<8x8x128xf32, #tpu.memory_space<vmem>>, vector<1x8x128xf32>
    %121 = vector.shape_cast %120 : vector<1x8x128xf32> to vector<8x128xf32>
    %122 = vector.shape_cast %116 : vector<8x128xf32> to vector<1x8x128xf32>
    tpu.vector_store %arg6[%119, %c0_101, %c0_102], %122 {strides = array<i32>} : memref<8x8x128xf32, #tpu.memory_space<vmem>>, vector<1x8x128xf32>,
    %c1_i32 = arith.constant 1 : i32
    %123 = arith.index_cast %c1_i32 : i32 to index
    %c0_103 = arith.constant 0 : index
    %c0_104 = arith.constant 0 : index
    %124 = vector.load %arg5[%123, %c0_103, %c0_104] : memref<8x8x512xf32, #tpu.memory_space<vmem>>, vector<1x8x512xf32>
    %125 = vector.shape_cast %124 : vector<1x8x512xf32> to vector<8x512xf32>
    %c0_105 = arith.constant 0 : index
    %c0_106 = arith.constant 0 : index
    %126 = vector.load %arg7[%c0_105, %c0_106] : memref<8x128xf32, #tpu.memory_space<vmem>>, vector<8x128xf32>
    %c0_107 = arith.constant 0 : index
    %c0_108 = arith.constant 0 : index
    %127 = vector.load %arg2[%c0_107, %c0_108] : memref<128x512xf32, #tpu.memory_space<vmem>>, vector<128x512xf32>
    %cst_109 = arith.constant dense<0.000000e+00> : vector<8x512xf32>
    %128 = tpu.matmul %126, %127, %cst_109 {dimension_numbers = #tpu.dot_dimension_numbers<[1], [0], [0], [1], [0, 0, 1, 1], [], []>} : vector<8x128xf32>, vector<128x512xf32>, vector<8x512xf32> -> vector<8x512xf32>
    %129 = arith.addf %125, %128 : vector<8x512xf32>
    %130 = vector.extract_strided_slice %129 {offsets = [0, 0], sizes = [8, 128], strides = [1, 1]} : vector<8x512xf32> to vector<8x128xf32>
    %131 = arith.negf %130 : vector<8x128xf32>
    %132 = math.exp %131 : vector<8x128xf32>
    %cst_110 = arith.constant 1.000000e+00 : f32
    %133 = vector.broadcast %cst_110 : f32 to vector<8x128xf32>
    %134 = arith.addf %133, %132 : vector<8x128xf32>
    %135 = arith.divf %133, %134 : vector<8x128xf32>
    %136 = vector.extract_strided_slice %129 {offsets = [0, 128], sizes = [8, 128], strides = [1, 1]} : vector<8x512xf32> to vector<8x128xf32>
    %137 = arith.negf %136 : vector<8x128xf32>
    %138 = math.exp %137 : vector<8x128xf32>
    %cst_111 = arith.constant 1.000000e+00 : f32
    %139 = vector.broadcast %cst_111 : f32 to vector<8x128xf32>
    %140 = arith.addf %139, %138 : vector<8x128xf32>
    %141 = arith.divf %139, %140 : vector<8x128xf32>
    %142 = vector.extract_strided_slice %129 {offsets = [0, 256], sizes = [8, 128], strides = [1, 1]} : vector<8x512xf32> to vector<8x128xf32>
    %143 = math.tanh %142 : vector<8x128xf32>
    %144 = vector.extract_strided_slice %129 {offsets = [0, 384], sizes = [8, 128], strides = [1, 1]} : vector<8x512xf32> to vector<8x128xf32>
    %145 = arith.negf %144 : vector<8x128xf32>
    %146 = math.exp %145 : vector<8x128xf32>
    %cst_112 = arith.constant 1.000000e+00 : f32
    %147 = vector.broadcast %cst_112 : f32 to vector<8x128xf32>
    %148 = arith.addf %147, %146 : vector<8x128xf32>
    %149 = arith.divf %147, %148 : vector<8x128xf32>
    %c0_113 = arith.constant 0 : index
    %c0_114 = arith.constant 0 : index
    %150 = vector.load %arg8[%c0_113, %c0_114] : memref<8x128xf32, #tpu.memory_space<vmem>>, vector<8x128xf32>
    %151 = arith.mulf %141, %150 : vector<8x128xf32>
    %152 = arith.mulf %135, %143 : vector<8x128xf32>
    %153 = arith.addf %151, %152 : vector<8x128xf32>
    %154 = math.tanh %153 : vector<8x128xf32>
    %155 = arith.mulf %149, %154 : vector<8x128xf32>
    %c0_115 = arith.constant 0 : index
    %c0_116 = arith.constant 0 : index
    %156 = vector.load %arg8[%c0_115, %c0_116] : memref<8x128xf32, #tpu.memory_space<vmem>>, vector<8x128xf32>
    tpu.vector_store %arg8[%c0_115, %c0_116], %153 {strides = array<i32>} : memref<8x128xf32, #tpu.memory_space<vmem>>, vector<8x128xf32>,
    %c0_117 = arith.constant 0 : index
    %c0_118 = arith.constant 0 : index
    %157 = vector.load %arg7[%c0_117, %c0_118] : memref<8x128xf32, #tpu.memory_space<vmem>>, vector<8x128xf32>
    tpu.vector_store %arg7[%c0_117, %c0_118], %155 {strides = array<i32>} : memref<8x128xf32, #tpu.memory_space<vmem>>, vector<8x128xf32>,
    %158 = arith.index_cast %c1_i32 : i32 to index
    %c0_119 = arith.constant 0 : index
    %c0_120 = arith.constant 0 : index
    %159 = vector.load %arg6[%158, %c0_119, %c0_120] : memref<8x8x128xf32, #tpu.memory_space<vmem>>, vector<1x8x128xf32>
    %160 = vector.shape_cast %159 : vector<1x8x128xf32> to vector<8x128xf32>
    %161 = vector.shape_cast %155 : vector<8x128xf32> to vector<1x8x128xf32>
    tpu.vector_store %arg6[%158, %c0_119, %c0_120], %161 {strides = array<i32>} : memref<8x8x128xf32, #tpu.memory_space<vmem>>, vector<1x8x128xf32>,
    %c2_i32 = arith.constant 2 : i32
    %162 = arith.index_cast %c2_i32 : i32 to index
    %c0_121 = arith.constant 0 : index
    %c0_122 = arith.constant 0 : index
    %163 = vector.load %arg5[%162, %c0_121, %c0_122] : memref<8x8x512xf32, #tpu.memory_space<vmem>>, vector<1x8x512xf32>
    %164 = vector.shape_cast %163 : vector<1x8x512xf32> to vector<8x512xf32>
    %c0_123 = arith.constant 0 : index
    %c0_124 = arith.constant 0 : index
    %165 = vector.load %arg7[%c0_123, %c0_124] : memref<8x128xf32, #tpu.memory_space<vmem>>, vector<8x128xf32>
    %c0_125 = arith.constant 0 : index
    %c0_126 = arith.constant 0 : index
    %166 = vector.load %arg2[%c0_125, %c0_126] : memref<128x512xf32, #tpu.memory_space<vmem>>, vector<128x512xf32>
    %cst_127 = arith.constant dense<0.000000e+00> : vector<8x512xf32>
    %167 = tpu.matmul %165, %166, %cst_127 {dimension_numbers = #tpu.dot_dimension_numbers<[1], [0], [0], [1], [0, 0, 1, 1], [], []>} : vector<8x128xf32>, vector<128x512xf32>, vector<8x512xf32> -> vector<8x512xf32>
    %168 = arith.addf %164, %167 : vector<8x512xf32>
    %169 = vector.extract_strided_slice %168 {offsets = [0, 0], sizes = [8, 128], strides = [1, 1]} : vector<8x512xf32> to vector<8x128xf32>
    %170 = arith.negf %169 : vector<8x128xf32>
    %171 = math.exp %170 : vector<8x128xf32>
    %cst_128 = arith.constant 1.000000e+00 : f32
    %172 = vector.broadcast %cst_128 : f32 to vector<8x128xf32>
    %173 = arith.addf %172, %171 : vector<8x128xf32>
    %174 = arith.divf %172, %173 : vector<8x128xf32>
    %175 = vector.extract_strided_slice %168 {offsets = [0, 128], sizes = [8, 128], strides = [1, 1]} : vector<8x512xf32> to vector<8x128xf32>
    %176 = arith.negf %175 : vector<8x128xf32>
    %177 = math.exp %176 : vector<8x128xf32>
    %cst_129 = arith.constant 1.000000e+00 : f32
    %178 = vector.broadcast %cst_129 : f32 to vector<8x128xf32>
    %179 = arith.addf %178, %177 : vector<8x128xf32>
    %180 = arith.divf %178, %179 : vector<8x128xf32>
    %181 = vector.extract_strided_slice %168 {offsets = [0, 256], sizes = [8, 128], strides = [1, 1]} : vector<8x512xf32> to vector<8x128xf32>
    %182 = math.tanh %181 : vector<8x128xf32>
    %183 = vector.extract_strided_slice %168 {offsets = [0, 384], sizes = [8, 128], strides = [1, 1]} : vector<8x512xf32> to vector<8x128xf32>
    %184 = arith.negf %183 : vector<8x128xf32>
    %185 = math.exp %184 : vector<8x128xf32>
    %cst_130 = arith.constant 1.000000e+00 : f32
    %186 = vector.broadcast %cst_130 : f32 to vector<8x128xf32>
    %187 = arith.addf %186, %185 : vector<8x128xf32>
    %188 = arith.divf %186, %187 : vector<8x128xf32>
    %c0_131 = arith.constant 0 : index
    %c0_132 = arith.constant 0 : index
    %189 = vector.load %arg8[%c0_131, %c0_132] : memref<8x128xf32, #tpu.memory_space<vmem>>, vector<8x128xf32>
    %190 = arith.mulf %180, %189 : vector<8x128xf32>
    %191 = arith.mulf %174, %182 : vector<8x128xf32>
    %192 = arith.addf %190, %191 : vector<8x128xf32>
    %193 = math.tanh %192 : vector<8x128xf32>
    %194 = arith.mulf %188, %193 : vector<8x128xf32>
    %c0_133 = arith.constant 0 : index
    %c0_134 = arith.constant 0 : index
    %195 = vector.load %arg8[%c0_133, %c0_134] : memref<8x128xf32, #tpu.memory_space<vmem>>, vector<8x128xf32>
    tpu.vector_store %arg8[%c0_133, %c0_134], %192 {strides = array<i32>} : memref<8x128xf32, #tpu.memory_space<vmem>>, vector<8x128xf32>,
    %c0_135 = arith.constant 0 : index
    %c0_136 = arith.constant 0 : index
    %196 = vector.load %arg7[%c0_135, %c0_136] : memref<8x128xf32, #tpu.memory_space<vmem>>, vector<8x128xf32>
    tpu.vector_store %arg7[%c0_135, %c0_136], %194 {strides = array<i32>} : memref<8x128xf32, #tpu.memory_space<vmem>>, vector<8x128xf32>,
    %197 = arith.index_cast %c2_i32 : i32 to index
    %c0_137 = arith.constant 0 : index
    %c0_138 = arith.constant 0 : index
    %198 = vector.load %arg6[%197, %c0_137, %c0_138] : memref<8x8x128xf32, #tpu.memory_space<vmem>>, vector<1x8x128xf32>
    %199 = vector.shape_cast %198 : vector<1x8x128xf32> to vector<8x128xf32>
    %200 = vector.shape_cast %194 : vector<8x128xf32> to vector<1x8x128xf32>
    tpu.vector_store %arg6[%197, %c0_137, %c0_138], %200 {strides = array<i32>} : memref<8x8x128xf32, #tpu.memory_space<vmem>>, vector<1x8x128xf32>,
    %c3_i32 = arith.constant 3 : i32
    %201 = arith.index_cast %c3_i32 : i32 to index
    %c0_139 = arith.constant 0 : index
    %c0_140 = arith.constant 0 : index
    %202 = vector.load %arg5[%201, %c0_139, %c0_140] : memref<8x8x512xf32, #tpu.memory_space<vmem>>, vector<1x8x512xf32>
    %203 = vector.shape_cast %202 : vector<1x8x512xf32> to vector<8x512xf32>
    %c0_141 = arith.constant 0 : index
    %c0_142 = arith.constant 0 : index
    %204 = vector.load %arg7[%c0_141, %c0_142] : memref<8x128xf32, #tpu.memory_space<vmem>>, vector<8x128xf32>
    %c0_143 = arith.constant 0 : index
    %c0_144 = arith.constant 0 : index
    %205 = vector.load %arg2[%c0_143, %c0_144] : memref<128x512xf32, #tpu.memory_space<vmem>>, vector<128x512xf32>
    %cst_145 = arith.constant dense<0.000000e+00> : vector<8x512xf32>
    %206 = tpu.matmul %204, %205, %cst_145 {dimension_numbers = #tpu.dot_dimension_numbers<[1], [0], [0], [1], [0, 0, 1, 1], [], []>} : vector<8x128xf32>, vector<128x512xf32>, vector<8x512xf32> -> vector<8x512xf32>
    %207 = arith.addf %203, %206 : vector<8x512xf32>
    %208 = vector.extract_strided_slice %207 {offsets = [0, 0], sizes = [8, 128], strides = [1, 1]} : vector<8x512xf32> to vector<8x128xf32>
    %209 = arith.negf %208 : vector<8x128xf32>
    %210 = math.exp %209 : vector<8x128xf32>
    %cst_146 = arith.constant 1.000000e+00 : f32
    %211 = vector.broadcast %cst_146 : f32 to vector<8x128xf32>
    %212 = arith.addf %211, %210 : vector<8x128xf32>
    %213 = arith.divf %211, %212 : vector<8x128xf32>
    %214 = vector.extract_strided_slice %207 {offsets = [0, 128], sizes = [8, 128], strides = [1, 1]} : vector<8x512xf32> to vector<8x128xf32>
    %215 = arith.negf %214 : vector<8x128xf32>
    %216 = math.exp %215 : vector<8x128xf32>
    %cst_147 = arith.constant 1.000000e+00 : f32
    %217 = vector.broadcast %cst_147 : f32 to vector<8x128xf32>
    %218 = arith.addf %217, %216 : vector<8x128xf32>
    %219 = arith.divf %217, %218 : vector<8x128xf32>
    %220 = vector.extract_strided_slice %207 {offsets = [0, 256], sizes = [8, 128], strides = [1, 1]} : vector<8x512xf32> to vector<8x128xf32>
    %221 = math.tanh %220 : vector<8x128xf32>
    %222 = vector.extract_strided_slice %207 {offsets = [0, 384], sizes = [8, 128], strides = [1, 1]} : vector<8x512xf32> to vector<8x128xf32>
    %223 = arith.negf %222 : vector<8x128xf32>
    %224 = math.exp %223 : vector<8x128xf32>
    %cst_148 = arith.constant 1.000000e+00 : f32
    %225 = vector.broadcast %cst_148 : f32 to vector<8x128xf32>
    %226 = arith.addf %225, %224 : vector<8x128xf32>
    %227 = arith.divf %225, %226 : vector<8x128xf32>
    %c0_149 = arith.constant 0 : index
    %c0_150 = arith.constant 0 : index
    %228 = vector.load %arg8[%c0_149, %c0_150] : memref<8x128xf32, #tpu.memory_space<vmem>>, vector<8x128xf32>
    %229 = arith.mulf %219, %228 : vector<8x128xf32>
    %230 = arith.mulf %213, %221 : vector<8x128xf32>
    %231 = arith.addf %229, %230 : vector<8x128xf32>
    %232 = math.tanh %231 : vector<8x128xf32>
    %233 = arith.mulf %227, %232 : vector<8x128xf32>
    %c0_151 = arith.constant 0 : index
    %c0_152 = arith.constant 0 : index
    %234 = vector.load %arg8[%c0_151, %c0_152] : memref<8x128xf32, #tpu.memory_space<vmem>>, vector<8x128xf32>
    tpu.vector_store %arg8[%c0_151, %c0_152], %231 {strides = array<i32>} : memref<8x128xf32, #tpu.memory_space<vmem>>, vector<8x128xf32>,
    %c0_153 = arith.constant 0 : index
    %c0_154 = arith.constant 0 : index
    %235 = vector.load %arg7[%c0_153, %c0_154] : memref<8x128xf32, #tpu.memory_space<vmem>>, vector<8x128xf32>
    tpu.vector_store %arg7[%c0_153, %c0_154], %233 {strides = array<i32>} : memref<8x128xf32, #tpu.memory_space<vmem>>, vector<8x128xf32>,
    %236 = arith.index_cast %c3_i32 : i32 to index
    %c0_155 = arith.constant 0 : index
    %c0_156 = arith.constant 0 : index
    %237 = vector.load %arg6[%236, %c0_155, %c0_156] : memref<8x8x128xf32, #tpu.memory_space<vmem>>, vector<1x8x128xf32>
    %238 = vector.shape_cast %237 : vector<1x8x128xf32> to vector<8x128xf32>
    %239 = vector.shape_cast %233 : vector<8x128xf32> to vector<1x8x128xf32>
    tpu.vector_store %arg6[%236, %c0_155, %c0_156], %239 {strides = array<i32>} : memref<8x8x128xf32, #tpu.memory_space<vmem>>, vector<1x8x128xf32>,
    %c4_i32 = arith.constant 4 : i32
    %240 = arith.index_cast %c4_i32 : i32 to index
    %c0_157 = arith.constant 0 : index
    %c0_158 = arith.constant 0 : index
    %241 = vector.load %arg5[%240, %c0_157, %c0_158] : memref<8x8x512xf32, #tpu.memory_space<vmem>>, vector<1x8x512xf32>
    %242 = vector.shape_cast %241 : vector<1x8x512xf32> to vector<8x512xf32>
    %c0_159 = arith.constant 0 : index
    %c0_160 = arith.constant 0 : index
    %243 = vector.load %arg7[%c0_159, %c0_160] : memref<8x128xf32, #tpu.memory_space<vmem>>, vector<8x128xf32>
    %c0_161 = arith.constant 0 : index
    %c0_162 = arith.constant 0 : index
    %244 = vector.load %arg2[%c0_161, %c0_162] : memref<128x512xf32, #tpu.memory_space<vmem>>, vector<128x512xf32>
    %cst_163 = arith.constant dense<0.000000e+00> : vector<8x512xf32>
    %245 = tpu.matmul %243, %244, %cst_163 {dimension_numbers = #tpu.dot_dimension_numbers<[1], [0], [0], [1], [0, 0, 1, 1], [], []>} : vector<8x128xf32>, vector<128x512xf32>, vector<8x512xf32> -> vector<8x512xf32>
    %246 = arith.addf %242, %245 : vector<8x512xf32>
    %247 = vector.extract_strided_slice %246 {offsets = [0, 0], sizes = [8, 128], strides = [1, 1]} : vector<8x512xf32> to vector<8x128xf32>
    %248 = arith.negf %247 : vector<8x128xf32>
    %249 = math.exp %248 : vector<8x128xf32>
    %cst_164 = arith.constant 1.000000e+00 : f32
    %250 = vector.broadcast %cst_164 : f32 to vector<8x128xf32>
    %251 = arith.addf %250, %249 : vector<8x128xf32>
    %252 = arith.divf %250, %251 : vector<8x128xf32>
    %253 = vector.extract_strided_slice %246 {offsets = [0, 128], sizes = [8, 128], strides = [1, 1]} : vector<8x512xf32> to vector<8x128xf32>
    %254 = arith.negf %253 : vector<8x128xf32>
    %255 = math.exp %254 : vector<8x128xf32>
    %cst_165 = arith.constant 1.000000e+00 : f32
    %256 = vector.broadcast %cst_165 : f32 to vector<8x128xf32>
    %257 = arith.addf %256, %255 : vector<8x128xf32>
    %258 = arith.divf %256, %257 : vector<8x128xf32>
    %259 = vector.extract_strided_slice %246 {offsets = [0, 256], sizes = [8, 128], strides = [1, 1]} : vector<8x512xf32> to vector<8x128xf32>
    %260 = math.tanh %259 : vector<8x128xf32>
    %261 = vector.extract_strided_slice %246 {offsets = [0, 384], sizes = [8, 128], strides = [1, 1]} : vector<8x512xf32> to vector<8x128xf32>
    %262 = arith.negf %261 : vector<8x128xf32>
    %263 = math.exp %262 : vector<8x128xf32>
    %cst_166 = arith.constant 1.000000e+00 : f32
    %264 = vector.broadcast %cst_166 : f32 to vector<8x128xf32>
    %265 = arith.addf %264, %263 : vector<8x128xf32>
    %266 = arith.divf %264, %265 : vector<8x128xf32>
    %c0_167 = arith.constant 0 : index
    %c0_168 = arith.constant 0 : index
    %267 = vector.load %arg8[%c0_167, %c0_168] : memref<8x128xf32, #tpu.memory_space<vmem>>, vector<8x128xf32>
    %268 = arith.mulf %258, %267 : vector<8x128xf32>
    %269 = arith.mulf %252, %260 : vector<8x128xf32>
    %270 = arith.addf %268, %269 : vector<8x128xf32>
    %271 = math.tanh %270 : vector<8x128xf32>
    %272 = arith.mulf %266, %271 : vector<8x128xf32>
    %c0_169 = arith.constant 0 : index
    %c0_170 = arith.constant 0 : index
    %273 = vector.load %arg8[%c0_169, %c0_170] : memref<8x128xf32, #tpu.memory_space<vmem>>, vector<8x128xf32>
    tpu.vector_store %arg8[%c0_169, %c0_170], %270 {strides = array<i32>} : memref<8x128xf32, #tpu.memory_space<vmem>>, vector<8x128xf32>,
    %c0_171 = arith.constant 0 : index
    %c0_172 = arith.constant 0 : index
    %274 = vector.load %arg7[%c0_171, %c0_172] : memref<8x128xf32, #tpu.memory_space<vmem>>, vector<8x128xf32>
    tpu.vector_store %arg7[%c0_171, %c0_172], %272 {strides = array<i32>} : memref<8x128xf32, #tpu.memory_space<vmem>>, vector<8x128xf32>,
    %275 = arith.index_cast %c4_i32 : i32 to index
    %c0_173 = arith.constant 0 : index
    %c0_174 = arith.constant 0 : index
    %276 = vector.load %arg6[%275, %c0_173, %c0_174] : memref<8x8x128xf32, #tpu.memory_space<vmem>>, vector<1x8x128xf32>
    %277 = vector.shape_cast %276 : vector<1x8x128xf32> to vector<8x128xf32>
    %278 = vector.shape_cast %272 : vector<8x128xf32> to vector<1x8x128xf32>
    tpu.vector_store %arg6[%275, %c0_173, %c0_174], %278 {strides = array<i32>} : memref<8x8x128xf32, #tpu.memory_space<vmem>>, vector<1x8x128xf32>,
    %c5_i32 = arith.constant 5 : i32
    %279 = arith.index_cast %c5_i32 : i32 to index
    %c0_175 = arith.constant 0 : index
    %c0_176 = arith.constant 0 : index
    %280 = vector.load %arg5[%279, %c0_175, %c0_176] : memref<8x8x512xf32, #tpu.memory_space<vmem>>, vector<1x8x512xf32>
    %281 = vector.shape_cast %280 : vector<1x8x512xf32> to vector<8x512xf32>
    %c0_177 = arith.constant 0 : index
    %c0_178 = arith.constant 0 : index
    %282 = vector.load %arg7[%c0_177, %c0_178] : memref<8x128xf32, #tpu.memory_space<vmem>>, vector<8x128xf32>
    %c0_179 = arith.constant 0 : index
    %c0_180 = arith.constant 0 : index
    %283 = vector.load %arg2[%c0_179, %c0_180] : memref<128x512xf32, #tpu.memory_space<vmem>>, vector<128x512xf32>
    %cst_181 = arith.constant dense<0.000000e+00> : vector<8x512xf32>
    %284 = tpu.matmul %282, %283, %cst_181 {dimension_numbers = #tpu.dot_dimension_numbers<[1], [0], [0], [1], [0, 0, 1, 1], [], []>} : vector<8x128xf32>, vector<128x512xf32>, vector<8x512xf32> -> vector<8x512xf32>
    %285 = arith.addf %281, %284 : vector<8x512xf32>
    %286 = vector.extract_strided_slice %285 {offsets = [0, 0], sizes = [8, 128], strides = [1, 1]} : vector<8x512xf32> to vector<8x128xf32>
    %287 = arith.negf %286 : vector<8x128xf32>
    %288 = math.exp %287 : vector<8x128xf32>
    %cst_182 = arith.constant 1.000000e+00 : f32
    %289 = vector.broadcast %cst_182 : f32 to vector<8x128xf32>
    %290 = arith.addf %289, %288 : vector<8x128xf32>
    %291 = arith.divf %289, %290 : vector<8x128xf32>
    %292 = vector.extract_strided_slice %285 {offsets = [0, 128], sizes = [8, 128], strides = [1, 1]} : vector<8x512xf32> to vector<8x128xf32>
    %293 = arith.negf %292 : vector<8x128xf32>
    %294 = math.exp %293 : vector<8x128xf32>
    %cst_183 = arith.constant 1.000000e+00 : f32
    %295 = vector.broadcast %cst_183 : f32 to vector<8x128xf32>
    %296 = arith.addf %295, %294 : vector<8x128xf32>
    %297 = arith.divf %295, %296 : vector<8x128xf32>
    %298 = vector.extract_strided_slice %285 {offsets = [0, 256], sizes = [8, 128], strides = [1, 1]} : vector<8x512xf32> to vector<8x128xf32>
    %299 = math.tanh %298 : vector<8x128xf32>
    %300 = vector.extract_strided_slice %285 {offsets = [0, 384], sizes = [8, 128], strides = [1, 1]} : vector<8x512xf32> to vector<8x128xf32>
    %301 = arith.negf %300 : vector<8x128xf32>
    %302 = math.exp %301 : vector<8x128xf32>
    %cst_184 = arith.constant 1.000000e+00 : f32
    %303 = vector.broadcast %cst_184 : f32 to vector<8x128xf32>
    %304 = arith.addf %303, %302 : vector<8x128xf32>
    %305 = arith.divf %303, %304 : vector<8x128xf32>
    %c0_185 = arith.constant 0 : index
    %c0_186 = arith.constant 0 : index
    %306 = vector.load %arg8[%c0_185, %c0_186] : memref<8x128xf32, #tpu.memory_space<vmem>>, vector<8x128xf32>
    %307 = arith.mulf %297, %306 : vector<8x128xf32>
    %308 = arith.mulf %291, %299 : vector<8x128xf32>
    %309 = arith.addf %307, %308 : vector<8x128xf32>
    %310 = math.tanh %309 : vector<8x128xf32>
    %311 = arith.mulf %305, %310 : vector<8x128xf32>
    %c0_187 = arith.constant 0 : index
    %c0_188 = arith.constant 0 : index
    %312 = vector.load %arg8[%c0_187, %c0_188] : memref<8x128xf32, #tpu.memory_space<vmem>>, vector<8x128xf32>
    tpu.vector_store %arg8[%c0_187, %c0_188], %309 {strides = array<i32>} : memref<8x128xf32, #tpu.memory_space<vmem>>, vector<8x128xf32>,
    %c0_189 = arith.constant 0 : index
    %c0_190 = arith.constant 0 : index
    %313 = vector.load %arg7[%c0_189, %c0_190] : memref<8x128xf32, #tpu.memory_space<vmem>>, vector<8x128xf32>
    tpu.vector_store %arg7[%c0_189, %c0_190], %311 {strides = array<i32>} : memref<8x128xf32, #tpu.memory_space<vmem>>, vector<8x128xf32>,
    %314 = arith.index_cast %c5_i32 : i32 to index
    %c0_191 = arith.constant 0 : index
    %c0_192 = arith.constant 0 : index
    %315 = vector.load %arg6[%314, %c0_191, %c0_192] : memref<8x8x128xf32, #tpu.memory_space<vmem>>, vector<1x8x128xf32>
    %316 = vector.shape_cast %315 : vector<1x8x128xf32> to vector<8x128xf32>
    %317 = vector.shape_cast %311 : vector<8x128xf32> to vector<1x8x128xf32>
    tpu.vector_store %arg6[%314, %c0_191, %c0_192], %317 {strides = array<i32>} : memref<8x8x128xf32, #tpu.memory_space<vmem>>, vector<1x8x128xf32>,
    %c6_i32 = arith.constant 6 : i32
    %318 = arith.index_cast %c6_i32 : i32 to index
    %c0_193 = arith.constant 0 : index
    %c0_194 = arith.constant 0 : index
    %319 = vector.load %arg5[%318, %c0_193, %c0_194] : memref<8x8x512xf32, #tpu.memory_space<vmem>>, vector<1x8x512xf32>
    %320 = vector.shape_cast %319 : vector<1x8x512xf32> to vector<8x512xf32>
    %c0_195 = arith.constant 0 : index
    %c0_196 = arith.constant 0 : index
    %321 = vector.load %arg7[%c0_195, %c0_196] : memref<8x128xf32, #tpu.memory_space<vmem>>, vector<8x128xf32>
    %c0_197 = arith.constant 0 : index
    %c0_198 = arith.constant 0 : index
    %322 = vector.load %arg2[%c0_197, %c0_198] : memref<128x512xf32, #tpu.memory_space<vmem>>, vector<128x512xf32>
    %cst_199 = arith.constant dense<0.000000e+00> : vector<8x512xf32>
    %323 = tpu.matmul %321, %322, %cst_199 {dimension_numbers = #tpu.dot_dimension_numbers<[1], [0], [0], [1], [0, 0, 1, 1], [], []>} : vector<8x128xf32>, vector<128x512xf32>, vector<8x512xf32> -> vector<8x512xf32>
    %324 = arith.addf %320, %323 : vector<8x512xf32>
    %325 = vector.extract_strided_slice %324 {offsets = [0, 0], sizes = [8, 128], strides = [1, 1]} : vector<8x512xf32> to vector<8x128xf32>
    %326 = arith.negf %325 : vector<8x128xf32>
    %327 = math.exp %326 : vector<8x128xf32>
    %cst_200 = arith.constant 1.000000e+00 : f32
    %328 = vector.broadcast %cst_200 : f32 to vector<8x128xf32>
    %329 = arith.addf %328, %327 : vector<8x128xf32>
    %330 = arith.divf %328, %329 : vector<8x128xf32>
    %331 = vector.extract_strided_slice %324 {offsets = [0, 128], sizes = [8, 128], strides = [1, 1]} : vector<8x512xf32> to vector<8x128xf32>
    %332 = arith.negf %331 : vector<8x128xf32>
    %333 = math.exp %332 : vector<8x128xf32>
    %cst_201 = arith.constant 1.000000e+00 : f32
    %334 = vector.broadcast %cst_201 : f32 to vector<8x128xf32>
    %335 = arith.addf %334, %333 : vector<8x128xf32>
    %336 = arith.divf %334, %335 : vector<8x128xf32>
    %337 = vector.extract_strided_slice %324 {offsets = [0, 256], sizes = [8, 128], strides = [1, 1]} : vector<8x512xf32> to vector<8x128xf32>
    %338 = math.tanh %337 : vector<8x128xf32>
    %339 = vector.extract_strided_slice %324 {offsets = [0, 384], sizes = [8, 128], strides = [1, 1]} : vector<8x512xf32> to vector<8x128xf32>
    %340 = arith.negf %339 : vector<8x128xf32>
    %341 = math.exp %340 : vector<8x128xf32>
    %cst_202 = arith.constant 1.000000e+00 : f32
    %342 = vector.broadcast %cst_202 : f32 to vector<8x128xf32>
    %343 = arith.addf %342, %341 : vector<8x128xf32>
    %344 = arith.divf %342, %343 : vector<8x128xf32>
    %c0_203 = arith.constant 0 : index
    %c0_204 = arith.constant 0 : index
    %345 = vector.load %arg8[%c0_203, %c0_204] : memref<8x128xf32, #tpu.memory_space<vmem>>, vector<8x128xf32>
    %346 = arith.mulf %336, %345 : vector<8x128xf32>
    %347 = arith.mulf %330, %338 : vector<8x128xf32>
    %348 = arith.addf %346, %347 : vector<8x128xf32>
    %349 = math.tanh %348 : vector<8x128xf32>
    %350 = arith.mulf %344, %349 : vector<8x128xf32>
    %c0_205 = arith.constant 0 : index
    %c0_206 = arith.constant 0 : index
    %351 = vector.load %arg8[%c0_205, %c0_206] : memref<8x128xf32, #tpu.memory_space<vmem>>, vector<8x128xf32>
    tpu.vector_store %arg8[%c0_205, %c0_206], %348 {strides = array<i32>} : memref<8x128xf32, #tpu.memory_space<vmem>>, vector<8x128xf32>,
    %c0_207 = arith.constant 0 : index
    %c0_208 = arith.constant 0 : index
    %352 = vector.load %arg7[%c0_207, %c0_208] : memref<8x128xf32, #tpu.memory_space<vmem>>, vector<8x128xf32>
    tpu.vector_store %arg7[%c0_207, %c0_208], %350 {strides = array<i32>} : memref<8x128xf32, #tpu.memory_space<vmem>>, vector<8x128xf32>,
    %353 = arith.index_cast %c6_i32 : i32 to index
    %c0_209 = arith.constant 0 : index
    %c0_210 = arith.constant 0 : index
    %354 = vector.load %arg6[%353, %c0_209, %c0_210] : memref<8x8x128xf32, #tpu.memory_space<vmem>>, vector<1x8x128xf32>
    %355 = vector.shape_cast %354 : vector<1x8x128xf32> to vector<8x128xf32>
    %356 = vector.shape_cast %350 : vector<8x128xf32> to vector<1x8x128xf32>
    tpu.vector_store %arg6[%353, %c0_209, %c0_210], %356 {strides = array<i32>} : memref<8x8x128xf32, #tpu.memory_space<vmem>>, vector<1x8x128xf32>,
    %c7_i32 = arith.constant 7 : i32
    %357 = arith.index_cast %c7_i32 : i32 to index
    %c0_211 = arith.constant 0 : index
    %c0_212 = arith.constant 0 : index
    %358 = vector.load %arg5[%357, %c0_211, %c0_212] : memref<8x8x512xf32, #tpu.memory_space<vmem>>, vector<1x8x512xf32>
    %359 = vector.shape_cast %358 : vector<1x8x512xf32> to vector<8x512xf32>
    %c0_213 = arith.constant 0 : index
    %c0_214 = arith.constant 0 : index
    %360 = vector.load %arg7[%c0_213, %c0_214] : memref<8x128xf32, #tpu.memory_space<vmem>>, vector<8x128xf32>
    %c0_215 = arith.constant 0 : index
    %c0_216 = arith.constant 0 : index
    %361 = vector.load %arg2[%c0_215, %c0_216] : memref<128x512xf32, #tpu.memory_space<vmem>>, vector<128x512xf32>
    %cst_217 = arith.constant dense<0.000000e+00> : vector<8x512xf32>
    %362 = tpu.matmul %360, %361, %cst_217 {dimension_numbers = #tpu.dot_dimension_numbers<[1], [0], [0], [1], [0, 0, 1, 1], [], []>} : vector<8x128xf32>, vector<128x512xf32>, vector<8x512xf32> -> vector<8x512xf32>
    %363 = arith.addf %359, %362 : vector<8x512xf32>
    %364 = vector.extract_strided_slice %363 {offsets = [0, 0], sizes = [8, 128], strides = [1, 1]} : vector<8x512xf32> to vector<8x128xf32>
    %365 = arith.negf %364 : vector<8x128xf32>
    %366 = math.exp %365 : vector<8x128xf32>
    %cst_218 = arith.constant 1.000000e+00 : f32
    %367 = vector.broadcast %cst_218 : f32 to vector<8x128xf32>
    %368 = arith.addf %367, %366 : vector<8x128xf32>
    %369 = arith.divf %367, %368 : vector<8x128xf32>
    %370 = vector.extract_strided_slice %363 {offsets = [0, 128], sizes = [8, 128], strides = [1, 1]} : vector<8x512xf32> to vector<8x128xf32>
    %371 = arith.negf %370 : vector<8x128xf32>
    %372 = math.exp %371 : vector<8x128xf32>
    %cst_219 = arith.constant 1.000000e+00 : f32
    %373 = vector.broadcast %cst_219 : f32 to vector<8x128xf32>
    %374 = arith.addf %373, %372 : vector<8x128xf32>
    %375 = arith.divf %373, %374 : vector<8x128xf32>
    %376 = vector.extract_strided_slice %363 {offsets = [0, 256], sizes = [8, 128], strides = [1, 1]} : vector<8x512xf32> to vector<8x128xf32>
    %377 = math.tanh %376 : vector<8x128xf32>
    %378 = vector.extract_strided_slice %363 {offsets = [0, 384], sizes = [8, 128], strides = [1, 1]} : vector<8x512xf32> to vector<8x128xf32>
    %379 = arith.negf %378 : vector<8x128xf32>
    %380 = math.exp %379 : vector<8x128xf32>
    %cst_220 = arith.constant 1.000000e+00 : f32
    %381 = vector.broadcast %cst_220 : f32 to vector<8x128xf32>
    %382 = arith.addf %381, %380 : vector<8x128xf32>
    %383 = arith.divf %381, %382 : vector<8x128xf32>
    %c0_221 = arith.constant 0 : index
    %c0_222 = arith.constant 0 : index
    %384 = vector.load %arg8[%c0_221, %c0_222] : memref<8x128xf32, #tpu.memory_space<vmem>>, vector<8x128xf32>
    %385 = arith.mulf %375, %384 : vector<8x128xf32>
    %386 = arith.mulf %369, %377 : vector<8x128xf32>
    %387 = arith.addf %385, %386 : vector<8x128xf32>
    %388 = math.tanh %387 : vector<8x128xf32>
    %389 = arith.mulf %383, %388 : vector<8x128xf32>
    %c0_223 = arith.constant 0 : index
    %c0_224 = arith.constant 0 : index
    %390 = vector.load %arg8[%c0_223, %c0_224] : memref<8x128xf32, #tpu.memory_space<vmem>>, vector<8x128xf32>
    tpu.vector_store %arg8[%c0_223, %c0_224], %387 {strides = array<i32>} : memref<8x128xf32, #tpu.memory_space<vmem>>, vector<8x128xf32>,
    %c0_225 = arith.constant 0 : index
    %c0_226 = arith.constant 0 : index
    %391 = vector.load %arg7[%c0_225, %c0_226] : memref<8x128xf32, #tpu.memory_space<vmem>>, vector<8x128xf32>
    tpu.vector_store %arg7[%c0_225, %c0_226], %389 {strides = array<i32>} : memref<8x128xf32, #tpu.memory_space<vmem>>, vector<8x128xf32>,
    %392 = arith.index_cast %c7_i32 : i32 to index
    %c0_227 = arith.constant 0 : index
    %c0_228 = arith.constant 0 : index
    %393 = vector.load %arg6[%392, %c0_227, %c0_228] : memref<8x8x128xf32, #tpu.memory_space<vmem>>, vector<1x8x128xf32>
    %394 = vector.shape_cast %393 : vector<1x8x128xf32> to vector<8x128xf32>
    %395 = vector.shape_cast %389 : vector<8x128xf32> to vector<1x8x128xf32>
    tpu.vector_store %arg6[%392, %c0_227, %c0_228], %395 {strides = array<i32>} : memref<8x8x128xf32, #tpu.memory_space<vmem>>, vector<1x8x128xf32>,
    %c8_i32 = arith.constant 8 : i32
    %c0_229 = arith.constant 0 : index
    %c0_230 = arith.constant 0 : index
    %c0_231 = arith.constant 0 : index
    %396 = vector.load %arg6[%c0_229, %c0_230, %c0_231] : memref<8x8x128xf32, #tpu.memory_space<vmem>>, vector<8x1x128xf32>
    %397 = vector.shape_cast %396 : vector<8x1x128xf32> to vector<8x128xf32>
    %c0_232 = arith.constant 0 : index
    %c0_233 = arith.constant 0 : index
    %c0_234 = arith.constant 0 : index
    %398 = vector.load %arg4[%c0_232, %c0_233, %c0_234] : memref<2x8x128xf32, #tpu.memory_space<vmem>>, vector<1x8x128xf32>
    %399 = vector.shape_cast %398 : vector<1x8x128xf32> to vector<8x128xf32>
    %400 = vector.shape_cast %397 : vector<8x128xf32> to vector<1x8x128xf32>
    tpu.vector_store %arg4[%c0_232, %c0_233, %c0_234], %400 {strides = array<i32>} : memref<2x8x128xf32, #tpu.memory_space<vmem>>, vector<1x8x128xf32>,
    %c0_235 = arith.constant 0 : index
    %c1_236 = arith.constant 1 : index
    %c0_237 = arith.constant 0 : index
    %401 = vector.load %arg6[%c0_235, %c1_236, %c0_237] : memref<8x8x128xf32, #tpu.memory_space<vmem>>, vector<8x1x128xf32>
    %402 = vector.shape_cast %401 : vector<8x1x128xf32> to vector<8x128xf32>
    %c1_238 = arith.constant 1 : index
    %c0_239 = arith.constant 0 : index
    %c0_240 = arith.constant 0 : index
    %403 = vector.load %arg4[%c1_238, %c0_239, %c0_240] : memref<2x8x128xf32, #tpu.memory_space<vmem>>, vector<1x8x128xf32>
    %404 = vector.shape_cast %403 : vector<1x8x128xf32> to vector<8x128xf32>
    %405 = vector.shape_cast %402 : vector<8x128xf32> to vector<1x8x128xf32>
    tpu.vector_store %arg4[%c1_238, %c0_239, %c0_240], %405 {strides = array<i32>} : memref<2x8x128xf32, #tpu.memory_space<vmem>>, vector<1x8x128xf32>,
    return
  }
}

module attributes {stable_mosaic.version = 11 : i64} {
  func.func @cross_mlp_stats_kernel(%arg0: i32, %arg1: memref<16x128xf32, #tpu.memory_space<vmem>>, %arg2: memref<16x4xf32, #tpu.memory_space<vmem>>, %arg3: memref<128x128xf32, #tpu.memory_space<vmem>>, %arg4: memref<4x128xf32, #tpu.memory_space<vmem>>, %arg5: memref<1x128xf32, #tpu.memory_space<vmem>>, %arg6: memref<128x128xf32, #tpu.memory_space<vmem>>, %arg7: memref<1x128xf32, #tpu.memory_space<vmem>>, %arg8: memref<16x128xf32, #tpu.memory_space<vmem>>, %arg9: memref<1x128xf32, #tpu.memory_space<vmem>>, %arg10: memref<1x128xf32, #tpu.memory_space<vmem>>) attributes {dimension_semantics = [#tpu.dimension_semantics<arbitrary>], iteration_bounds = array<i64: 1>, scalar_prefetch = 0 : i64, scratch_operands = 0 : i64, tpu.core_type = #tpu.core_type<tc>, window_params = [{transform_indices = @transform_0, window_bounds = array<i64: 16, 128>}, {transform_indices = @transform_1, window_bounds = array<i64: 16, 4>}, {pipeline_mode = #tpu.pipeline_mode<synchronous>, transform_indices = @transform_2, window_bounds = array<i64: 128, 128>}, {pipeline_mode = #tpu.pipeline_mode<synchronous>, transform_indices = @transform_3, window_bounds = array<i64: 4, 128>}, {pipeline_mode = #tpu.pipeline_mode<synchronous>, transform_indices = @transform_4, window_bounds = array<i64: 1, 128>}, {pipeline_mode = #tpu.pipeline_mode<synchronous>, transform_indices = @transform_5, window_bounds = array<i64: 128, 128>}, {pipeline_mode = #tpu.pipeline_mode<synchronous>, transform_indices = @transform_6, window_bounds = array<i64: 1, 128>}, {transform_indices = @transform_7, window_bounds = array<i64: 16, 128>}, {pipeline_mode = #tpu.pipeline_mode<synchronous>, transform_indices = @transform_8, window_bounds = array<i64: 1, 128>}, {pipeline_mode = #tpu.pipeline_mode<synchronous>, transform_indices = @transform_9, window_bounds = array<i64: 1, 128>}]} {
    %c0_i32 = arith.constant 0 : i32
    %0 = arith.cmpi eq, %arg0, %c0_i32 : i32
    %1 = arith.extui %0 : i1 to i32
    %c0_i32_0 = arith.constant 0 : i32
    %2 = arith.cmpi ne, %1, %c0_i32_0 : i32
    scf.if %2 {
      %cst_29 = arith.constant 0.000000e+00 : f32
      %32 = vector.broadcast %cst_29 : f32 to vector<1x128xf32>
      %c0_30 = arith.constant 0 : index
      %c0_31 = arith.constant 0 : index
      %33 = vector.load %arg9[%c0_30, %c0_31] : memref<1x128xf32, #tpu.memory_space<vmem>>, vector<1x128xf32>
      tpu.vector_store %arg9[%c0_30, %c0_31], %32 {strides = array<i32>} : memref<1x128xf32, #tpu.memory_space<vmem>>, vector<1x128xf32>,
      %cst_32 = arith.constant 0.000000e+00 : f32
      %34 = vector.broadcast %cst_32 : f32 to vector<1x128xf32>
      %c0_33 = arith.constant 0 : index
      %c0_34 = arith.constant 0 : index
      %35 = vector.load %arg10[%c0_33, %c0_34] : memref<1x128xf32, #tpu.memory_space<vmem>>, vector<1x128xf32>
      tpu.vector_store %arg10[%c0_33, %c0_34], %34 {strides = array<i32>} : memref<1x128xf32, #tpu.memory_space<vmem>>, vector<1x128xf32>,
    } else {
    }
    %c0 = arith.constant 0 : index
    %c0_1 = arith.constant 0 : index
    %3 = vector.load %arg1[%c0, %c0_1] : memref<16x128xf32, #tpu.memory_space<vmem>>, vector<16x128xf32>
    %c0_2 = arith.constant 0 : index
    %c0_3 = arith.constant 0 : index
    %4 = vector.load %arg3[%c0_2, %c0_3] : memref<128x128xf32, #tpu.memory_space<vmem>>, vector<128x128xf32>
    %cst = arith.constant dense<0.000000e+00> : vector<16x128xf32>
    %5 = tpu.matmul %3, %4, %cst {dimension_numbers = #tpu.dot_dimension_numbers<[1], [0], [0], [1], [0, 0, 1, 1], [], []>} : vector<16x128xf32>, vector<128x128xf32>, vector<16x128xf32> -> vector<16x128xf32>
    %c0_4 = arith.constant 0 : index
    %c0_5 = arith.constant 0 : index
    %6 = vector.load %arg2[%c0_4, %c0_5] : memref<16x4xf32, #tpu.memory_space<vmem>>, vector<16x4xf32>
    %c0_6 = arith.constant 0 : index
    %c0_7 = arith.constant 0 : index
    %7 = vector.load %arg4[%c0_6, %c0_7] : memref<4x128xf32, #tpu.memory_space<vmem>>, vector<4x128xf32>
    %cst_8 = arith.constant dense<0.000000e+00> : vector<16x128xf32>
    %8 = tpu.matmul %6, %7, %cst_8 {dimension_numbers = #tpu.dot_dimension_numbers<[1], [0], [0], [1], [0, 0, 1, 1], [], []>} : vector<16x4xf32>, vector<4x128xf32>, vector<16x128xf32> -> vector<16x128xf32>
    %9 = arith.addf %5, %8 : vector<16x128xf32>
    %c0_9 = arith.constant 0 : index
    %c0_10 = arith.constant 0 : index
    %10 = vector.load %arg5[%c0_9, %c0_10] : memref<1x128xf32, #tpu.memory_space<vmem>>, vector<1x128xf32>
    %11 = vector.broadcast %10 : vector<1x128xf32> to vector<16x128xf32>
    %12 = arith.addf %9, %11 : vector<16x128xf32>
    %cst_11 = arith.constant 0.000000e+00 : f32
    %13 = vector.broadcast %cst_11 : f32 to vector<16x128xf32>
    %14 = arith.maximumf %12, %13 : vector<16x128xf32>
    %c0_12 = arith.constant 0 : index
    %c0_13 = arith.constant 0 : index
    %15 = vector.load %arg6[%c0_12, %c0_13] : memref<128x128xf32, #tpu.memory_space<vmem>>, vector<128x128xf32>
    %cst_14 = arith.constant dense<0.000000e+00> : vector<16x128xf32>
    %16 = tpu.matmul %14, %15, %cst_14 {dimension_numbers = #tpu.dot_dimension_numbers<[1], [0], [0], [1], [0, 0, 1, 1], [], []>} : vector<16x128xf32>, vector<128x128xf32>, vector<16x128xf32> -> vector<16x128xf32>
    %c0_15 = arith.constant 0 : index
    %c0_16 = arith.constant 0 : index
    %17 = vector.load %arg7[%c0_15, %c0_16] : memref<1x128xf32, #tpu.memory_space<vmem>>, vector<1x128xf32>
    %18 = vector.broadcast %17 : vector<1x128xf32> to vector<16x128xf32>
    %19 = arith.addf %16, %18 : vector<16x128xf32>
    %c0_17 = arith.constant 0 : index
    %c0_18 = arith.constant 0 : index
    %20 = vector.load %arg8[%c0_17, %c0_18] : memref<16x128xf32, #tpu.memory_space<vmem>>, vector<16x128xf32>
    tpu.vector_store %arg8[%c0_17, %c0_18], %19 {strides = array<i32>} : memref<16x128xf32, #tpu.memory_space<vmem>>, vector<16x128xf32>,
    %c0_19 = arith.constant 0 : index
    %c0_20 = arith.constant 0 : index
    %21 = vector.load %arg9[%c0_19, %c0_20] : memref<1x128xf32, #tpu.memory_space<vmem>>, vector<1x128xf32>
    %cst_21 = arith.constant dense<0.000000e+00> : vector<128xf32>
    %22 = vector.multi_reduction <add>, %19, %cst_21 [0] : vector<16x128xf32> to vector<128xf32>
    %23 = vector.shape_cast %22 : vector<128xf32> to vector<1x128xf32>
    %24 = arith.addf %21, %23 : vector<1x128xf32>
    %c0_22 = arith.constant 0 : index
    %c0_23 = arith.constant 0 : index
    %25 = vector.load %arg9[%c0_22, %c0_23] : memref<1x128xf32, #tpu.memory_space<vmem>>, vector<1x128xf32>
    tpu.vector_store %arg9[%c0_22, %c0_23], %24 {strides = array<i32>} : memref<1x128xf32, #tpu.memory_space<vmem>>, vector<1x128xf32>,
    %c0_24 = arith.constant 0 : index
    %c0_25 = arith.constant 0 : index
    %26 = vector.load %arg10[%c0_24, %c0_25] : memref<1x128xf32, #tpu.memory_space<vmem>>, vector<1x128xf32>
    %27 = arith.mulf %19, %19 : vector<16x128xf32>
    %cst_26 = arith.constant dense<0.000000e+00> : vector<128xf32>
    %28 = vector.multi_reduction <add>, %27, %cst_26 [0] : vector<16x128xf32> to vector<128xf32>
    %29 = vector.shape_cast %28 : vector<128xf32> to vector<1x128xf32>
    %30 = arith.addf %26, %29 : vector<1x128xf32>
    %c0_27 = arith.constant 0 : index
    %c0_28 = arith.constant 0 : index
    %31 = vector.load %arg10[%c0_27, %c0_28] : memref<1x128xf32, #tpu.memory_space<vmem>>, vector<1x128xf32>
    tpu.vector_store %arg10[%c0_27, %c0_28], %30 {strides = array<i32>} : memref<1x128xf32, #tpu.memory_space<vmem>>, vector<1x128xf32>,
    return
  }
  func.func @transform_0(%arg0: i32) -> (i32, i32) {
    %c0_i32 = arith.constant 0 : i32
    %c0_i32_0 = arith.constant 0 : i32
    return %arg0, %c0_i32 : i32, i32
  }
  func.func @transform_1(%arg0: i32) -> (i32, i32) {
    %c0_i32 = arith.constant 0 : i32
    %c0_i32_0 = arith.constant 0 : i32
    return %arg0, %c0_i32 : i32, i32
  }
  func.func @transform_2(%arg0: i32) -> (i32, i32) {
    %c0_i32 = arith.constant 0 : i32
    %c0_i32_0 = arith.constant 0 : i32
    %c0_i32_1 = arith.constant 0 : i32
    return %c0_i32, %c0_i32_0 : i32, i32
  }
  func.func @transform_3(%arg0: i32) -> (i32, i32) {
    %c0_i32 = arith.constant 0 : i32
    %c0_i32_0 = arith.constant 0 : i32
    %c0_i32_1 = arith.constant 0 : i32
    return %c0_i32, %c0_i32_0 : i32, i32
  }
  func.func @transform_4(%arg0: i32) -> (i32, i32) {
    %c0_i32 = arith.constant 0 : i32
    %c0_i32_0 = arith.constant 0 : i32
    %c0_i32_1 = arith.constant 0 : i32
    return %c0_i32, %c0_i32_0 : i32, i32
  }
  func.func @transform_5(%arg0: i32) -> (i32, i32) {
    %c0_i32 = arith.constant 0 : i32
    %c0_i32_0 = arith.constant 0 : i32
    %c0_i32_1 = arith.constant 0 : i32
    return %c0_i32, %c0_i32_0 : i32, i32
  }
  func.func @transform_6(%arg0: i32) -> (i32, i32) {
    %c0_i32 = arith.constant 0 : i32
    %c0_i32_0 = arith.constant 0 : i32
    %c0_i32_1 = arith.constant 0 : i32
    return %c0_i32, %c0_i32_0 : i32, i32
  }
  func.func @transform_7(%arg0: i32) -> (i32, i32) {
    %c0_i32 = arith.constant 0 : i32
    %c0_i32_0 = arith.constant 0 : i32
    return %arg0, %c0_i32 : i32, i32
  }
  func.func @transform_8(%arg0: i32) -> (i32, i32) {
    %c0_i32 = arith.constant 0 : i32
    %c0_i32_0 = arith.constant 0 : i32
    %c0_i32_1 = arith.constant 0 : i32
    return %c0_i32, %c0_i32_0 : i32, i32
  }
  func.func @transform_9(%arg0: i32) -> (i32, i32) {
    %c0_i32 = arith.constant 0 : i32
    %c0_i32_0 = arith.constant 0 : i32
    %c0_i32_1 = arith.constant 0 : i32
    return %c0_i32, %c0_i32_0 : i32, i32
  }
}

module attributes {stable_mosaic.version = 11 : i64} {
  func.func @bn_residual_kernel(%arg0: i32, %arg1: memref<16x128xf32, #tpu.memory_space<vmem>>, %arg2: memref<16x128xf32, #tpu.memory_space<vmem>>, %arg3: memref<1x128xf32, #tpu.memory_space<vmem>>, %arg4: memref<1x128xf32, #tpu.memory_space<vmem>>, %arg5: memref<1x128xf32, #tpu.memory_space<vmem>>, %arg6: memref<1x128xf32, #tpu.memory_space<vmem>>, %arg7: memref<16x128xf32, #tpu.memory_space<vmem>>) attributes {dimension_semantics = [#tpu.dimension_semantics<parallel>], iteration_bounds = array<i64: 1>, scalar_prefetch = 0 : i64, scratch_operands = 0 : i64, tpu.core_type = #tpu.core_type<tc>, window_params = [{transform_indices = @transform_0, window_bounds = array<i64: 16, 128>}, {transform_indices = @transform_1, window_bounds = array<i64: 16, 128>}, {pipeline_mode = #tpu.pipeline_mode<synchronous>, transform_indices = @transform_2, window_bounds = array<i64: 1, 128>}, {pipeline_mode = #tpu.pipeline_mode<synchronous>, transform_indices = @transform_3, window_bounds = array<i64: 1, 128>}, {pipeline_mode = #tpu.pipeline_mode<synchronous>, transform_indices = @transform_4, window_bounds = array<i64: 1, 128>}, {pipeline_mode = #tpu.pipeline_mode<synchronous>, transform_indices = @transform_5, window_bounds = array<i64: 1, 128>}, {transform_indices = @transform_6, window_bounds = array<i64: 16, 128>}]} {
    %c0 = arith.constant 0 : index
    %c0_0 = arith.constant 0 : index
    %0 = vector.load %arg4[%c0, %c0_0] : memref<1x128xf32, #tpu.memory_space<vmem>>, vector<1x128xf32>
    %cst = arith.constant 9.99999974E-6 : f32
    %1 = vector.broadcast %cst : f32 to vector<1x128xf32>
    %2 = arith.addf %0, %1 : vector<1x128xf32>
    %3 = math.rsqrt %2 : vector<1x128xf32>
    %c0_1 = arith.constant 0 : index
    %c0_2 = arith.constant 0 : index
    %4 = vector.load %arg5[%c0_1, %c0_2] : memref<1x128xf32, #tpu.memory_space<vmem>>, vector<1x128xf32>
    %5 = arith.mulf %3, %4 : vector<1x128xf32>
    %c0_3 = arith.constant 0 : index
    %c0_4 = arith.constant 0 : index
    %6 = vector.load %arg1[%c0_3, %c0_4] : memref<16x128xf32, #tpu.memory_space<vmem>>, vector<16x128xf32>
    %c0_5 = arith.constant 0 : index
    %c0_6 = arith.constant 0 : index
    %7 = vector.load %arg3[%c0_5, %c0_6] : memref<1x128xf32, #tpu.memory_space<vmem>>, vector<1x128xf32>
    %8 = vector.broadcast %7 : vector<1x128xf32> to vector<16x128xf32>
    %9 = arith.subf %6, %8 : vector<16x128xf32>
    %10 = vector.broadcast %5 : vector<1x128xf32> to vector<16x128xf32>
    %11 = arith.mulf %9, %10 : vector<16x128xf32>
    %c0_7 = arith.constant 0 : index
    %c0_8 = arith.constant 0 : index
    %12 = vector.load %arg6[%c0_7, %c0_8] : memref<1x128xf32, #tpu.memory_space<vmem>>, vector<1x128xf32>
    %13 = vector.broadcast %12 : vector<1x128xf32> to vector<16x128xf32>
    %14 = arith.addf %11, %13 : vector<16x128xf32>
    %c0_9 = arith.constant 0 : index
    %c0_10 = arith.constant 0 : index
    %15 = vector.load %arg2[%c0_9, %c0_10] : memref<16x128xf32, #tpu.memory_space<vmem>>, vector<16x128xf32>
    %16 = arith.addf %14, %15 : vector<16x128xf32>
    %c0_11 = arith.constant 0 : index
    %c0_12 = arith.constant 0 : index
    %17 = vector.load %arg7[%c0_11, %c0_12] : memref<16x128xf32, #tpu.memory_space<vmem>>, vector<16x128xf32>
    tpu.vector_store %arg7[%c0_11, %c0_12], %16 {strides = array<i32>} : memref<16x128xf32, #tpu.memory_space<vmem>>, vector<16x128xf32>,
    return
  }
  func.func @transform_0(%arg0: i32) -> (i32, i32) {
    %c0_i32 = arith.constant 0 : i32
    %c0_i32_0 = arith.constant 0 : i32
    return %arg0, %c0_i32 : i32, i32
  }
  func.func @transform_1(%arg0: i32) -> (i32, i32) {
    %c0_i32 = arith.constant 0 : i32
    %c0_i32_0 = arith.constant 0 : i32
    return %arg0, %c0_i32 : i32, i32
  }
  func.func @transform_2(%arg0: i32) -> (i32, i32) {
    %c0_i32 = arith.constant 0 : i32
    %c0_i32_0 = arith.constant 0 : i32
    %c0_i32_1 = arith.constant 0 : i32
    return %c0_i32, %c0_i32_0 : i32, i32
  }
  func.func @transform_3(%arg0: i32) -> (i32, i32) {
    %c0_i32 = arith.constant 0 : i32
    %c0_i32_0 = arith.constant 0 : i32
    %c0_i32_1 = arith.constant 0 : i32
    return %c0_i32, %c0_i32_0 : i32, i32
  }
  func.func @transform_4(%arg0: i32) -> (i32, i32) {
    %c0_i32 = arith.constant 0 : i32
    %c0_i32_0 = arith.constant 0 : i32
    %c0_i32_1 = arith.constant 0 : i32
    return %c0_i32, %c0_i32_0 : i32, i32
  }
  func.func @transform_5(%arg0: i32) -> (i32, i32) {
    %c0_i32 = arith.constant 0 : i32
    %c0_i32_0 = arith.constant 0 : i32
    %c0_i32_1 = arith.constant 0 : i32
    return %c0_i32, %c0_i32_0 : i32, i32
  }
  func.func @transform_6(%arg0: i32) -> (i32, i32) {
    %c0_i32 = arith.constant 0 : i32
    %c0_i32_0 = arith.constant 0 : i32
    return %arg0, %c0_i32 : i32, i32
  }
}

</mosaic_0001>

<bundles_post_ra>
// kernel: combined_block_forward.5
= control target key start
LH: loop header
LB: loop body
LE: loop exit
PB: predicated region body
PF: predicated region fallthrough
CT: control target
= control target key end

     0   :  { %s184_s0 = inlined_call_operand.vmem [shape: f32[16,128], index: 0, kind: input, shape index: {}]   ;;  %s185_s1 = inlined_call_operand.vmem [shape: f32[16,128], index: 1, kind: input, shape index: {}]   ;;  %s186_s2 = inlined_call_operand.vmem [shape: f32[1,128], index: 2, kind: input, shape index: {}]   ;;  %s187_s3 = inlined_call_operand.vmem [shape: f32[1,128], index: 3, kind: input, shape index: {}]   ;;  %s188_s4 = inlined_call_operand.vmem [shape: f32[1,128], index: 4, kind: input, shape index: {}]   ;;  %s189_s5 = inlined_call_operand.vmem [shape: f32[1,128], index: 5, kind: input, shape index: {}]   ;;  %s190_s6 = inlined_call_operand.hbm [shape: f32[16,128], index: 6, kind: output, shape index: {}]  }
   0x1   :  { %v24_v0 = vld [vmem:[%s187_s3] sm:$0x1] }
   0x2   :  { %v25_v1 = vadd.f32 1e-05, %v24_v0 }
   0x4   :  { %84 = vrsqrt.f32 %v25_v1 }
   0x5   :  { %11 = vsyncpa [#allocation3], 0  ;;  %v41_v2 = vlaneseq  ;;  %v27_v4 = vld [vmem:[%s188_s4] sm:$0x1]  ;;  %v30_v7 = vld [vmem:[%s184_s0 + $0x8] sm:$0xff] }
   0x6   :  { %v29_v5 = vld [vmem:[%s184_s0] sm:$0xff]  ;;  %v58_v18 = vld [vmem:[%s185_s1 + $0x8] sm:$0xff]  ;;  %s110_s0 = smov [#allocation2]  }
   0x7   :  { %v42_v3 = vshrl.u32 %v41_v2, 7  ;;  %v79_v6 = vld [vmem:[%s186_s2] ss:$0 sm:$0xff]  ;;  %s68_s10 = sshll.u32 %s110_s0, 4  ;;  %s69_s10 = int_to_ptr.vmem [resolvable:$true] %s68_s10 }
   0x8   :  { %v38_v11 = vsub.f32 %v29_v5, %v79_v6  ;;  %v39_v12 = vsub.f32 %v30_v7, %v79_v6  ;;  %v80_v14 = vld [vmem:[%s189_s5] ss:$0 sm:$0xff]  ;;  %s86_s5 = scalar_lea.vmem %s69_s10, 256  ;;  %p91_p1 = scmp.lt.s32.totalorder %s69_s10, %s69_s10 }
   0x9   :  { %v43_v8 = vsub.s32 0, %v42_v3  ;;  %v57_v17 = vld [vmem:[%s185_s1] sm:$0xff]  ;;  %p87_p0 = scmp.ne.s32.totalorder %s69_s10, %s86_s5  ;;  %p92_p2 = scmp.lt.s32.totalorder %s86_s5, %s86_s5 }
   0xb   :  { %p93_p3 = por %p92_p2, %p91_p1 }
   0xd   :  { %p94_p4 = pnand %p93_p3, %p87_p0 }
   0xe   :  { %v85_v9 = vpop.eup %84 }
   0xf   :  { %v28_v10 = vmul.f32 %v85_v9, %v27_v4 }
  0x11   :  { %v44_v13 = vrot.slane %v28_v10, %v43_v8 }
  0x13   :  { %v46_v15 = vmul.f32 %v44_v13, %v38_v11  ;;  %v47_v16 = vmul.f32 %v44_v13, %v39_v12 }
  0x15   :  { %v55_v19 = vadd.f32 %v80_v14, %v46_v15  ;;  %v56_v20 = vadd.f32 %v80_v14, %v47_v16 }
  0x17   :  { %v59_v21 = vadd.f32 %v57_v17, %v55_v19  ;;  %v60_v22 = vadd.f32 %v58_v18, %v56_v20 }
  0x19   :  { %61 = vst [vmem:[#allocation2] sm:$0xff] %v59_v21  ;;  %62 = vst [vmem:[#allocation2 + $0x8] sm:$0xff] %v60_v22 }
  0x1a   :  { %97 = shalt.err (!%p94_p4)
}
  0x1b   :  { %s98_s1 = scalar_lea.hbm %s190_s6, 256 }
  0x1c   :  { %p99_p5 = scmp.ne.s32.totalorder %s190_s6, %s98_s1  ;;  %p102_p6 = scmp.lt.u32.totalorder %s98_s1, %s190_s6 }
  0x1e   :  { %p104_p7 = pnand %p102_p6, %p99_p5 }
  0x20   :  { %107 = shalt.err (!%p104_p7)
}
  0x21   :  { %s111_s17 = smov 128   ;;  %s112_s18 = smov 8  }
  0x22   :  { %74 = dma.vmem_to_hbm [thread:$0]  %s69_s10, 256, %s190_s6, [#allocation3], %s111_s17, %s111_s17, %s112_s18  }
  0x23   :  { %108 = dma.done.wait [#allocation3], 256  }
  0x24   :  { %109 = vsyncadd [#allocation3], 4294967040 }
  0x25   :  { %78 = vsyncpa [#allocation3], 1 }

// kernel: combined_block_forward.4
= control target key start
LH: loop header
LB: loop body
LE: loop exit
PB: predicated region body
PF: predicated region fallthrough
CT: control target
= control target key end

     0   :  { %vm63_vm0 = vcmask 1043456   ;;  %vm56_vm1 = vcmask 31744   ;;  %v548_v60 = vmov 0.0   ;;  %s740_s3 = inlined_call_operand.vmem [shape: f32[4,128], index: 3, kind: input, shape index: {}]   ;;  %s741_s1 = inlined_call_operand.vmem [shape: f32[16,4], index: 1, kind: input, shape index: {}]   ;;  %s742_s2 = inlined_call_operand.vmem [shape: f32[128,128], index: 2, kind: input, shape index: {}]   ;;  %s743_s0 = inlined_call_operand.vmem [shape: f32[16,128], index: 0, kind: input, shape index: {}]   ;;  %s744_s5 = inlined_call_operand.vmem [shape: f32[128,128], index: 5, kind: input, shape index: {}]   ;;  %s745_s4 = inlined_call_operand.vmem [shape: f32[1,128], index: 4, kind: input, shape index: {}]   ;;  %s746_s8 = inlined_call_operand.vmem [shape: f32[1,128], index: 8, kind: output, shape index: {1}]   ;;  %s747_s9 = inlined_call_operand.vmem [shape: f32[1,128], index: 9, kind: output, shape index: {2}]   ;;  %s748_s6 = inlined_call_operand.vmem [shape: f32[1,128], index: 6, kind: input, shape index: {}]   ;;  %s749_s7 = inlined_call_operand.vmem [shape: f32[16,128], index: 7, kind: output, shape index: {0}]  }
   0x1   :  { %v55_v0 = vld [vmem:[%s740_s3] sm:$0xf]  ;;  %v54_v2 = vld [vmem:[%s741_s1 + $0x8] sm:$0xff]  ;;  %v39_v5 = vld [vmem:[%s742_s2 + $0x10] sm:$0xff]  ;;  %33 = vst [vmem:[%s746_s8] sm:$0x1] %v548_v60 }
   0x2   :  { %v53_v1 = vld [vmem:[%s741_s1] sm:$0xff]  ;;  %406 = vmatprep.subr.msk.mxu0 %vm63_vm0, %v55_v0  ;;  %v38_v4 = vld [vmem:[%s742_s2 + $0x8] sm:$0xff]  ;;  %v40_v7 = vld [vmem:[%s742_s2 + $0x18] sm:$0xff]  ;;  %34 = vst [vmem:[%s747_s9] sm:$0x1] %v548_v60 }
   0x3   :  { %408 = vmatprep.mubr.msk.f32.mxu0 %vm56_vm1, %v53_v1  ;;  %v37_v3 = vld [vmem:[%s742_s2] sm:$0xff]  ;;  %407 = vmatpush3.msk.msra.mxu0 %vm63_vm0, %v55_v0  ;;  %v485_v8 = vpack.c.bf16 %v40_v7, %v39_v5  ;;  %v42_v10 = vld [vmem:[%s742_s2 + $0x28] sm:$0xff]  ;;  %v43_v12 = vld [vmem:[%s742_s2 + $0x30] sm:$0xff] }
   0x4   :  { %v481_v6 = vpack.c.bf16 %v38_v4, %v37_v3  ;;  %409 = vmatmul.mubr.msk.f32.vlgmr.msra.gmra.mrb[0].mxu0 %vm56_vm1, %v54_v2  ;;  %v41_v9 = vld [vmem:[%s742_s2 + $0x20] sm:$0xff]  ;;  %v44_v13 = vld [vmem:[%s742_s2 + $0x38] sm:$0xff]  ;;  %v229_v16 = vld [vmem:[%s744_s5 + $0x8] sm:$0xff] }
   0x5   :  { %v489_v11 = vpack.c.bf16 %v42_v10, %v41_v9  ;;  %v35_v14 = vld [vmem:[%s743_s0] sm:$0xff]  ;;  %v230_v17 = vld [vmem:[%s744_s5 + $0x10] sm:$0xff]  ;;  %v231_v19 = vld [vmem:[%s744_s5 + $0x18] sm:$0xff]  ;;  %v493_v23 = vpack.c.bf16 %v44_v13, %v43_v12 }
   0x6   :  { %482 = vmatprep.subr.bf16.mxu0 %v481_v6  ;;  %443 = vmatprep.mubr.f32.mxu0 %v35_v14  ;;  %v228_v15 = vld [vmem:[%s744_s5] sm:$0xff]  ;;  %v517_v20 = vpack.c.bf16 %v231_v19, %v230_v17  ;;  %v233_v22 = vld [vmem:[%s744_s5 + $0x28] sm:$0xff]  ;;  %v234_v27 = vld [vmem:[%s744_s5 + $0x30] sm:$0xff] }
   0x7   :  { %484 = vmatpush3.bf16.msra.mxu0 %v481_v6  ;;  %v513_v18 = vpack.c.bf16 %v229_v16, %v228_v15  ;;  %v232_v21 = vld [vmem:[%s744_s5 + $0x20] sm:$0xff]  ;;  %v46_v25 = vld [vmem:[%s742_s2 + $0x48] sm:$0xff]  ;;  %v235_v28 = vld [vmem:[%s744_s5 + $0x38] sm:$0xff] }
   0x8   :  { %486 = vmatprep.subr.bf16.mxu0 %v485_v8  ;;  %v45_v24 = vld [vmem:[%s742_s2 + $0x40] sm:$0xff]  ;;  %v521_v26 = vpack.c.bf16 %v233_v22, %v232_v21  ;;  %v47_v30 = vld [vmem:[%s742_s2 + $0x50] sm:$0xff]  ;;  %v48_v31 = vld [vmem:[%s742_s2 + $0x58] sm:$0xff]  ;;  %v525_v32 = vpack.c.bf16 %v235_v28, %v234_v27 }
   0x9   :  { %514 = vmatprep.subr.bf16.mxu1 %v513_v18  ;;  %v497_v29 = vpack.c.bf16 %v46_v25, %v45_v24  ;;  %v236_v33 = vld [vmem:[%s744_s5 + $0x40] sm:$0xff]  ;;  %v237_v34 = vld [vmem:[%s744_s5 + $0x48] sm:$0xff]  ;;  %v501_v35 = vpack.c.bf16 %v48_v31, %v47_v30  ;;  %v238_v39 = vld [vmem:[%s744_s5 + $0x50] sm:$0xff] }
   0xa   :  { %516 = vmatpush3.bf16.msra.mxu1 %v513_v18  ;;  %v49_v36 = vld [vmem:[%s742_s2 + $0x60] sm:$0xff]  ;;  %v50_v37 = vld [vmem:[%s742_s2 + $0x68] sm:$0xff]  ;;  %v529_v38 = vpack.c.bf16 %v237_v34, %v236_v33  ;;  %v239_v40 = vld [vmem:[%s744_s5 + $0x58] sm:$0xff] }
   0xb   :  { %488 = vmatpush3.bf16.msra.mxu0 %v485_v8  ;;  %518 = vmatprep.subr.bf16.mxu1 %v517_v20  ;;  %v505_v41 = vpack.c.bf16 %v50_v37, %v49_v36  ;;  %v51_v42 = vld [vmem:[%s742_s2 + $0x70] sm:$0xff]  ;;  %v52_v43 = vld [vmem:[%s742_s2 + $0x78] sm:$0xff]  ;;  %v533_v44 = vpack.c.bf16 %v239_v40, %v238_v39  ;;  %v240_v45 = vld [vmem:[%s744_s5 + $0x60] sm:$0xff] }
   0xc   :  { %490 = vmatprep.subr.bf16.mxu0 %v489_v11  ;;  %v241_v46 = vld [vmem:[%s744_s5 + $0x68] sm:$0xff]  ;;  %v509_v47 = vpack.c.bf16 %v52_v43, %v51_v42  ;;  %v242_v50 = vld [vmem:[%s744_s5 + $0x70] sm:$0xff]  ;;  %v243_v51 = vld [vmem:[%s744_s5 + $0x78] sm:$0xff] }
   0xd   :  { %v537_v48 = vpack.c.bf16 %v241_v46, %v240_v45  ;;  %v36_v49 = vld [vmem:[%s743_s0 + $0x8] sm:$0xff]  ;;  %v541_v52 = vpack.c.bf16 %v243_v51, %v242_v50  ;;  %v365_v53 = vld [vmem:[%s745_s4] ss:$0 sm:$0xff] }
   0xe   :  { %520 = vmatpush3.bf16.msra.mxu1 %v517_v20  ;;  %v366_v61 = vld [vmem:[%s748_s6] ss:$0 sm:$0xff] }
   0xf   :  { %492 = vmatpush3.bf16.msra.mxu0 %v489_v11  ;;  %522 = vmatprep.subr.bf16.mxu1 %v521_v26  ;;  %v328_v15 = vld [vmem:[%s746_s8] sm:$0x1] }
  0x10   :  { %494 = vmatprep.subr.bf16.mxu0 %v493_v23  ;;  %v338_v18 = vld [vmem:[%s747_s9] sm:$0x1] }
  0x12   :  { %524 = vmatpush3.bf16.msra.mxu1 %v521_v26 }
  0x13   :  { %496 = vmatpush3.bf16.msra.mxu0 %v493_v23  ;;  %526 = vmatprep.subr.bf16.mxu1 %v525_v32 }
  0x14   :  { %498 = vmatprep.subr.bf16.mxu0 %v497_v29 }
  0x16   :  { %528 = vmatpush3.bf16.msra.mxu1 %v525_v32 }
  0x17   :  { %500 = vmatpush3.bf16.msra.mxu0 %v497_v29  ;;  %530 = vmatprep.subr.bf16.mxu1 %v529_v38 }
  0x18   :  { %502 = vmatprep.subr.bf16.mxu0 %v501_v35 }
  0x1a   :  { %532 = vmatpush3.bf16.msra.mxu1 %v529_v38 }
  0x1b   :  { %504 = vmatpush3.bf16.msra.mxu0 %v501_v35  ;;  %534 = vmatprep.subr.bf16.mxu1 %v533_v44 }
  0x1c   :  { %506 = vmatprep.subr.bf16.mxu0 %v505_v41 }
  0x1e   :  { %536 = vmatpush3.bf16.msra.mxu1 %v533_v44 }
  0x1f   :  { %508 = vmatpush3.bf16.msra.mxu0 %v505_v41  ;;  %538 = vmatprep.subr.bf16.mxu1 %v537_v48 }
  0x20   :  { %510 = vmatprep.subr.bf16.mxu0 %v509_v47 }
  0x22   :  { %540 = vmatpush3.bf16.msra.mxu1 %v537_v48 }
  0x23   :  { %512 = vmatpush3.bf16.msra.mxu0 %v509_v47  ;;  %542 = vmatprep.subr.bf16.mxu1 %v541_v52 }
  0x26   :  { %444 = vmatmul.mubr.f32.vlgmr.msra.gmra.mrb[0].mxu0 %v36_v49  ;;  %544 = vmatpush3.bf16.msra.mxu1 %v541_v52 }
  0xf9   :  { %v445_v54 = vpop.f32.mrb[0].mxu0 }
  0xfa   :  { %v225_v55 = vadd.f32 %v445_v54, %v365_v53  ;;  %v208_v56 = vpop.f32.mrb[1].mxu0 }
  0xfb   :  { %v224_v57 = vadd.f32 %v365_v53, %v208_v56 }
  0xfc   :  { %v227_v59 = vmax.f32 %v225_v55, 0.0 }
  0xfd   :  { %v226_v58 = vmax.f32 %v224_v57, 0.0 }
  0xff   :  { %478 = vmatprep.mubr.f32.mxu1 %v226_v58 }
 0x100   :  { %479 = vmatmul.mubr.f32.vlgmr.msra.gmra.mrb[0].mxu1 %v227_v59 }
 0x1d3   :  { %v480_v62 = vpop.f32.mrb[0].mxu1 }
 0x1d4   :  { %v323_v63 = vadd.f32 %v480_v62, %v366_v61  ;;  %v317_v0 = vpop.f32.mrb[1].mxu1 }
 0x1d5   :  { %v318_v1 = vadd.f32 %v366_v61, %v317_v0 }
 0x1d6   :  { %327 = vst [vmem:[%s749_s7 + $0x8] sm:$0xff] %v323_v63  ;;  %v340_v2 = vmul.f32 %v323_v63, %v323_v63 }
 0x1d7   :  { %326 = vst [vmem:[%s749_s7] sm:$0xff] %v318_v1  ;;  %v329_v3 = vadd.f32 %v323_v63, %v318_v1  ;;  %v339_v4 = vmul.f32 %v318_v1, %v318_v1 }
 0x1d9   :  { %v330_v5 = vrot.slane %v329_v3, 4  ;;  %v341_v6 = vadd.f32 %v340_v2, %v339_v4 }
 0x1db   :  { %v331_v7 = vadd.f32 %v330_v5, %v329_v3  ;;  %v342_v8 = vrot.slane %v341_v6, 4 }
 0x1dd   :  { %v332_v9 = vrot.slane %v331_v7, 2  ;;  %v343_v10 = vadd.f32 %v342_v8, %v341_v6 }
 0x1df   :  { %v333_v11 = vadd.f32 %v332_v9, %v331_v7  ;;  %v344_v12 = vrot.slane %v343_v10, 2 }
 0x1e1   :  { %v334_v13 = vrot.slane %v333_v11, 1  ;;  %v345_v14 = vadd.f32 %v344_v12, %v343_v10 }
 0x1e3   :  { %v335_v16 = vadd.f32 %v334_v13, %v333_v11  ;;  %v346_v17 = vrot.slane %v345_v14, 1 }
 0x1e5   :  { %v336_v19 = vadd.f32 %v335_v16, %v328_v15  ;;  %v347_v20 = vadd.f32 %v346_v17, %v345_v14 }
 0x1e7   :  { %337 = vst [vmem:[%s746_s8] sm:$0x1] %v336_v19  ;;  %v348_v21 = vadd.f32 %v347_v20, %v338_v18 }
 0x1e9   :  { %349 = vst [vmem:[%s747_s9] sm:$0x1] %v348_v21 }

// kernel: combined_block_forward.3
= control target key start
LH: loop header
LB: loop body
LE: loop exit
PB: predicated region body
PF: predicated region fallthrough
CT: control target
= control target key end

     0   :  { %vm50_vm0 = vcmask 1043456   ;;  %v5077_v2 = vmov 0.0   ;;  %vm46_vm1 = vcmask 31744   ;;  %vm4294_vm3 = vcmask 1041409   ;;  %s6696_s1 = inlined_call_operand.vmem [shape: f32[4,512], index: 1, kind: input, shape index: {}]   ;;  %s6697_s0 = inlined_call_operand.vmem [shape: f32[8,8,4], index: 0, kind: input, shape index: {}]   ;;  %s6698_s2 = inlined_call_operand.vmem [shape: f32[128,512], index: 2, kind: input, shape index: {}]   ;;  %s6699_s3 = inlined_call_operand.vmem [shape: f32[1,512], index: 3, kind: input, shape index: {}]   ;;  %s6700_s4 = inlined_call_operand.vmem [shape: f32[2,8,128], index: 4, kind: output, shape index: {}]  }
   0x1   :  { %v5107_v0 = vld [vmem:[%s6696_s1] sm:$0xff]  ;;  %v5112_v1 = vld [vmem:[%s6696_s1 + $0x8] sm:$0xff]  ;;  %123 = vmatprep.mubr.f32.mxu0 %v5077_v2  ;;  %194 = vmatprep.mubr.f32.mxu1 %v5077_v2  ;;  %v4366_v7 = vld [vmem:[%s6697_s0 + $0x10] sm:$0xff]  ;;  %vm4297_vm4 = vcmask 1042434   ;;  %vm4300_vm5 = vcmask 1043459   ;;  %vm4303_vm6 = vcmask 1044484  }
   0x2   :  { %v5118_v3 = vcombine.high %v5107_v0, %v5107_v0  ;;  %v5122_v4 = vcombine.high %v5112_v1, %v5112_v1  ;;  %v17_v5 = vld [vmem:[%s6697_s0] sm:$0xff]  ;;  %v4359_v6 = vld [vmem:[%s6697_s0 + $0x8] sm:$0xff]  ;;  %v4373_v8 = vld [vmem:[%s6697_s0 + $0x18] sm:$0xff]  ;;  %vm4306_vm7 = vcmask 1045509   ;;  %vm4309_vm8 = vcmask 1046534  }
   0x3   :  { %v4380_v9 = vld [vmem:[%s6697_s0 + $0x20] sm:$0xff]  ;;  %v4387_v10 = vld [vmem:[%s6697_s0 + $0x28] sm:$0xff]  ;;  %v4394_v11 = vld [vmem:[%s6697_s0 + $0x30] sm:$0xff]  ;;  %vm4312_vm9 = vcmask 1047559  }
   0x4   :  { %4353 = vmatprep.subr.msk.mxu0 %vm50_vm0, %v5118_v3  ;;  %4356 = vmatprep.subr.msk.mxu1 %vm50_vm0, %v5122_v4  ;;  %v2325_v12 = vld [vmem:[%s6698_s2 + $0x8] sm:$0xff]  ;;  %v2327_v14 = vld [vmem:[%s6698_s2 + $0x18] sm:$0xff]  ;;  %v2324_v16 = vld [vmem:[%s6698_s2] sm:$0xff] }
   0x5   :  { %4354 = vmatpush1.msk.msra.mxu0 %vm50_vm0, %v5107_v0  ;;  %4357 = vmatpush1.msk.msra.mxu1 %vm50_vm0, %v5112_v1  ;;  %v2329_v13 = vld [vmem:[%s6698_s2 + $0x28] sm:$0xff]  ;;  %v2331_v15 = vld [vmem:[%s6698_s2 + $0x38] sm:$0xff]  ;;  %v2328_v17 = vld [vmem:[%s6698_s2 + $0x20] sm:$0xff] }
   0x6   :  { %4355 = vmatmul.mubr.msk.f32.vlgmr.msra.gmra.mrb[0].mxu0 %vm46_vm1, %v17_v5  ;;  %4358 = vmatmul.mubr.msk.f32.vlgmr.msra.gmra.mrb[0].mxu1 %vm46_vm1, %v17_v5  ;;  %v2326_v18 = vld [vmem:[%s6698_s2 + $0x10] sm:$0xff]  ;;  %v2333_v20 = vld [vmem:[%s6698_s2 + $0x48] sm:$0xff]  ;;  %v5254_v21 = vpack.c.bf16 %v2329_v13, %v2325_v12  ;;  %v5256_v22 = vpack.c.bf16 %v2331_v15, %v2327_v14  ;;  %v2335_v24 = vld [vmem:[%s6698_s2 + $0x58] sm:$0xff]  ;;  %v5278_v27 = vpack.c.bf16 %v2328_v17, %v2324_v16 }
   0x7   :  { %4360 = vmatprep.subr.msk.mxu0 %vm50_vm0, %v5118_v3  ;;  %4363 = vmatprep.subr.msk.mxu1 %vm50_vm0, %v5122_v4  ;;  %v2330_v19 = vld [vmem:[%s6698_s2 + $0x30] sm:$0xff]  ;;  %v2337_v23 = vld [vmem:[%s6698_s2 + $0x68] sm:$0xff]  ;;  %v2339_v25 = vld [vmem:[%s6698_s2 + $0x78] sm:$0xff] }
   0x8   :  { %4361 = vmatpush1.msk.msra.mxu0 %vm50_vm0, %v5107_v0  ;;  %413 = vmatprep.mubr.f32.mxu0 %v5077_v2  ;;  %v4401_v26 = vld [vmem:[%s6697_s0 + $0x38] sm:$0xff]  ;;  %v5280_v28 = vpack.c.bf16 %v2330_v19, %v2326_v18  ;;  %v2332_v29 = vld [vmem:[%s6698_s2 + $0x40] sm:$0xff]  ;;  %v5290_v31 = vpack.c.bf16 %v2337_v23, %v2333_v20  ;;  %v5292_v32 = vpack.c.bf16 %v2339_v25, %v2335_v24  ;;  %v2334_v33 = vld [vmem:[%s6698_s2 + $0x50] sm:$0xff] }
   0x9   :  { %4364 = vmatpush1.msk.msra.mxu1 %vm50_vm0, %v5112_v1  ;;  %484 = vmatprep.mubr.f32.mxu1 %v5077_v2  ;;  %v2336_v30 = vld [vmem:[%s6698_s2 + $0x60] sm:$0xff]  ;;  %v2338_v34 = vld [vmem:[%s6698_s2 + $0x70] sm:$0xff]  ;;  %v2341_v35 = vld [vmem:[%s6698_s2 + $0x88] sm:$0xff] }
   0xa   :  { %4362 = vmatmul.mubr.msk.f32.vlgmr.msra.gmra.mrb[2].mxu0 %vm46_vm1, %v4359_v6  ;;  %4365 = vmatmul.mubr.msk.f32.vlgmr.msra.gmra.mrb[2].mxu1 %vm46_vm1, %v4359_v6  ;;  %v2345_v36 = vld [vmem:[%s6698_s2 + $0xa8] sm:$0xff]  ;;  %v2343_v37 = vld [vmem:[%s6698_s2 + $0x98] sm:$0xff]  ;;  %v5318_v39 = vpack.c.bf16 %v2336_v30, %v2332_v29  ;;  %v5320_v40 = vpack.c.bf16 %v2338_v34, %v2334_v33  ;;  %v2340_v41 = vld [vmem:[%s6698_s2 + $0x80] sm:$0xff] }
   0xb   :  { %4367 = vmatprep.subr.msk.mxu0 %vm50_vm0, %v5118_v3  ;;  %4370 = vmatprep.subr.msk.mxu1 %vm50_vm0, %v5122_v4  ;;  %v2347_v38 = vld [vmem:[%s6698_s2 + $0xb8] sm:$0xff]  ;;  %v2344_v42 = vld [vmem:[%s6698_s2 + $0xa0] sm:$0xff]  ;;  %v5330_v43 = vpack.c.bf16 %v2345_v36, %v2341_v35  ;;  %v2342_v45 = vld [vmem:[%s6698_s2 + $0x90] sm:$0xff] }
   0xc   :  { %4368 = vmatpush1.msk.msra.mxu0 %vm50_vm0, %v5107_v0  ;;  %700 = vmatprep.mubr.f32.mxu0 %v5077_v2  ;;  %v5332_v44 = vpack.c.bf16 %v2347_v38, %v2343_v37  ;;  %v2346_v46 = vld [vmem:[%s6698_s2 + $0xb0] sm:$0xff]  ;;  %v2349_v47 = vld [vmem:[%s6698_s2 + $0xc8] sm:$0xff]  ;;  %v2351_v49 = vld [vmem:[%s6698_s2 + $0xd8] sm:$0xff]  ;;  %v5356_v51 = vpack.c.bf16 %v2344_v42, %v2340_v41 }
   0xd   :  { %4371 = vmatpush1.msk.msra.mxu1 %vm50_vm0, %v5112_v1  ;;  %771 = vmatprep.mubr.f32.mxu1 %v5077_v2  ;;  %v2353_v48 = vld [vmem:[%s6698_s2 + $0xe8] sm:$0xff]  ;;  %v2355_v50 = vld [vmem:[%s6698_s2 + $0xf8] sm:$0xff]  ;;  %v5358_v52 = vpack.c.bf16 %v2346_v46, %v2342_v45  ;;  %v2348_v53 = vld [vmem:[%s6698_s2 + $0xc0] sm:$0xff] }
   0xe   :  { %4369 = vmatmul.mubr.msk.f32.vlgmr.msra.gmra.mrb[4].mxu0 %vm46_vm1, %v4366_v7  ;;  %4372 = vmatmul.mubr.msk.f32.vlgmr.msra.gmra.mrb[4].mxu1 %vm46_vm1, %v4366_v7  ;;  %v2352_v54 = vld [vmem:[%s6698_s2 + $0xe0] sm:$0xff]  ;;  %v5368_v55 = vpack.c.bf16 %v2353_v48, %v2349_v47  ;;  %v5370_v56 = vpack.c.bf16 %v2355_v50, %v2351_v49  ;;  %v2350_v57 = vld [vmem:[%s6698_s2 + $0xd0] sm:$0xff]  ;;  %v2357_v59 = vld [vmem:[%s6698_s2 + $0x108] sm:$0xff] }
   0xf   :  { %4374 = vmatprep.subr.msk.mxu0 %vm50_vm0, %v5118_v3  ;;  %4377 = vmatprep.subr.msk.mxu1 %vm50_vm0, %v5122_v4  ;;  %v2354_v58 = vld [vmem:[%s6698_s2 + $0xf0] sm:$0xff]  ;;  %v2361_v60 = vld [vmem:[%s6698_s2 + $0x128] sm:$0xff]  ;;  %v2359_v61 = vld [vmem:[%s6698_s2 + $0x118] sm:$0xff]  ;;  %v5392_v63 = vpack.c.bf16 %v2352_v54, %v2348_v53 }
  0x10   :  { %4375 = vmatpush1.msk.msra.mxu0 %vm50_vm0, %v5107_v0  ;;  %987 = vmatprep.mubr.f32.mxu0 %v5077_v2  ;;  %v2363_v62 = vld [vmem:[%s6698_s2 + $0x138] sm:$0xff]  ;;  %v2358_v6 = vld [vmem:[%s6698_s2 + $0x110] sm:$0xff]  ;;  %v2364_v14 = vld [vmem:[%s6698_s2 + $0x140] sm:$0xff] }
  0x11   :  { %4378 = vmatpush1.msk.msra.mxu1 %vm50_vm0, %v5112_v1  ;;  %1058 = vmatprep.mubr.f32.mxu1 %v5077_v2  ;;  %v5406_v5 = vpack.c.bf16 %v2363_v62, %v2359_v61  ;;  %v2362_v7 = vld [vmem:[%s6698_s2 + $0x130] sm:$0xff]  ;;  %v2368_v15 = vld [vmem:[%s6698_s2 + $0x160] sm:$0xff]  ;;  %v2373_v20 = vld [vmem:[%s6698_s2 + $0x188] sm:$0xff] }
  0x12   :  { %4376 = vmatmul.mubr.msk.f32.vlgmr.msra.gmra.mrb[6].mxu0 %vm46_vm1, %v4373_v8  ;;  %4379 = vmatmul.mubr.msk.f32.vlgmr.msra.gmra.mrb[6].mxu1 %vm46_vm1, %v4373_v8  ;;  %v2365_v8 = vld [vmem:[%s6698_s2 + $0x148] sm:$0xff]  ;;  %v5430_v13 = vpack.c.bf16 %v2362_v7, %v2358_v6  ;;  %v2366_v18 = vld [vmem:[%s6698_s2 + $0x150] sm:$0xff]  ;;  %v2375_v24 = vld [vmem:[%s6698_s2 + $0x198] sm:$0xff] }
  0x13   :  { %4381 = vmatprep.subr.msk.mxu0 %vm50_vm0, %v5118_v3  ;;  %4384 = vmatprep.subr.msk.mxu1 %vm50_vm0, %v5122_v4  ;;  %v2370_v19 = vld [vmem:[%s6698_s2 + $0x170] sm:$0xff]  ;;  %v2377_v23 = vld [vmem:[%s6698_s2 + $0x1a8] sm:$0xff]  ;;  %v2379_v25 = vld [vmem:[%s6698_s2 + $0x1b8] sm:$0xff] }
  0x14   :  { %4382 = vmatpush1.msk.msra.mxu0 %vm50_vm0, %v5107_v0  ;;  %1274 = vmatprep.mubr.f32.mxu0 %v5077_v2  ;;  %v4487_v29 = vpack.c.bf16 %v2370_v19, %v2366_v18  ;;  %v2372_v30 = vld [vmem:[%s6698_s2 + $0x180] sm:$0xff]  ;;  %v4457_v34 = vpack.c.bf16 %v2377_v23, %v2373_v20  ;;  %v4489_v35 = vpack.c.bf16 %v2379_v25, %v2375_v24  ;;  %v2374_v36 = vld [vmem:[%s6698_s2 + $0x190] sm:$0xff]  ;;  %v2381_v38 = vld [vmem:[%s6698_s2 + $0x1c8] sm:$0xff] }
  0x15   :  { %4385 = vmatpush1.msk.msra.mxu1 %vm50_vm0, %v5112_v1  ;;  %1345 = vmatprep.mubr.f32.mxu1 %v5077_v2  ;;  %v2376_v33 = vld [vmem:[%s6698_s2 + $0x1a0] sm:$0xff]  ;;  %v2378_v37 = vld [vmem:[%s6698_s2 + $0x1b0] sm:$0xff]  ;;  %v2385_v41 = vld [vmem:[%s6698_s2 + $0x1e8] sm:$0xff] }
  0x16   :  { %4383 = vmatmul.mubr.msk.f32.vlgmr.msra.gmra.mrb[8].mxu0 %vm46_vm1, %v4380_v9  ;;  %4386 = vmatmul.mubr.msk.f32.vlgmr.msra.gmra.mrb[8].mxu1 %vm46_vm1, %v4380_v9  ;;  %v2369_v9 = vld [vmem:[%s6698_s2 + $0x168] sm:$0xff]  ;;  %v2383_v42 = vld [vmem:[%s6698_s2 + $0x1d8] sm:$0xff]  ;;  %v4459_v46 = vpack.c.bf16 %v2376_v33, %v2372_v30  ;;  %v4491_v47 = vpack.c.bf16 %v2378_v37, %v2374_v36  ;;  %v2380_v48 = vld [vmem:[%s6698_s2 + $0x1c0] sm:$0xff]  ;;  %v4461_v49 = vpack.c.bf16 %v2385_v41, %v2381_v38 }
  0x17   :  { %4388 = vmatprep.subr.msk.mxu0 %vm50_vm0, %v5118_v3  ;;  %4391 = vmatprep.subr.msk.mxu1 %vm50_vm0, %v5122_v4  ;;  %v5440_v16 = vpack.c.bf16 %v2369_v9, %v2365_v8  ;;  %v2387_v45 = vld [vmem:[%s6698_s2 + $0x1f8] sm:$0xff]  ;;  %v2384_v53 = vld [vmem:[%s6698_s2 + $0x1e0] sm:$0xff]  ;;  %v2382_v54 = vld [vmem:[%s6698_s2 + $0x1d0] sm:$0xff] }
  0x18   :  { %4389 = vmatpush1.msk.msra.mxu0 %vm50_vm0, %v5107_v0  ;;  %1561 = vmatprep.mubr.f32.mxu0 %v5077_v2  ;;  %v4493_v50 = vpack.c.bf16 %v2387_v45, %v2383_v42  ;;  %v5605_v23 = vld [vmem:[%s6699_s3] sm:$0xf] }
  0x19   :  { %4392 = vmatpush1.msk.msra.mxu1 %vm50_vm0, %v5112_v1  ;;  %1632 = vmatprep.mubr.f32.mxu1 %v5077_v2  ;;  %v5622_v41 = vld [vmem:[%s6699_s3] sm:$0xf] }
  0x1a   :  { %4390 = vmatmul.mubr.msk.f32.vlgmr.msra.gmra.mrb[10].mxu0 %vm46_vm1, %v4387_v10  ;;  %4393 = vmatmul.mubr.msk.f32.vlgmr.msra.gmra.mrb[10].mxu1 %vm46_vm1, %v4387_v10  ;;  %v2367_v10 = vld [vmem:[%s6698_s2 + $0x158] sm:$0xff] }
  0x1b   :  { %4395 = vmatprep.subr.msk.mxu0 %vm50_vm0, %v5118_v3  ;;  %4398 = vmatprep.subr.msk.mxu1 %vm50_vm0, %v5122_v4 }
  0x1c   :  { %4396 = vmatpush1.msk.msra.mxu0 %vm50_vm0, %v5107_v0  ;;  %1848 = vmatprep.mubr.f32.mxu0 %v5077_v2 }
  0x1d   :  { %4399 = vmatpush1.msk.msra.mxu1 %vm50_vm0, %v5112_v1  ;;  %1919 = vmatprep.mubr.f32.mxu1 %v5077_v2 }
  0x1e   :  { %4397 = vmatmul.mubr.msk.f32.vlgmr.msra.gmra.mrb[12].mxu0 %vm46_vm1, %v4394_v11  ;;  %4400 = vmatmul.mubr.msk.f32.vlgmr.msra.gmra.mrb[12].mxu1 %vm46_vm1, %v4394_v11  ;;  %v2371_v11 = vld [vmem:[%s6698_s2 + $0x178] sm:$0xff] }
  0x1f   :  { %4402 = vmatprep.subr.msk.mxu0 %vm50_vm0, %v5118_v3  ;;  %4405 = vmatprep.subr.msk.mxu1 %vm50_vm0, %v5122_v4  ;;  %v2360_v3 = vld [vmem:[%s6698_s2 + $0x120] sm:$0xff]  ;;  %v5404_v4 = vpack.c.bf16 %v2361_v60, %v2357_v59  ;;  %v5442_v17 = vpack.c.bf16 %v2371_v11, %v2367_v10 }
  0x20   :  { %4403 = vmatpush1.msk.msra.mxu0 %vm50_vm0, %v5107_v0  ;;  %4406 = vmatpush1.msk.msra.mxu1 %vm50_vm0, %v5112_v1  ;;  %v5394_v0 = vpack.c.bf16 %v2354_v58, %v2350_v57  ;;  %v2356_v1 = vld [vmem:[%s6698_s2 + $0x100] sm:$0xff]  ;;  %v2386_v57 = vld [vmem:[%s6698_s2 + $0x1f0] sm:$0xff]  ;;  %v4463_v58 = vpack.c.bf16 %v2384_v53, %v2380_v48 }
  0x21   :  { %2135 = vmatprep.mubr.f32.mxu0 %v5077_v2  ;;  %2206 = vmatprep.mubr.f32.mxu1 %v5077_v2  ;;  %v5428_v12 = vpack.c.bf16 %v2360_v3, %v2356_v1  ;;  %v4495_v59 = vpack.c.bf16 %v2386_v57, %v2382_v54  ;;  %v5584_v10 = vld [vmem:[%s6699_s3] sm:$0xf] }
  0x22   :  { %4434 = vmatprep.subr.bf16.mxu0 %v5254_v21  ;;  %4466 = vmatprep.subr.bf16.mxu1 %v5256_v22 }
  0x23   :  { %4404 = vmatmul.mubr.msk.f32.vlgmr.msra.gmra.mrb[14].mxu0 %vm46_vm1, %v4401_v26  ;;  %4407 = vmatmul.mubr.msk.f32.vlgmr.msra.gmra.mrb[14].mxu1 %vm46_vm1, %v4401_v26  ;;  %v4455_v26 = vpack.c.bf16 %v2368_v15, %v2364_v14 }
  0x24   :  { %4436 = vmatpush1.bf16.msra.mxu0 %v5278_v27  ;;  %4468 = vmatpush1.bf16.msra.mxu1 %v5280_v28 }
  0x25   :  { %4438 = vmatprep.subr.bf16.mxu0 %v5290_v31  ;;  %4470 = vmatprep.subr.bf16.mxu1 %v5292_v32 }
  0x26   :  { %2452 = vmatprep.mubr.f32.mxu0 %v5077_v2  ;;  %2523 = vmatprep.mubr.f32.mxu1 %v5077_v2 }
  0x28   :  { %4440 = vmatpush1.bf16.msra.mxu0 %v5318_v39  ;;  %4472 = vmatpush1.bf16.msra.mxu1 %v5320_v40 }
  0x29   :  { %4442 = vmatprep.subr.bf16.mxu0 %v5330_v43  ;;  %4474 = vmatprep.subr.bf16.mxu1 %v5332_v44 }
  0x2c   :  { %4444 = vmatpush1.bf16.msra.mxu0 %v5356_v51  ;;  %4476 = vmatpush1.bf16.msra.mxu1 %v5358_v52 }
  0x2d   :  { %4446 = vmatprep.subr.bf16.mxu0 %v5368_v55  ;;  %4478 = vmatprep.subr.bf16.mxu1 %v5370_v56 }
  0x30   :  { %4448 = vmatpush1.bf16.msra.mxu0 %v5392_v63  ;;  %4480 = vmatpush1.bf16.msra.mxu1 %v5394_v0 }
  0x31   :  { %4450 = vmatprep.subr.bf16.mxu0 %v5404_v4  ;;  %4482 = vmatprep.subr.bf16.mxu1 %v5406_v5 }
  0x34   :  { %4452 = vmatpush1.bf16.msra.mxu0 %v5428_v12  ;;  %4484 = vmatpush1.bf16.msra.mxu1 %v5430_v13 }
  0x35   :  { %4454 = vmatprep.subr.bf16.mxu0 %v5440_v16  ;;  %4486 = vmatprep.subr.bf16.mxu1 %v5442_v17 }
  0x38   :  { %4456 = vmatpush1.bf16.msra.mxu0 %v4455_v26  ;;  %4488 = vmatpush1.bf16.msra.mxu1 %v4487_v29 }
  0x39   :  { %4458 = vmatprep.subr.bf16.mxu0 %v4457_v34  ;;  %4490 = vmatprep.subr.bf16.mxu1 %v4489_v35 }
  0x3c   :  { %4460 = vmatpush1.bf16.msra.mxu0 %v4459_v46  ;;  %4492 = vmatpush1.bf16.msra.mxu1 %v4491_v47 }
  0x3d   :  { %4462 = vmatprep.subr.bf16.mxu0 %v4461_v49  ;;  %4494 = vmatprep.subr.bf16.mxu1 %v4493_v50 }
  0x40   :  { %4464 = vmatpush1.bf16.msra.mxu0 %v4463_v58  ;;  %4496 = vmatpush1.bf16.msra.mxu1 %v4495_v59 }
  0x41   :  { %4498 = vmatprep.subr.bf16.mxu0 %v5254_v21  ;;  %4530 = vmatprep.subr.bf16.mxu1 %v5256_v22  ;;  %v22_v21 = vlaneseq }
  0x43   :  { %2453 = vmatmul.mubr.f32.vlgmr.msra.gmra.mrb[16].mxu0 %v5077_v2  ;;  %2524 = vmatmul.mubr.f32.vlgmr.msra.gmra.mrb[16].mxu1 %v5077_v2  ;;  %v23_v22 = vshrl.u32 %v22_v21, 7  ;;  %vm5607_vm2 = vcmp.lt.s32.totalorder %v22_v21, 512 }
  0x44   :  { %4500 = vmatpush1.bf16.msra.mxu0 %v5278_v27  ;;  %4532 = vmatpush1.bf16.msra.mxu1 %v5280_v28  ;;  %v5078_v27 = vmov 1966171168  }
  0x45   :  { %4502 = vmatprep.subr.bf16.mxu0 %v5290_v31  ;;  %4534 = vmatprep.subr.bf16.mxu1 %v5292_v32  ;;  %v210_v28 = vunpack.c.l.s4 %v5078_v27  ;;  %v5528_v31 = vsub.s32 0, %v23_v22  ;;  %v20_v32 = vld [vmem:[%s6699_s3] sm:$0xf] }
  0x46   :  { %2696 = vmatprep.mubr.f32.mxu0 %v5077_v2  ;;  %2767 = vmatprep.mubr.f32.mxu1 %v5077_v2 }
  0x47   :  { %v1465_v33 = vrot.slane %v5584_v10, %v5528_v31  ;;  %v1752_v42 = vrot.slane %v5605_v23, %v5528_v31  ;;  %v2039_v27 = vrot.slane %v5622_v41, %v5528_v31 }
  0x48   :  { %4504 = vmatpush1.bf16.msra.mxu0 %v5318_v39  ;;  %4536 = vmatpush1.bf16.msra.mxu1 %v5320_v40  ;;  %v5533_v39 = vsub.s32 2, %v23_v22  ;;  %v5535_v40 = vsub.s32 1, %v23_v22 }
  0x49   :  { %4506 = vmatprep.subr.bf16.mxu0 %v5330_v43  ;;  %4538 = vmatprep.subr.bf16.mxu1 %v5332_v44  ;;  %v5537_v43 = vsub.s32 3, %v23_v22  ;;  %v211_v44 = vunpack.c.0.s8 %v210_v28 }
  0x4a   :  { %v29_v60 = vrot.slane %v20_v32, %v5535_v40  ;;  %v1469_v37 = vrot.slane %v5584_v10, %v5535_v40  ;;  %v1760_v45 = vrot.slane %v5605_v23, %v5533_v39  ;;  %v2047_v28 = vrot.slane %v5622_v41, %v5533_v39 }
  0x4b   :  { %v37_v61 = vrot.slane %v20_v32, %v5537_v43  ;;  %v1477_v38 = vrot.slane %v5584_v10, %v5537_v43 }
  0x4c   :  { %4508 = vmatpush1.bf16.msra.mxu0 %v5356_v51  ;;  %4540 = vmatpush1.bf16.msra.mxu1 %v5358_v52  ;;  %v5542_v51 = vld [vmem:[%s6699_s3] sm:$0xf]  ;;  %v25_v52 = vrot.slane %v20_v32, %v5528_v31 }
  0x4d   :  { %4510 = vmatprep.subr.bf16.mxu0 %v5368_v55  ;;  %4542 = vmatprep.subr.bf16.mxu1 %v5370_v56  ;;  %v5548_v55 = vld [vmem:[%s6699_s3] sm:$0xf]  ;;  %v33_v56 = vrot.slane %v20_v32, %v5533_v39  ;;  %v317_v62 = vrot.slane %v5542_v51, %v5528_v31  ;;  %v325_v1 = vrot.slane %v5542_v51, %v5533_v39 }
  0x4e   :  { %v321_v3 = vrot.slane %v5542_v51, %v5535_v40  ;;  %v604_v6 = vrot.slane %v5548_v55, %v5528_v31  ;;  %v612_v7 = vrot.slane %v5548_v55, %v5533_v39  ;;  %v608_v8 = vrot.slane %v5548_v55, %v5535_v40 }
  0x4f   :  { %v616_v9 = vrot.slane %v5548_v55, %v5537_v43 }
  0x50   :  { %4512 = vmatpush1.bf16.msra.mxu0 %v5392_v63  ;;  %4544 = vmatpush1.bf16.msra.mxu1 %v5394_v0  ;;  %v5558_v63 = vld [vmem:[%s6699_s3] sm:$0xf]  ;;  %v5560_v0 = vsub.s32 %v211_v44, %v23_v22 }
  0x51   :  { %4514 = vmatprep.subr.bf16.mxu0 %v5404_v4  ;;  %4546 = vmatprep.subr.bf16.mxu1 %v5406_v5  ;;  %v329_v4 = vrot.slane %v5542_v51, %v5537_v43  ;;  %v5571_v5 = vld [vmem:[%s6699_s3] sm:$0xf]  ;;  %v891_v11 = vrot.slane %v5558_v63, %v5528_v31  ;;  %v903_v14 = vrot.slane %v5558_v63, %v5537_v43 }
  0x52   :  { %v1186_v18 = vrot.slane %v5571_v5, %v5533_v39  ;;  %v1182_v19 = vrot.slane %v5571_v5, %v5535_v40  ;;  %v1190_v20 = vrot.slane %v5571_v5, %v5537_v43 }
  0x54   :  { %4516 = vmatpush1.bf16.msra.mxu0 %v5428_v12  ;;  %4548 = vmatpush1.bf16.msra.mxu1 %v5430_v13  ;;  %v899_v12 = vrot.slane %v5558_v63, %v5533_v39  ;;  %v895_v13 = vrot.slane %v5558_v63, %v5535_v40 }
  0x55   :  { %4518 = vmatprep.subr.bf16.mxu0 %v5440_v16  ;;  %4550 = vmatprep.subr.bf16.mxu1 %v5442_v17  ;;  %v1178_v17 = vrot.slane %v5571_v5, %v5528_v31 }
  0x58   :  { %4520 = vmatpush1.bf16.msra.mxu0 %v4455_v26  ;;  %4552 = vmatpush1.bf16.msra.mxu1 %v4487_v29 }
  0x59   :  { %4522 = vmatprep.subr.bf16.mxu0 %v4457_v34  ;;  %4554 = vmatprep.subr.bf16.mxu1 %v4489_v35  ;;  %v1473_v34 = vrot.slane %v5584_v10, %v5533_v39 }
  0x5c   :  { %4524 = vmatpush1.bf16.msra.mxu0 %v4459_v46  ;;  %4556 = vmatpush1.bf16.msra.mxu1 %v4491_v47  ;;  %v1756_v46 = vrot.slane %v5605_v23, %v5535_v40  ;;  %v1764_v47 = vrot.slane %v5605_v23, %v5537_v43 }
  0x5d   :  { %4526 = vmatprep.subr.bf16.mxu0 %v4461_v49  ;;  %4558 = vmatprep.subr.bf16.mxu1 %v4493_v50 }
  0x60   :  { %4528 = vmatpush1.bf16.msra.mxu0 %v4463_v58  ;;  %4560 = vmatpush1.bf16.msra.mxu1 %v4495_v59 }
  0xd9   :  { %v125_v15 = vpop.f32.mrb[0].mxu0  ;;  %v196_v16 = vpop.f32.mrb[0].mxu1 }
  0xda   :  { %v126_v24 = vadd.f32 %v125_v15, %v25_v52  ;;  %v197_v25 = vadd.f32 %v196_v16, %v33_v56  ;;  %v127_v26 = vpop.f32.mrb[1].mxu0  ;;  %v198_v29 = vpop.f32.mrb[1].mxu1 }
  0xdb   :  { %v128_v35 = vadd.f32 %v127_v26, %v29_v60  ;;  %v199_v36 = vadd.f32 %v198_v29, %v37_v61  ;;  %v2043_v61 = vrot.slane %v5622_v41, %v5535_v40 }
  0xdd   :  { %v205_v48 = vcombine.low %v126_v24, %v128_v35  ;;  %v206_v49 = vcombine.high %v126_v24, %v128_v35  ;;  %v207_v50 = vcombine.low %v197_v25, %v199_v36  ;;  %v208_v53 = vcombine.high %v197_v25, %v199_v36  ;;  %v415_v54 = vpop.f32.mrb[2].mxu0  ;;  %v486_v57 = vpop.f32.mrb[2].mxu1 }
  0xde   :  { %v416_v58 = vadd.f32 %v415_v54, %v317_v62  ;;  %v487_v59 = vadd.f32 %v486_v57, %v325_v1  ;;  %v417_v21 = vpop.f32.mrb[3].mxu0  ;;  %v488_v22 = vpop.f32.mrb[3].mxu1  ;;  %v2051_v62 = vrot.slane %v5622_v41, %v5537_v43 }
  0xdf   :  { %v215_v32 = vrot.slane %v205_v48, %v5560_v0  ;;  %v222_v44 = vrot.slane %v206_v49, %v5560_v0  ;;  %v229_v51 = vrot.slane %v207_v50, %v5560_v0  ;;  %v236_v52 = vrot.slane %v208_v53, %v5560_v0 }
  0xe0   :  { %v418_v56 = vadd.f32 %v417_v21, %v321_v3  ;;  %v489_v60 = vadd.f32 %v488_v22, %v329_v4 }
  0xe1   :  { %v237_v1 = vcombine.low %v215_v32, %v229_v51  ;;  %v238_v15 = vcombine.high %v215_v32, %v229_v51  ;;  %v239_v16 = vcombine.low %v222_v44, %v236_v52  ;;  %v240_v24 = vcombine.high %v222_v44, %v236_v52  ;;  %v702_v25 = vpop.f32.mrb[4].mxu0  ;;  %v773_v26 = vpop.f32.mrb[4].mxu1 }
  0xe2   :  { %v495_v29 = vcombine.low %v416_v58, %v418_v56  ;;  %v496_v35 = vcombine.high %v416_v58, %v418_v56  ;;  %v497_v36 = vcombine.low %v487_v59, %v489_v60  ;;  %v498_v48 = vcombine.high %v487_v59, %v489_v60  ;;  %v704_v49 = vpop.f32.mrb[5].mxu0  ;;  %v775_v50 = vpop.f32.mrb[5].mxu1 }
  0xe3   :  { %v247_v3 = vrot.slane %v237_v1, %v5560_v0  ;;  %v254_v4 = vrot.slane %v239_v16, %v5560_v0  ;;  %v261_v53 = vrot.slane %v238_v15, %v5560_v0  ;;  %v268_v54 = vrot.slane %v240_v24, %v5560_v0 }
  0xe4   :  { %v505_v57 = vrot.slane %v495_v29, %v5560_v0  ;;  %v512_v21 = vrot.slane %v496_v35, %v5560_v0  ;;  %v519_v22 = vrot.slane %v497_v36, %v5560_v0  ;;  %v526_v58 = vrot.slane %v498_v48, %v5560_v0 }
  0xe5   :  { %v269_v32 = vcombine.high %v247_v3, %v247_v3  ;;  %v270_v59 = vcombine.high %v254_v4, %v254_v4  ;;  %v271_v44 = vcombine.high %v261_v53, %v261_v53  ;;  %v272_v51 = vcombine.high %v268_v54, %v268_v54  ;;  %285 = vst.msk [vmem:[#allocation2] ss:$8 sm:$0xf] %vm5607_vm2, %v247_v3  ;;  %v989_v52 = vpop.f32.mrb[6].mxu0  ;;  %v1060_v56 = vpop.f32.mrb[6].mxu1 }
  0xe6   :  { %288 = vst.msk [vmem:[#allocation2 + $0x20] ss:$8 sm:$0xf] %vm5607_vm2, %v261_v53  ;;  %297 = vst.msk [vmem:[#allocation2 + $0x80] ss:$8 sm:$0xf] %vm5607_vm2, %v254_v4  ;;  %v527_v60 = vcombine.low %v505_v57, %v519_v22  ;;  %v528_v1 = vcombine.high %v505_v57, %v519_v22  ;;  %v529_v15 = vcombine.low %v512_v21, %v526_v58 }
  0xe7   :  { %300 = vst.msk [vmem:[#allocation2 + $0xa0] ss:$8 sm:$0xf] %vm5607_vm2, %v268_v54  ;;  %v530_v16 = vcombine.high %v512_v21, %v526_v58  ;;  %v991_v24 = vpop.f32.mrb[7].mxu0  ;;  %v1062_v29 = vpop.f32.mrb[7].mxu1  ;;  %v703_v35 = vadd.f32 %v702_v25, %v604_v6  ;;  %v774_v36 = vadd.f32 %v773_v26, %v612_v7  ;;  %v705_v48 = vadd.f32 %v704_v49, %v608_v8 }
  0xe8   :  { %291 = vst.msk [vmem:[#allocation2 + $0x40] ss:$8 sm:$0xf] %vm5607_vm2, %v269_v32  ;;  %294 = vst.msk [vmem:[#allocation2 + $0x60] ss:$8 sm:$0xf] %vm5607_vm2, %v271_v44  ;;  %v776_v3 = vadd.f32 %v775_v50, %v616_v9  ;;  %v537_v4 = vrot.slane %v527_v60, %v5560_v0  ;;  %v544_v53 = vrot.slane %v529_v15, %v5560_v0 }
  0xe9   :  { %303 = vst.msk [vmem:[#allocation2 + $0xc0] ss:$8 sm:$0xf] %vm5607_vm2, %v270_v59  ;;  %306 = vst.msk [vmem:[#allocation2 + $0xe0] ss:$8 sm:$0xf] %vm5607_vm2, %v272_v51  ;;  %v551_v54 = vrot.slane %v528_v1, %v5560_v0  ;;  %v558_v6 = vrot.slane %v530_v16, %v5560_v0  ;;  %v782_v25 = vcombine.low %v703_v35, %v705_v48 }
  0xea   :  { %v783_v57 = vcombine.high %v703_v35, %v705_v48  ;;  %v784_v21 = vcombine.low %v774_v36, %v776_v3  ;;  %v785_v7 = vcombine.high %v774_v36, %v776_v3  ;;  %v5684_v26 = vpop.f32.mrb[8].mxu0  ;;  %v5686_v22 = vpop.f32.mrb[8].mxu1  ;;  %v559_v8 = vcombine.high %v537_v4, %v537_v4  ;;  %572 = vst.msk [vmem:[#allocation2 + $0x1] ss:$8 sm:$0xf] %vm5607_vm2, %v537_v4 }
  0xeb   :  { %v560_v49 = vcombine.high %v544_v53, %v544_v53  ;;  %v561_v55 = vcombine.high %v551_v54, %v551_v54  ;;  %v562_v9 = vcombine.high %v558_v6, %v558_v6  ;;  %575 = vst.msk [vmem:[#allocation2 + $0x21] ss:$8 sm:$0xf] %vm5607_vm2, %v551_v54  ;;  %584 = vst.msk [vmem:[#allocation2 + $0x81] ss:$8 sm:$0xf] %vm5607_vm2, %v544_v53 }
  0xec   :  { %587 = vst.msk [vmem:[#allocation2 + $0xa1] ss:$8 sm:$0xf] %vm5607_vm2, %v558_v6  ;;  %v1278_v50 = vpop.f32.mrb[9].mxu0  ;;  %v1349_v58 = vpop.f32.mrb[9].mxu1  ;;  %v792_v32 = vrot.slane %v782_v25, %v5560_v0  ;;  %v799_v59 = vrot.slane %v783_v57, %v5560_v0  ;;  %v806_v44 = vrot.slane %v784_v21, %v5560_v0  ;;  %v813_v51 = vrot.slane %v785_v7, %v5560_v0 }
  0xed   :  { %578 = vst.msk [vmem:[#allocation2 + $0x41] ss:$8 sm:$0xf] %vm5607_vm2, %v559_v8  ;;  %581 = vst.msk [vmem:[#allocation2 + $0x61] ss:$8 sm:$0xf] %vm5607_vm2, %v561_v55  ;;  %v990_v60 = vadd.f32 %v989_v52, %v891_v11  ;;  %v1061_v1 = vadd.f32 %v1060_v56, %v899_v12  ;;  %v992_v15 = vadd.f32 %v991_v24, %v895_v13 }
  0xee   :  { %590 = vst.msk [vmem:[#allocation2 + $0xc1] ss:$8 sm:$0xf] %vm5607_vm2, %v560_v49  ;;  %593 = vst.msk [vmem:[#allocation2 + $0xe1] ss:$8 sm:$0xf] %vm5607_vm2, %v562_v9  ;;  %v1063_v16 = vadd.f32 %v1062_v29, %v903_v14  ;;  %v814_v35 = vcombine.low %v792_v32, %v806_v44  ;;  %v815_v36 = vcombine.high %v792_v32, %v806_v44 }
  0xef   :  { %v816_v48 = vcombine.low %v799_v59, %v813_v51  ;;  %v817_v3 = vcombine.high %v799_v59, %v813_v51  ;;  %v5720_v4 = vpop.f32.mrb[10].mxu0  ;;  %v5722_v53 = vpop.f32.mrb[10].mxu1  ;;  %v1069_v11 = vcombine.low %v990_v60, %v992_v15  ;;  %v1070_v52 = vcombine.high %v990_v60, %v992_v15 }
  0xf0   :  { %v1071_v54 = vcombine.low %v1061_v1, %v1063_v16  ;;  %v1072_v12 = vcombine.high %v1061_v1, %v1063_v16  ;;  %v5724_v56 = vpop.f32.mrb[11].mxu0  ;;  %v5726_v6 = vpop.f32.mrb[11].mxu1  ;;  %v824_v13 = vrot.slane %v814_v35, %v5560_v0  ;;  %v838_v14 = vrot.slane %v815_v36, %v5560_v0 }
  0xf1   :  { %v831_v63 = vrot.slane %v816_v48, %v5560_v0  ;;  %v845_v24 = vrot.slane %v817_v3, %v5560_v0  ;;  %v1079_v29 = vrot.slane %v1069_v11, %v5560_v0  ;;  %v1086_v25 = vrot.slane %v1070_v52, %v5560_v0  ;;  %v5744_v9 = vpop.f32.mrb[12].mxu0  ;;  %v5746_v32 = vpop.f32.mrb[12].mxu1 }
  0xf2   :  { %v1093_v57 = vrot.slane %v1071_v54, %v5560_v0  ;;  %v1100_v21 = vrot.slane %v1072_v12, %v5560_v0  ;;  %v846_v7 = vcombine.high %v824_v13, %v824_v13  ;;  %v848_v49 = vcombine.high %v838_v14, %v838_v14  ;;  %859 = vst.msk [vmem:[#allocation2 + $0x2] ss:$8 sm:$0xf] %vm5607_vm2, %v824_v13  ;;  %v5748_v1 = vpop.f32.mrb[13].mxu0  ;;  %v5750_v15 = vpop.f32.mrb[13].mxu1 }
  0xf3   :  { %v847_v8 = vcombine.high %v831_v63, %v831_v63  ;;  %v849_v55 = vcombine.high %v845_v24, %v845_v24  ;;  %862 = vst.msk [vmem:[#allocation2 + $0x22] ss:$8 sm:$0xf] %vm5607_vm2, %v838_v14  ;;  %871 = vst.msk [vmem:[#allocation2 + $0x82] ss:$8 sm:$0xf] %vm5607_vm2, %v831_v63  ;;  %v1277_v16 = vadd.f32 %v5684_v26, %v1178_v17 }
  0xf4   :  { %874 = vst.msk [vmem:[#allocation2 + $0xa2] ss:$8 sm:$0xf] %vm5607_vm2, %v845_v24  ;;  %v1101_v59 = vcombine.low %v1079_v29, %v1093_v57  ;;  %v1102_v44 = vcombine.high %v1079_v29, %v1093_v57  ;;  %v1103_v51 = vcombine.low %v1086_v25, %v1100_v21  ;;  %v1104_v60 = vcombine.high %v1086_v25, %v1100_v21 }
  0xf5   :  { %865 = vst.msk [vmem:[#allocation2 + $0x42] ss:$8 sm:$0xf] %vm5607_vm2, %v846_v7  ;;  %868 = vst.msk [vmem:[#allocation2 + $0x62] ss:$8 sm:$0xf] %vm5607_vm2, %v848_v49  ;;  %v1348_v35 = vadd.f32 %v5686_v22, %v1186_v18  ;;  %v1279_v36 = vadd.f32 %v1278_v50, %v1182_v19  ;;  %v1350_v48 = vadd.f32 %v1349_v58, %v1190_v20 }
  0xf6   :  { %877 = vst.msk [vmem:[#allocation2 + $0xc2] ss:$8 sm:$0xf] %vm5607_vm2, %v847_v8  ;;  %880 = vst.msk [vmem:[#allocation2 + $0xe2] ss:$8 sm:$0xf] %vm5607_vm2, %v849_v55  ;;  %v1111_v3 = vrot.slane %v1101_v59, %v5560_v0  ;;  %v1118_v11 = vrot.slane %v1103_v51, %v5560_v0  ;;  %v1125_v52 = vrot.slane %v1102_v44, %v5560_v0 }
  0xf7   :  { %v1132_v17 = vrot.slane %v1104_v60, %v5560_v0  ;;  %v1356_v26 = vcombine.low %v1277_v16, %v1279_v36  ;;  %v1357_v54 = vcombine.high %v1277_v16, %v1279_v36  ;;  %v1358_v12 = vcombine.low %v1348_v35, %v1350_v48  ;;  %v5786_v5 = vpop.f32.mrb[14].mxu0  ;;  %v5788_v20 = vpop.f32.mrb[14].mxu1 }
  0xf8   :  { %v1359_v18 = vcombine.high %v1348_v35, %v1350_v48  ;;  %v1133_v22 = vcombine.high %v1111_v3, %v1111_v3  ;;  %v1134_v13 = vcombine.high %v1118_v11, %v1118_v11  ;;  %v1135_v63 = vcombine.high %v1125_v52, %v1125_v52  ;;  %1146 = vst.msk [vmem:[#allocation2 + $0x3] ss:$8 sm:$0xf] %vm5607_vm2, %v1111_v3  ;;  %v5794_v29 = vpop.f32.mrb[15].mxu0  ;;  %v5796_v25 = vpop.f32.mrb[15].mxu1 }
  0xf9   :  { %v1136_v19 = vcombine.high %v1132_v17, %v1132_v17  ;;  %1149 = vst.msk [vmem:[#allocation2 + $0x23] ss:$8 sm:$0xf] %vm5607_vm2, %v1125_v52  ;;  %1158 = vst.msk [vmem:[#allocation2 + $0x83] ss:$8 sm:$0xf] %vm5607_vm2, %v1118_v11  ;;  %v1366_v50 = vrot.slane %v1356_v26, %v5560_v0  ;;  %v1373_v58 = vrot.slane %v1357_v54, %v5560_v0 }
  0xfa   :  { %1161 = vst.msk [vmem:[#allocation2 + $0xa3] ss:$8 sm:$0xf] %vm5607_vm2, %v1132_v17  ;;  %v1380_v14 = vrot.slane %v1358_v12, %v5560_v0  ;;  %v1387_v24 = vrot.slane %v1359_v18, %v5560_v0  ;;  %1152 = vst.msk [vmem:[#allocation2 + $0x43] ss:$8 sm:$0xf] %vm5607_vm2, %v1133_v22  ;;  %v1564_v57 = vadd.f32 %v5720_v4, %v1465_v33 }
  0xfb   :  { %1155 = vst.msk [vmem:[#allocation2 + $0x63] ss:$8 sm:$0xf] %vm5607_vm2, %v1135_v63  ;;  %1164 = vst.msk [vmem:[#allocation2 + $0xc3] ss:$8 sm:$0xf] %vm5607_vm2, %v1134_v13  ;;  %v1635_v21 = vadd.f32 %v5722_v53, %v1473_v34  ;;  %v1566_v7 = vadd.f32 %v5724_v56, %v1469_v37  ;;  %v1637_v8 = vadd.f32 %v5726_v6, %v1477_v38 }
  0xfc   :  { %1167 = vst.msk [vmem:[#allocation2 + $0xe3] ss:$8 sm:$0xf] %vm5607_vm2, %v1136_v19  ;;  %v1388_v49 = vcombine.low %v1366_v50, %v1380_v14  ;;  %v1389_v55 = vcombine.high %v1366_v50, %v1380_v14  ;;  %v1390_v59 = vcombine.low %v1373_v58, %v1387_v24  ;;  %v1391_v44 = vcombine.high %v1373_v58, %v1387_v24 }
  0xfd   :  { %v1643_v33 = vcombine.low %v1564_v57, %v1566_v7  ;;  %v1644_v4 = vcombine.high %v1564_v57, %v1566_v7  ;;  %v1645_v51 = vcombine.low %v1635_v21, %v1637_v8  ;;  %v1646_v60 = vcombine.high %v1635_v21, %v1637_v8 }
  0xfe   :  { %v1398_v34 = vrot.slane %v1388_v49, %v5560_v0  ;;  %v1405_v53 = vrot.slane %v1390_v59, %v5560_v0  ;;  %v1412_v16 = vrot.slane %v1389_v55, %v5560_v0  ;;  %v1419_v37 = vrot.slane %v1391_v44, %v5560_v0 }
  0xff   :  { %v1653_v10 = vrot.slane %v1643_v33, %v5560_v0  ;;  %v1660_v38 = vrot.slane %v1644_v4, %v5560_v0  ;;  %v1667_v56 = vrot.slane %v1645_v51, %v5560_v0  ;;  %v1674_v6 = vrot.slane %v1646_v60, %v5560_v0 }
 0x100   :  { %v1420_v35 = vcombine.high %v1398_v34, %v1398_v34  ;;  %v1421_v36 = vcombine.high %v1405_v53, %v1405_v53  ;;  %v1422_v48 = vcombine.high %v1412_v16, %v1412_v16  ;;  %v1423_v3 = vcombine.high %v1419_v37, %v1419_v37  ;;  %1433 = vst.msk [vmem:[#allocation2 + $0x4] ss:$8 sm:$0xf] %vm5607_vm2, %v1398_v34 }
 0x101   :  { %1436 = vst.msk [vmem:[#allocation2 + $0x24] ss:$8 sm:$0xf] %vm5607_vm2, %v1412_v16  ;;  %1445 = vst.msk [vmem:[#allocation2 + $0x84] ss:$8 sm:$0xf] %vm5607_vm2, %v1405_v53  ;;  %v1675_v11 = vcombine.low %v1653_v10, %v1667_v56  ;;  %v1676_v52 = vcombine.high %v1653_v10, %v1667_v56  ;;  %v1677_v17 = vcombine.low %v1660_v38, %v1674_v6 }
 0x102   :  { %1448 = vst.msk [vmem:[#allocation2 + $0xa4] ss:$8 sm:$0xf] %vm5607_vm2, %v1419_v37  ;;  %v1678_v26 = vcombine.high %v1660_v38, %v1674_v6  ;;  %1439 = vst.msk [vmem:[#allocation2 + $0x44] ss:$8 sm:$0xf] %vm5607_vm2, %v1420_v35  ;;  %v1851_v54 = vadd.f32 %v5744_v9, %v1752_v42  ;;  %v1922_v12 = vadd.f32 %v5746_v32, %v1760_v45 }
 0x103   :  { %1442 = vst.msk [vmem:[#allocation2 + $0x64] ss:$8 sm:$0xf] %vm5607_vm2, %v1422_v48  ;;  %1451 = vst.msk [vmem:[#allocation2 + $0xc4] ss:$8 sm:$0xf] %vm5607_vm2, %v1421_v36  ;;  %v1853_v18 = vadd.f32 %v5748_v1, %v1756_v46  ;;  %v1924_v22 = vadd.f32 %v5750_v15, %v1764_v47  ;;  %v1685_v13 = vrot.slane %v1675_v11, %v5560_v0 }
 0x104   :  { %1454 = vst.msk [vmem:[#allocation2 + $0xe4] ss:$8 sm:$0xf] %vm5607_vm2, %v1423_v3  ;;  %v1692_v63 = vrot.slane %v1677_v17, %v5560_v0  ;;  %v1699_v42 = vrot.slane %v1676_v52, %v5560_v0  ;;  %v1706_v9 = vrot.slane %v1678_v26, %v5560_v0  ;;  %v2138_v57 = vadd.f32 %v5786_v5, %v2039_v27 }
 0x105   :  { %v1930_v19 = vcombine.low %v1851_v54, %v1853_v18  ;;  %v1931_v45 = vcombine.high %v1851_v54, %v1853_v18  ;;  %v1932_v32 = vcombine.low %v1922_v12, %v1924_v22  ;;  %v1933_v50 = vcombine.high %v1922_v12, %v1924_v22  ;;  %1720 = vst.msk [vmem:[#allocation2 + $0x5] ss:$8 sm:$0xf] %vm5607_vm2, %v1685_v13 }
 0x106   :  { %v1707_v58 = vcombine.high %v1685_v13, %v1685_v13  ;;  %v1708_v14 = vcombine.high %v1692_v63, %v1692_v63  ;;  %v1709_v46 = vcombine.high %v1699_v42, %v1699_v42  ;;  %v1710_v1 = vcombine.high %v1706_v9, %v1706_v9  ;;  %1723 = vst.msk [vmem:[#allocation2 + $0x25] ss:$8 sm:$0xf] %vm5607_vm2, %v1699_v42 }
 0x107   :  { %1732 = vst.msk [vmem:[#allocation2 + $0x85] ss:$8 sm:$0xf] %vm5607_vm2, %v1692_v63  ;;  %1735 = vst.msk [vmem:[#allocation2 + $0xa5] ss:$8 sm:$0xf] %vm5607_vm2, %v1706_v9  ;;  %v1940_v23 = vrot.slane %v1930_v19, %v5560_v0  ;;  %v1947_v47 = vrot.slane %v1931_v45, %v5560_v0  ;;  %v1954_v15 = vrot.slane %v1932_v32, %v5560_v0 }
 0x108   :  { %v1961_v24 = vrot.slane %v1933_v50, %v5560_v0  ;;  %1726 = vst.msk [vmem:[#allocation2 + $0x45] ss:$8 sm:$0xf] %vm5607_vm2, %v1707_v58  ;;  %1729 = vst.msk [vmem:[#allocation2 + $0x65] ss:$8 sm:$0xf] %vm5607_vm2, %v1709_v46  ;;  %v2209_v21 = vadd.f32 %v5788_v20, %v2047_v28  ;;  %v2140_v7 = vadd.f32 %v5794_v29, %v2043_v61 }
 0x109   :  { %1738 = vst.msk [vmem:[#allocation2 + $0xc5] ss:$8 sm:$0xf] %vm5607_vm2, %v1708_v14  ;;  %1741 = vst.msk [vmem:[#allocation2 + $0xe5] ss:$8 sm:$0xf] %vm5607_vm2, %v1710_v1  ;;  %v2211_v8 = vadd.f32 %v5796_v25, %v2051_v62  ;;  %v1962_v49 = vcombine.low %v1940_v23, %v1954_v15  ;;  %v1963_v55 = vcombine.high %v1940_v23, %v1954_v15 }
 0x10a   :  { %v1964_v31 = vcombine.low %v1947_v47, %v1961_v24  ;;  %v1965_v59 = vcombine.high %v1947_v47, %v1961_v24  ;;  %v2217_v27 = vcombine.low %v2138_v57, %v2140_v7  ;;  %v2218_v5 = vcombine.high %v2138_v57, %v2140_v7 }
 0x10b   :  { %v2219_v44 = vcombine.low %v2209_v21, %v2211_v8  ;;  %v2220_v39 = vcombine.high %v2209_v21, %v2211_v8  ;;  %v1972_v28 = vrot.slane %v1962_v49, %v5560_v0  ;;  %v1986_v40 = vrot.slane %v1963_v55, %v5560_v0  ;;  %v2814_v8 = vld [vmem:[%s6698_s2 + $0x8] sm:$0xff]  ;;  %v2816_v55 = vld [vmem:[%s6698_s2 + $0x18] sm:$0xff] }
 0x10c   :  { %v1979_v20 = vrot.slane %v1964_v31, %v5560_v0  ;;  %v1993_v61 = vrot.slane %v1965_v59, %v5560_v0  ;;  %v2227_v43 = vrot.slane %v2217_v27, %v5560_v0  ;;  %v2234_v41 = vrot.slane %v2218_v5, %v5560_v0  ;;  %v2818_v49 = vld [vmem:[%s6698_s2 + $0x28] sm:$0xff]  ;;  %v2820_v59 = vld [vmem:[%s6698_s2 + $0x38] sm:$0xff]  ;;  %v2813_v27 = vld [vmem:[%s6698_s2] sm:$0xff] }
 0x10d   :  { %v2241_v62 = vrot.slane %v2219_v44, %v5560_v0  ;;  %v2248_v29 = vrot.slane %v2220_v39, %v5560_v0  ;;  %v1994_v25 = vcombine.high %v1972_v28, %v1972_v28  ;;  %v1996_v4 = vcombine.high %v1986_v40, %v1986_v40  ;;  %2007 = vst.msk [vmem:[#allocation2 + $0x6] ss:$8 sm:$0xf] %vm5607_vm2, %v1972_v28  ;;  %v2817_v5 = vld [vmem:[%s6698_s2 + $0x20] sm:$0xff]  ;;  %v2815_v28 = vld [vmem:[%s6698_s2 + $0x10] sm:$0xff] }
 0x10e   :  { %v1995_v33 = vcombine.high %v1979_v20, %v1979_v20  ;;  %v1997_v51 = vcombine.high %v1993_v61, %v1993_v61  ;;  %2010 = vst.msk [vmem:[#allocation2 + $0x26] ss:$8 sm:$0xf] %vm5607_vm2, %v1986_v40  ;;  %2019 = vst.msk [vmem:[#allocation2 + $0x86] ss:$8 sm:$0xf] %vm5607_vm2, %v1979_v20  ;;  %v5960_v31 = vpack.c.bf16 %v2818_v49, %v2814_v8 }
 0x10f   :  { %2022 = vst.msk [vmem:[#allocation2 + $0xa6] ss:$8 sm:$0xf] %vm5607_vm2, %v1993_v61  ;;  %v2249_v60 = vcombine.low %v2227_v43, %v2241_v62  ;;  %v2250_v34 = vcombine.high %v2227_v43, %v2241_v62  ;;  %v2251_v53 = vcombine.low %v2234_v41, %v2248_v29  ;;  %v2252_v16 = vcombine.high %v2234_v41, %v2248_v29  ;;  %v2819_v20 = vld [vmem:[%s6698_s2 + $0x30] sm:$0xff]  ;;  %v2822_v61 = vld [vmem:[%s6698_s2 + $0x48] sm:$0xff]  ;;  %v2824_v41 = vld [vmem:[%s6698_s2 + $0x58] sm:$0xff] }
 0x110   :  { %2013 = vst.msk [vmem:[#allocation2 + $0x46] ss:$8 sm:$0xf] %vm5607_vm2, %v1994_v25  ;;  %2016 = vst.msk [vmem:[#allocation2 + $0x66] ss:$8 sm:$0xf] %vm5607_vm2, %v1996_v4  ;;  %v5971_v44 = vpack.c.bf16 %v2820_v59, %v2816_v55  ;;  %v5973_v39 = vpack.c.bf16 %v2817_v5, %v2813_v27  ;;  %4562 = vmatprep.subr.bf16.mxu0 %v5960_v31  ;;  %v5982_v40 = vpack.c.bf16 %v2819_v20, %v2815_v28 }
 0x111   :  { %2025 = vst.msk [vmem:[#allocation2 + $0xc6] ss:$8 sm:$0xf] %vm5607_vm2, %v1995_v33  ;;  %2028 = vst.msk [vmem:[#allocation2 + $0xe6] ss:$8 sm:$0xf] %vm5607_vm2, %v1997_v51  ;;  %v2259_v37 = vrot.slane %v2249_v60, %v5560_v0  ;;  %v2266_v10 = vrot.slane %v2251_v53, %v5560_v0  ;;  %v2273_v38 = vrot.slane %v2250_v34, %v5560_v0 }
 0x112   :  { %v2280_v56 = vrot.slane %v2252_v16, %v5560_v0  ;;  %4594 = vmatprep.subr.bf16.mxu1 %v5971_v44  ;;  %v2826_v43 = vld [vmem:[%s6698_s2 + $0x68] sm:$0xff]  ;;  %v2828_v29 = vld [vmem:[%s6698_s2 + $0x78] sm:$0xff]  ;;  %v2821_v25 = vld [vmem:[%s6698_s2 + $0x40] sm:$0xff] }
 0x113   :  { %v2281_v6 = vcombine.high %v2259_v37, %v2259_v37  ;;  %v2282_v35 = vcombine.high %v2266_v10, %v2266_v10  ;;  %v2283_v36 = vcombine.high %v2273_v38, %v2273_v38  ;;  %2294 = vst.msk [vmem:[#allocation2 + $0x7] ss:$8 sm:$0xf] %vm5607_vm2, %v2259_v37  ;;  %2297 = vst.msk [vmem:[#allocation2 + $0x27] ss:$8 sm:$0xf] %vm5607_vm2, %v2273_v38 }
 0x114   :  { %v2284_v48 = vcombine.high %v2280_v56, %v2280_v56  ;;  %2306 = vst.msk [vmem:[#allocation2 + $0x87] ss:$8 sm:$0xf] %vm5607_vm2, %v2266_v10  ;;  %2309 = vst.msk [vmem:[#allocation2 + $0xa7] ss:$8 sm:$0xf] %vm5607_vm2, %v2280_v56  ;;  %v5996_v62 = vpack.c.bf16 %v2826_v43, %v2822_v61  ;;  %v6007_v4 = vpack.c.bf16 %v2828_v29, %v2824_v41 }
 0x115   :  { %2300 = vst.msk [vmem:[#allocation2 + $0x47] ss:$8 sm:$0xf] %vm5607_vm2, %v2281_v6  ;;  %2303 = vst.msk [vmem:[#allocation2 + $0x67] ss:$8 sm:$0xf] %vm5607_vm2, %v2283_v36 }
 0x116   :  { %2312 = vst.msk [vmem:[#allocation2 + $0xc7] ss:$8 sm:$0xf] %vm5607_vm2, %v2282_v35  ;;  %2315 = vst.msk [vmem:[#allocation2 + $0xe7] ss:$8 sm:$0xf] %vm5607_vm2, %v2284_v48 }
 0x117   :  { %v2454_v3 = vpop.f32.mrb[16].mxu0  ;;  %v2525_v11 = vpop.f32.mrb[16].mxu1  ;;  %v2825_v33 = vld [vmem:[%s6698_s2 + $0x60] sm:$0xff]  ;;  %v2823_v60 = vld [vmem:[%s6698_s2 + $0x50] sm:$0xff]  ;;  %v2830_v16 = vld [vmem:[%s6698_s2 + $0x88] sm:$0xff] }
 0x118   :  { %v2456_v26 = vpop.f32.mrb[17].mxu0  ;;  %v2527_v54 = vpop.f32.mrb[17].mxu1  ;;  %v6009_v51 = vpack.c.bf16 %v2825_v33, %v2821_v25  ;;  %v2827_v34 = vld [vmem:[%s6698_s2 + $0x70] sm:$0xff]  ;;  %v2834_v37 = vld [vmem:[%s6698_s2 + $0xa8] sm:$0xff]  ;;  %v2832_v10 = vld [vmem:[%s6698_s2 + $0x98] sm:$0xff] }
 0x119   :  { %v6018_v53 = vpack.c.bf16 %v2827_v34, %v2823_v60  ;;  %v6031_v38 = vpack.c.bf16 %v2834_v37, %v2830_v16  ;;  %v2836_v56 = vld [vmem:[%s6698_s2 + $0xb8] sm:$0xff]  ;;  %v2829_v6 = vld [vmem:[%s6698_s2 + $0x80] sm:$0xff]  ;;  %v2855_v5 = vld [vmem:[%s6698_s2 + $0x150] sm:$0xff] }
 0x11a   :  { %v2319_v0 = vld [vmem:[#allocation2] sm:$0xff]  ;;  %v2320_v17 = vld [vmem:[#allocation2 + $0x8] sm:$0xff]  ;;  %v2322_v13 = vld [vmem:[#allocation2 + $0x18] sm:$0xff]  ;;  %v6043_v36 = vpack.c.bf16 %v2836_v56, %v2832_v10 }
 0x11b   :  { %v2530_v52 = vadd.f32 %v2454_v3, %v2319_v0  ;;  %v2531_v12 = vadd.f32 %v2456_v26, %v2320_v17  ;;  %v2533_v63 = vadd.f32 %v2527_v54, %v2322_v13  ;;  %v2321_v42 = vld [vmem:[#allocation2 + $0x10] sm:$0xff]  ;;  %v2833_v35 = vld [vmem:[%s6698_s2 + $0xa0] sm:$0xff]  ;;  %v2842_v17 = vld [vmem:[%s6698_s2 + $0xe8] sm:$0xff] }
 0x11c   :  { %v2532_v19 = vadd.f32 %v2525_v11, %v2321_v42  ;;  %v6045_v48 = vpack.c.bf16 %v2833_v35, %v2829_v6  ;;  %v2831_v0 = vld [vmem:[%s6698_s2 + $0x90] sm:$0xff]  ;;  %v2838_v11 = vld [vmem:[%s6698_s2 + $0xc8] sm:$0xff]  ;;  %v2840_v26 = vld [vmem:[%s6698_s2 + $0xd8] sm:$0xff] }
 0x11d   :  { %v4408_v18 = vmul.f32 -1.442695, %v2530_v52  ;;  %v4409_v22 = vmul.f32 -1.442695, %v2531_v12  ;;  %v4410_v9 = vmul.f32 -1.442695, %v2533_v63  ;;  %v6069_v12 = vpack.c.bf16 %v2842_v17, %v2838_v11 }
 0x11e   :  { %v2835_v3 = vld [vmem:[%s6698_s2 + $0xb0] sm:$0xff]  ;;  %v2844_v54 = vld [vmem:[%s6698_s2 + $0xf8] sm:$0xff]  ;;  %v2841_v13 = vld [vmem:[%s6698_s2 + $0xe0] sm:$0xff] }
 0x11f   :  { %4949 = vpow2.f32 %v4408_v18  ;;  %v6057_v52 = vpack.c.bf16 %v2835_v3, %v2831_v0  ;;  %v6071_v18 = vpack.c.bf16 %v2844_v54, %v2840_v26  ;;  %v2839_v63 = vld [vmem:[%s6698_s2 + $0xd0] sm:$0xff]  ;;  %v2860_v8 = vld [vmem:[%s6698_s2 + $0x178] sm:$0xff]  ;;  %v2853_v59 = vld [vmem:[%s6698_s2 + $0x140] sm:$0xff] }
 0x120   :  { %4951 = vpow2.f32 %v4409_v22  ;;  %v2837_v22 = vld [vmem:[%s6698_s2 + $0xc0] sm:$0xff]  ;;  %v2859_v20 = vld [vmem:[%s6698_s2 + $0x170] sm:$0xff]  ;;  %v2862_v61 = vld [vmem:[%s6698_s2 + $0x188] sm:$0xff] }
 0x121   :  { %4953 = vpow2.f32 %v4410_v9  ;;  %v6083_v42 = vpack.c.bf16 %v2841_v13, %v2837_v22  ;;  %v2843_v9 = vld [vmem:[%s6698_s2 + $0xf0] sm:$0xff]  ;;  %v2857_v27 = vld [vmem:[%s6698_s2 + $0x160] sm:$0xff]  ;;  %v2866_v43 = vld [vmem:[%s6698_s2 + $0x1a8] sm:$0xff]  ;;  %v6174_v33 = vpack.c.bf16 %v2859_v20, %v2855_v5 }
 0x122   :  { %4955 = vtanh.f32 %v2532_v19  ;;  %v2846_v19 = vld [vmem:[%s6698_s2 + $0x108] sm:$0xff]  ;;  %v2864_v41 = vld [vmem:[%s6698_s2 + $0x198] sm:$0xff]  ;;  %v6170_v25 = vpack.c.bf16 %v2857_v27, %v2853_v59  ;;  %v6176_v60 = vpack.c.bf16 %v2866_v43, %v2862_v61  ;;  %v2861_v34 = vld [vmem:[%s6698_s2 + $0x180] sm:$0xff] }
 0x123   :  { %v2868_v29 = vld [vmem:[%s6698_s2 + $0x1b8] sm:$0xff]  ;;  %v2865_v16 = vld [vmem:[%s6698_s2 + $0x1a0] sm:$0xff]  ;;  %v2863_v37 = vld [vmem:[%s6698_s2 + $0x190] sm:$0xff] }
 0x124   :  { %v6188_v10 = vpack.c.bf16 %v2868_v29, %v2864_v41  ;;  %v2867_v56 = vld [vmem:[%s6698_s2 + $0x1b0] sm:$0xff]  ;;  %v2870_v6 = vld [vmem:[%s6698_s2 + $0x1c8] sm:$0xff]  ;;  %v2872_v0 = vld [vmem:[%s6698_s2 + $0x1d8] sm:$0xff]  ;;  %v6206_v11 = vpack.c.bf16 %v2865_v16, %v2861_v34 }
 0x125   :  { %v2874_v35 = vld [vmem:[%s6698_s2 + $0x1e8] sm:$0xff]  ;;  %v2876_v3 = vld [vmem:[%s6698_s2 + $0x1f8] sm:$0xff]  ;;  %v6210_v17 = vpack.c.bf16 %v2867_v56, %v2863_v37  ;;  %v2869_v54 = vld [vmem:[%s6698_s2 + $0x1c0] sm:$0xff] }
 0x126   :  { %v6212_v26 = vpack.c.bf16 %v2874_v35, %v2870_v6  ;;  %v2873_v22 = vld [vmem:[%s6698_s2 + $0x1e0] sm:$0xff]  ;;  %v6221_v13 = vpack.c.bf16 %v2876_v3, %v2872_v0  ;;  %v2566_v59 = vld [vmem:[#allocation2 + $0x38] sm:$0xff]  ;;  %v2565_v5 = vld [vmem:[#allocation2 + $0x30] sm:$0xff] }
 0x129   :  { %v4950_v45 = vpop.eup %4949 }
 0x12a   :  { %v4952_v30 = vpop.eup %4951  ;;  %v2537_v32 = vadd.f32 1.0, %v4950_v45  ;;  %v2850_v45 = vld [vmem:[%s6698_s2 + $0x128] sm:$0xff] }
 0x12b   :  { %v2543_v50 = vadd.f32 1.0, %v4952_v30  ;;  %v4954_v58 = vpop.eup %4953  ;;  %v6096_v30 = vpack.c.bf16 %v2843_v9, %v2839_v63  ;;  %v2871_v63 = vld [vmem:[%s6698_s2 + $0x1d0] sm:$0xff] }
 0x12c   :  { %4957 = vrcp.f32 %v2537_v32  ;;  %v4956_v14 = vpop.eup %4955  ;;  %v2550_v47 = vadd.f32 1.0, %v4954_v58  ;;  %v6098_v32 = vpack.c.bf16 %v2850_v45, %v2846_v19  ;;  %v2852_v58 = vld [vmem:[%s6698_s2 + $0x138] sm:$0xff]  ;;  %v2875_v9 = vld [vmem:[%s6698_s2 + $0x1f0] sm:$0xff]  ;;  %v6230_v19 = vpack.c.bf16 %v2873_v22, %v2869_v54 }
 0x12d   :  { %4959 = vrcp.f32 %v2543_v50  ;;  %v2848_v50 = vld [vmem:[%s6698_s2 + $0x118] sm:$0xff]  ;;  %v6234_v45 = vpack.c.bf16 %v2875_v9, %v2871_v63 }
 0x12e   :  { %4961 = vrcp.f32 %v2550_v47  ;;  %v2851_v47 = vld [vmem:[%s6698_s2 + $0x130] sm:$0xff] }
 0x136   :  { %v4958_v46 = vpop.eup %4957 }
 0x137   :  { %v4960_v1 = vpop.eup %4959  ;;  %v2555_v23 = vmul.f32 %v4958_v46, %v4956_v14  ;;  %v2845_v14 = vld [vmem:[%s6698_s2 + $0x100] sm:$0xff]  ;;  %v6110_v46 = vpack.c.bf16 %v2852_v58, %v2848_v50 }
 0x138   :  { %v2554_v15 = vmul.f32 0.0, %v4960_v1  ;;  %v4962_v57 = vpop.eup %4961  ;;  %v2849_v1 = vld [vmem:[%s6698_s2 + $0x120] sm:$0xff] }
 0x139   :  { %v2563_v50 = vld [vmem:[#allocation2 + $0x20] sm:$0xff] }
 0x13a   :  { %v5946_v24 = vadd.f32 %v2555_v23, %v2554_v15  ;;  %v2847_v23 = vld [vmem:[%s6698_s2 + $0x110] sm:$0xff]  ;;  %v2854_v15 = vld [vmem:[%s6698_s2 + $0x148] sm:$0xff] }
 0x13b   :  { %v6138_v49 = vpack.c.bf16 %v2851_v47, %v2847_v23  ;;  %v2564_v23 = vld [vmem:[#allocation2 + $0x28] sm:$0xff] }
 0x13c   :  { %4963 = vtanh.f32 %v5946_v24 }
 0x146   :  { %v4964_v21 = vpop.eup %4963 }
 0x147   :  { %v2558_v7 = vmul.f32 %v4964_v21, %v4962_v57  ;;  %v2858_v57 = vld [vmem:[%s6698_s2 + $0x168] sm:$0xff]  ;;  %v2856_v21 = vld [vmem:[%s6698_s2 + $0x158] sm:$0xff] }
 0x148   :  { %v6140_v55 = vpack.c.bf16 %v2858_v57, %v2854_v15  ;;  %v6152_v28 = vpack.c.bf16 %v2860_v8, %v2856_v21 }
 0x149   :  { %2561 = vst [vmem:[#allocation3] sm:$0xff] %v2558_v7  ;;  %2697 = vmatmul.mubr.f32.vlgmr.msra.gmra.mrb[18].mxu0 %v2558_v7  ;;  %2768 = vmatmul.mubr.f32.vlgmr.msra.gmra.mrb[18].mxu1 %v2558_v7  ;;  %v6131_v7 = vpack.c.bf16 %v2849_v1, %v2845_v14 }
 0x14a   :  { %2941 = vmatprep.mubr.f32.mxu0 %v5077_v2  ;;  %3012 = vmatprep.mubr.f32.mxu1 %v5077_v2 }
 0x14b   :  { %4564 = vmatpush1.bf16.msra.mxu0 %v5973_v39  ;;  %4596 = vmatpush1.bf16.msra.mxu1 %v5982_v40 }
 0x14c   :  { %4566 = vmatprep.subr.bf16.mxu0 %v5996_v62  ;;  %4598 = vmatprep.subr.bf16.mxu1 %v6007_v4 }
 0x14f   :  { %4568 = vmatpush1.bf16.msra.mxu0 %v6009_v51  ;;  %4600 = vmatpush1.bf16.msra.mxu1 %v6018_v53 }
 0x150   :  { %4570 = vmatprep.subr.bf16.mxu0 %v6031_v38  ;;  %4602 = vmatprep.subr.bf16.mxu1 %v6043_v36 }
 0x153   :  { %4572 = vmatpush1.bf16.msra.mxu0 %v6045_v48  ;;  %4604 = vmatpush1.bf16.msra.mxu1 %v6057_v52 }
 0x154   :  { %4574 = vmatprep.subr.bf16.mxu0 %v6069_v12  ;;  %4606 = vmatprep.subr.bf16.mxu1 %v6071_v18 }
 0x157   :  { %4576 = vmatpush1.bf16.msra.mxu0 %v6083_v42  ;;  %4608 = vmatpush1.bf16.msra.mxu1 %v6096_v30 }
 0x158   :  { %4578 = vmatprep.subr.bf16.mxu0 %v6098_v32  ;;  %4610 = vmatprep.subr.bf16.mxu1 %v6110_v46 }
 0x15b   :  { %4580 = vmatpush1.bf16.msra.mxu0 %v6131_v7  ;;  %4612 = vmatpush1.bf16.msra.mxu1 %v6138_v49 }
 0x15c   :  { %4582 = vmatprep.subr.bf16.mxu0 %v6140_v55  ;;  %4614 = vmatprep.subr.bf16.mxu1 %v6152_v28 }
 0x15f   :  { %4584 = vmatpush1.bf16.msra.mxu0 %v6170_v25  ;;  %4616 = vmatpush1.bf16.msra.mxu1 %v6174_v33 }
 0x160   :  { %4586 = vmatprep.subr.bf16.mxu0 %v6176_v60  ;;  %4618 = vmatprep.subr.bf16.mxu1 %v6188_v10 }
 0x163   :  { %4588 = vmatpush1.bf16.msra.mxu0 %v6206_v11  ;;  %4620 = vmatpush1.bf16.msra.mxu1 %v6210_v17 }
 0x164   :  { %4590 = vmatprep.subr.bf16.mxu0 %v6212_v26  ;;  %4622 = vmatprep.subr.bf16.mxu1 %v6221_v13 }
 0x167   :  { %4592 = vmatpush1.bf16.msra.mxu0 %v6230_v19  ;;  %4624 = vmatpush1.bf16.msra.mxu1 %v6234_v45 }
 0x168   :  { %4626 = vmatprep.subr.bf16.mxu0 %v5960_v31  ;;  %4658 = vmatprep.subr.bf16.mxu1 %v5971_v44 }
 0x21c   :  { %v2698_v58 = vpop.f32.mrb[18].mxu0  ;;  %v2769_v14 = vpop.f32.mrb[18].mxu1 }
 0x21d   :  { %v2774_v1 = vadd.f32 %v2698_v58, %v2563_v50  ;;  %v2700_v47 = vpop.f32.mrb[19].mxu0  ;;  %v2771_v15 = vpop.f32.mrb[19].mxu1  ;;  %v2776_v61 = vadd.f32 %v2769_v14, %v2565_v5 }
 0x21e   :  { %v2775_v57 = vadd.f32 %v2700_v47, %v2564_v23  ;;  %v2777_v27 = vadd.f32 %v2771_v15, %v2566_v59 }
 0x21f   :  { %v4411_v21 = vmul.f32 -1.442695, %v2774_v1  ;;  %v2809_v1 = vld [vmem:[#allocation2 + $0x48] sm:$0xff] }
 0x220   :  { %v4412_v8 = vmul.f32 -1.442695, %v2775_v57  ;;  %v4413_v20 = vmul.f32 -1.442695, %v2777_v27  ;;  %v2810_v27 = vld [vmem:[#allocation2 + $0x50] sm:$0xff] }
 0x221   :  { %4965 = vpow2.f32 %v4411_v21 }
 0x222   :  { %4967 = vpow2.f32 %v4412_v8  ;;  %v2811_v8 = vld [vmem:[#allocation2 + $0x58] sm:$0xff] }
 0x223   :  { %4969 = vpow2.f32 %v4413_v20 }
 0x224   :  { %4971 = vtanh.f32 %v2776_v61 }
 0x22b   :  { %v4966_v43 = vpop.eup %4965 }
 0x22c   :  { %v4968_v41 = vpop.eup %4967  ;;  %v2781_v29 = vadd.f32 1.0, %v4966_v43 }
 0x22d   :  { %v2787_v34 = vadd.f32 1.0, %v4968_v41  ;;  %v4970_v16 = vpop.eup %4969 }
 0x22e   :  { %4973 = vrcp.f32 %v2781_v29  ;;  %v4972_v37 = vpop.eup %4971  ;;  %v2794_v0 = vadd.f32 1.0, %v4970_v16 }
 0x22f   :  { %4975 = vrcp.f32 %v2787_v34 }
 0x230   :  { %4977 = vrcp.f32 %v2794_v0 }
 0x238   :  { %v4974_v56 = vpop.eup %4973 }
 0x239   :  { %v4976_v6 = vpop.eup %4975  ;;  %v2799_v35 = vmul.f32 %v4974_v56, %v4972_v37 }
 0x23a   :  { %v2798_v3 = vmul.f32 %v4976_v6, %v5946_v24  ;;  %v4978_v22 = vpop.eup %4977  ;;  %v2808_v24 = vld [vmem:[#allocation2 + $0x40] sm:$0xff] }
 0x23c   :  { %v6242_v54 = vadd.f32 %v2799_v35, %v2798_v3 }
 0x23e   :  { %4979 = vtanh.f32 %v6242_v54 }
 0x248   :  { %v4980_v63 = vpop.eup %4979 }
 0x249   :  { %v2802_v9 = vmul.f32 %v4980_v63, %v4978_v22 }
 0x24b   :  { %2806 = vst [vmem:[#allocation3 + $0x8] sm:$0xff] %v2802_v9  ;;  %2942 = vmatmul.mubr.f32.vlgmr.msra.gmra.mrb[20].mxu0 %v2802_v9  ;;  %3013 = vmatmul.mubr.f32.vlgmr.msra.gmra.mrb[20].mxu1 %v2802_v9 }
 0x24c   :  { %4628 = vmatpush1.bf16.msra.mxu0 %v5973_v39  ;;  %4660 = vmatpush1.bf16.msra.mxu1 %v5982_v40 }
 0x24d   :  { %4630 = vmatprep.subr.bf16.mxu0 %v5996_v62  ;;  %4662 = vmatprep.subr.bf16.mxu1 %v6007_v4 }
 0x24e   :  { %3186 = vmatprep.mubr.f32.mxu0 %v5077_v2  ;;  %3257 = vmatprep.mubr.f32.mxu1 %v5077_v2 }
 0x250   :  { %4632 = vmatpush1.bf16.msra.mxu0 %v6009_v51  ;;  %4664 = vmatpush1.bf16.msra.mxu1 %v6018_v53 }
 0x251   :  { %4634 = vmatprep.subr.bf16.mxu0 %v6031_v38  ;;  %4666 = vmatprep.subr.bf16.mxu1 %v6043_v36 }
 0x254   :  { %4636 = vmatpush1.bf16.msra.mxu0 %v6045_v48  ;;  %4668 = vmatpush1.bf16.msra.mxu1 %v6057_v52 }
 0x255   :  { %4638 = vmatprep.subr.bf16.mxu0 %v6069_v12  ;;  %4670 = vmatprep.subr.bf16.mxu1 %v6071_v18 }
 0x258   :  { %4640 = vmatpush1.bf16.msra.mxu0 %v6083_v42  ;;  %4672 = vmatpush1.bf16.msra.mxu1 %v6096_v30 }
 0x259   :  { %4642 = vmatprep.subr.bf16.mxu0 %v6098_v32  ;;  %4674 = vmatprep.subr.bf16.mxu1 %v6110_v46 }
 0x25c   :  { %4644 = vmatpush1.bf16.msra.mxu0 %v6131_v7  ;;  %4676 = vmatpush1.bf16.msra.mxu1 %v6138_v49 }
 0x25d   :  { %4646 = vmatprep.subr.bf16.mxu0 %v6140_v55  ;;  %4678 = vmatprep.subr.bf16.mxu1 %v6152_v28 }
 0x260   :  { %4648 = vmatpush1.bf16.msra.mxu0 %v6170_v25  ;;  %4680 = vmatpush1.bf16.msra.mxu1 %v6174_v33 }
 0x261   :  { %4650 = vmatprep.subr.bf16.mxu0 %v6176_v60  ;;  %4682 = vmatprep.subr.bf16.mxu1 %v6188_v10 }
 0x264   :  { %4652 = vmatpush1.bf16.msra.mxu0 %v6206_v11  ;;  %4684 = vmatpush1.bf16.msra.mxu1 %v6210_v17 }
 0x265   :  { %4654 = vmatprep.subr.bf16.mxu0 %v6212_v26  ;;  %4686 = vmatprep.subr.bf16.mxu1 %v6221_v13 }
 0x268   :  { %4656 = vmatpush1.bf16.msra.mxu0 %v6230_v19  ;;  %4688 = vmatpush1.bf16.msra.mxu1 %v6234_v45 }
 0x269   :  { %4690 = vmatprep.subr.bf16.mxu0 %v5960_v31  ;;  %4722 = vmatprep.subr.bf16.mxu1 %v5971_v44 }
 0x31e   :  { %v2943_v50 = vpop.f32.mrb[20].mxu0  ;;  %v3014_v58 = vpop.f32.mrb[20].mxu1 }
 0x31f   :  { %v3019_v14 = vadd.f32 %v2943_v50, %v2808_v24  ;;  %v2945_v23 = vpop.f32.mrb[21].mxu0  ;;  %v3016_v47 = vpop.f32.mrb[21].mxu1  ;;  %v3021_v20 = vadd.f32 %v3014_v58, %v2810_v27 }
 0x320   :  { %v3020_v15 = vadd.f32 %v2945_v23, %v2809_v1  ;;  %v3022_v59 = vadd.f32 %v3016_v47, %v2811_v8 }
 0x321   :  { %v4414_v57 = vmul.f32 -1.442695, %v3019_v14  ;;  %v3054_v14 = vld [vmem:[#allocation2 + $0x68] sm:$0xff] }
 0x322   :  { %v4415_v21 = vmul.f32 -1.442695, %v3020_v15  ;;  %v4416_v5 = vmul.f32 -1.442695, %v3022_v59  ;;  %v3055_v59 = vld [vmem:[#allocation2 + $0x70] sm:$0xff] }
 0x323   :  { %4981 = vpow2.f32 %v4414_v57 }
 0x324   :  { %4983 = vpow2.f32 %v4415_v21  ;;  %v3056_v21 = vld [vmem:[#allocation2 + $0x78] sm:$0xff] }
 0x325   :  { %4985 = vpow2.f32 %v4416_v5 }
 0x326   :  { %4987 = vtanh.f32 %v3021_v20 }
 0x32d   :  { %v4982_v61 = vpop.eup %4981 }
 0x32e   :  { %v4984_v43 = vpop.eup %4983  ;;  %v3026_v41 = vadd.f32 1.0, %v4982_v61 }
 0x32f   :  { %v3032_v29 = vadd.f32 1.0, %v4984_v43  ;;  %v4986_v34 = vpop.eup %4985 }
 0x330   :  { %4989 = vrcp.f32 %v3026_v41  ;;  %v4988_v16 = vpop.eup %4987  ;;  %v3039_v35 = vadd.f32 1.0, %v4986_v34 }
 0x331   :  { %4991 = vrcp.f32 %v3032_v29 }
 0x332   :  { %4993 = vrcp.f32 %v3039_v35 }
 0x33a   :  { %v4990_v37 = vpop.eup %4989 }
 0x33b   :  { %v4992_v56 = vpop.eup %4991  ;;  %v3044_v6 = vmul.f32 %v4990_v37, %v4988_v16 }
 0x33c   :  { %v3043_v0 = vmul.f32 %v4992_v56, %v6242_v54  ;;  %v4994_v22 = vpop.eup %4993  ;;  %v3053_v54 = vld [vmem:[#allocation2 + $0x60] sm:$0xff] }
 0x33e   :  { %v6280_v3 = vadd.f32 %v3044_v6, %v3043_v0 }
 0x340   :  { %4995 = vtanh.f32 %v6280_v3 }
 0x34a   :  { %v4996_v63 = vpop.eup %4995 }
 0x34b   :  { %v3047_v9 = vmul.f32 %v4996_v63, %v4994_v22  ;;  %v3798_v63 = vld [vmem:[%s6698_s2 + $0x28] sm:$0xff] }
 0x34d   :  { %3051 = vst [vmem:[#allocation3 + $0x10] sm:$0xff] %v3047_v9  ;;  %3187 = vmatmul.mubr.f32.vlgmr.msra.gmra.mrb[22].mxu0 %v3047_v9  ;;  %3258 = vmatmul.mubr.f32.vlgmr.msra.gmra.mrb[22].mxu1 %v3047_v9  ;;  %v3796_v9 = vld [vmem:[%s6698_s2 + $0x18] sm:$0xff] }
 0x34e   :  { %4692 = vmatpush1.bf16.msra.mxu0 %v5973_v39  ;;  %4724 = vmatpush1.bf16.msra.mxu1 %v5982_v40 }
 0x34f   :  { %4694 = vmatprep.subr.bf16.mxu0 %v5996_v62  ;;  %4726 = vmatprep.subr.bf16.mxu1 %v6007_v4 }
 0x350   :  { %3431 = vmatprep.mubr.f32.mxu0 %v5077_v2  ;;  %3502 = vmatprep.mubr.f32.mxu1 %v5077_v2 }
 0x352   :  { %4696 = vmatpush1.bf16.msra.mxu0 %v6009_v51  ;;  %4728 = vmatpush1.bf16.msra.mxu1 %v6018_v53 }
 0x353   :  { %4698 = vmatprep.subr.bf16.mxu0 %v6031_v38  ;;  %4730 = vmatprep.subr.bf16.mxu1 %v6043_v36 }
 0x356   :  { %4700 = vmatpush1.bf16.msra.mxu0 %v6045_v48  ;;  %4732 = vmatpush1.bf16.msra.mxu1 %v6057_v52 }
 0x357   :  { %4702 = vmatprep.subr.bf16.mxu0 %v6069_v12  ;;  %4734 = vmatprep.subr.bf16.mxu1 %v6071_v18 }
 0x35a   :  { %4704 = vmatpush1.bf16.msra.mxu0 %v6083_v42  ;;  %4736 = vmatpush1.bf16.msra.mxu1 %v6096_v30 }
 0x35b   :  { %4706 = vmatprep.subr.bf16.mxu0 %v6098_v32  ;;  %4738 = vmatprep.subr.bf16.mxu1 %v6110_v46 }
 0x35e   :  { %4708 = vmatpush1.bf16.msra.mxu0 %v6131_v7  ;;  %4740 = vmatpush1.bf16.msra.mxu1 %v6138_v49 }
 0x35f   :  { %4710 = vmatprep.subr.bf16.mxu0 %v6140_v55  ;;  %4742 = vmatprep.subr.bf16.mxu1 %v6152_v28 }
 0x362   :  { %4712 = vmatpush1.bf16.msra.mxu0 %v6170_v25  ;;  %4744 = vmatpush1.bf16.msra.mxu1 %v6174_v33 }
 0x363   :  { %4714 = vmatprep.subr.bf16.mxu0 %v6176_v60  ;;  %4746 = vmatprep.subr.bf16.mxu1 %v6188_v10 }
 0x366   :  { %4716 = vmatpush1.bf16.msra.mxu0 %v6206_v11  ;;  %4748 = vmatpush1.bf16.msra.mxu1 %v6210_v17 }
 0x367   :  { %4718 = vmatprep.subr.bf16.mxu0 %v6212_v26  ;;  %4750 = vmatprep.subr.bf16.mxu1 %v6221_v13 }
 0x36a   :  { %4720 = vmatpush1.bf16.msra.mxu0 %v6230_v19  ;;  %4752 = vmatpush1.bf16.msra.mxu1 %v6234_v45 }
 0x36b   :  { %4754 = vmatprep.subr.bf16.mxu0 %v5960_v31  ;;  %4786 = vmatprep.subr.bf16.mxu1 %v5971_v44 }
 0x420   :  { %v3188_v24 = vpop.f32.mrb[22].mxu0  ;;  %v3259_v50 = vpop.f32.mrb[22].mxu1 }
 0x421   :  { %v3264_v58 = vadd.f32 %v3188_v24, %v3053_v54  ;;  %v3190_v1 = vpop.f32.mrb[23].mxu0  ;;  %v3261_v23 = vpop.f32.mrb[23].mxu1  ;;  %v3266_v5 = vadd.f32 %v3259_v50, %v3055_v59  ;;  %v3800_v24 = vld [vmem:[%s6698_s2 + $0x38] sm:$0xff]  ;;  %v3793_v50 = vld [vmem:[%s6698_s2] sm:$0xff] }
 0x422   :  { %v3265_v47 = vadd.f32 %v3190_v1, %v3054_v14  ;;  %v3267_v8 = vadd.f32 %v3261_v23, %v3056_v21  ;;  %v6379_v14 = vpack.c.bf16 %v3800_v24, %v3796_v9  ;;  %v3795_v23 = vld [vmem:[%s6698_s2 + $0x10] sm:$0xff]  ;;  %v3806_v21 = vld [vmem:[%s6698_s2 + $0x68] sm:$0xff]  ;;  %v3808_v59 = vld [vmem:[%s6698_s2 + $0x78] sm:$0xff] }
 0x423   :  { %v4417_v15 = vmul.f32 -1.442695, %v3264_v58  ;;  %v3797_v58 = vld [vmem:[%s6698_s2 + $0x20] sm:$0xff] }
 0x424   :  { %v4418_v57 = vmul.f32 -1.442695, %v3265_v47  ;;  %v4419_v27 = vmul.f32 -1.442695, %v3267_v8  ;;  %v6381_v1 = vpack.c.bf16 %v3797_v58, %v3793_v50  ;;  %v3799_v47 = vld [vmem:[%s6698_s2 + $0x30] sm:$0xff]  ;;  %v3804_v8 = vld [vmem:[%s6698_s2 + $0x58] sm:$0xff] }
 0x425   :  { %4997 = vpow2.f32 %v4417_v15  ;;  %v3802_v15 = vld [vmem:[%s6698_s2 + $0x48] sm:$0xff]  ;;  %v3833_v24 = vld [vmem:[%s6698_s2 + $0x140] sm:$0xff]  ;;  %v3835_v58 = vld [vmem:[%s6698_s2 + $0x150] sm:$0xff] }
 0x426   :  { %4999 = vpow2.f32 %v4418_v57  ;;  %v6393_v57 = vpack.c.bf16 %v3799_v47, %v3795_v23  ;;  %v3837_v50 = vld [vmem:[%s6698_s2 + $0x160] sm:$0xff]  ;;  %v3839_v47 = vld [vmem:[%s6698_s2 + $0x170] sm:$0xff] }
 0x427   :  { %5001 = vpow2.f32 %v4419_v27  ;;  %v6406_v27 = vpack.c.bf16 %v3806_v21, %v3802_v15  ;;  %v3842_v15 = vld [vmem:[%s6698_s2 + $0x188] sm:$0xff] }
 0x428   :  { %5003 = vtanh.f32 %v3266_v5  ;;  %v6408_v5 = vpack.c.bf16 %v3808_v59, %v3804_v8  ;;  %v3846_v21 = vld [vmem:[%s6698_s2 + $0x1a8] sm:$0xff]  ;;  %v3844_v8 = vld [vmem:[%s6698_s2 + $0x198] sm:$0xff] }
 0x429   :  { %v3848_v59 = vld [vmem:[%s6698_s2 + $0x1b8] sm:$0xff] }
 0x42f   :  { %v4998_v31 = vpop.eup %4997 }
 0x430   :  { %v5000_v20 = vpop.eup %4999  ;;  %v3271_v44 = vadd.f32 1.0, %v4998_v31  ;;  %v3801_v31 = vld [vmem:[%s6698_s2 + $0x40] sm:$0xff] }
 0x431   :  { %v3277_v61 = vadd.f32 1.0, %v5000_v20  ;;  %v5002_v43 = vpop.eup %5001  ;;  %v3805_v20 = vld [vmem:[%s6698_s2 + $0x60] sm:$0xff] }
 0x432   :  { %5005 = vrcp.f32 %v3271_v44  ;;  %v5004_v41 = vpop.eup %5003  ;;  %v3284_v37 = vadd.f32 1.0, %v5002_v43  ;;  %v3803_v44 = vld [vmem:[%s6698_s2 + $0x50] sm:$0xff] }
 0x433   :  { %5007 = vrcp.f32 %v3277_v61  ;;  %v6420_v61 = vpack.c.bf16 %v3805_v20, %v3801_v31  ;;  %v3807_v43 = vld [vmem:[%s6698_s2 + $0x70] sm:$0xff]  ;;  %v6578_v31 = vpack.c.bf16 %v3837_v50, %v3833_v24  ;;  %v6582_v20 = vpack.c.bf16 %v3839_v47, %v3835_v58  ;;  %v3546_v24 = vld [vmem:[#allocation2 + $0xb8] sm:$0xff] }
 0x434   :  { %5009 = vrcp.f32 %v3284_v37  ;;  %v3812_v37 = vld [vmem:[%s6698_s2 + $0x98] sm:$0xff]  ;;  %v3545_v58 = vld [vmem:[#allocation2 + $0xb0] sm:$0xff] }
 0x43c   :  { %v5006_v29 = vpop.eup %5005 }
 0x43d   :  { %v5008_v34 = vpop.eup %5007  ;;  %v3289_v16 = vmul.f32 %v5006_v29, %v5004_v41  ;;  %v3810_v41 = vld [vmem:[%s6698_s2 + $0x88] sm:$0xff] }
 0x43e   :  { %v3288_v56 = vmul.f32 %v5008_v34, %v6280_v3  ;;  %v5010_v35 = vpop.eup %5009  ;;  %v3794_v3 = vld [vmem:[%s6698_s2 + $0x8] sm:$0xff]  ;;  %v6433_v34 = vpack.c.bf16 %v3807_v43, %v3803_v44  ;;  %v6584_v44 = vpack.c.bf16 %v3846_v21, %v3842_v15  ;;  %v3841_v43 = vld [vmem:[%s6698_s2 + $0x180] sm:$0xff] }
 0x43f   :  { %v6368_v54 = vpack.c.bf16 %v3798_v63, %v3794_v3  ;;  %v3814_v29 = vld [vmem:[%s6698_s2 + $0xa8] sm:$0xff] }
 0x440   :  { %v6318_v6 = vadd.f32 %v3289_v16, %v3288_v56  ;;  %v6435_v16 = vpack.c.bf16 %v3814_v29, %v3810_v41  ;;  %v3816_v56 = vld [vmem:[%s6698_s2 + $0xb8] sm:$0xff]  ;;  %v3845_v41 = vld [vmem:[%s6698_s2 + $0x1a0] sm:$0xff]  ;;  %v3843_v29 = vld [vmem:[%s6698_s2 + $0x190] sm:$0xff] }
 0x442   :  { %5011 = vtanh.f32 %v6318_v6 }
 0x44c   :  { %v5012_v0 = vpop.eup %5011 }
 0x44d   :  { %v3292_v22 = vmul.f32 %v5012_v0, %v5010_v35  ;;  %v6446_v35 = vpack.c.bf16 %v3816_v56, %v3812_v37  ;;  %v3813_v0 = vld [vmem:[%s6698_s2 + $0xa0] sm:$0xff]  ;;  %v6596_v37 = vpack.c.bf16 %v3848_v59, %v3844_v8  ;;  %v3847_v56 = vld [vmem:[%s6698_s2 + $0x1b0] sm:$0xff] }
 0x44f   :  { %3296 = vst [vmem:[#allocation3 + $0x18] sm:$0xff] %v3292_v22  ;;  %3432 = vmatmul.mubr.f32.vlgmr.msra.gmra.mrb[24].mxu0 %v3292_v22  ;;  %3503 = vmatmul.mubr.f32.vlgmr.msra.gmra.mrb[24].mxu1 %v3292_v22  ;;  %v3811_v22 = vld [vmem:[%s6698_s2 + $0x90] sm:$0xff] }
 0x450   :  { %4756 = vmatpush1.bf16.msra.mxu0 %v5973_v39  ;;  %4788 = vmatpush1.bf16.msra.mxu1 %v5982_v40  ;;  %v3298_v39 = vld [vmem:[#allocation2 + $0x80] sm:$0xff] }
 0x451   :  { %4758 = vmatprep.subr.bf16.mxu0 %v5996_v62  ;;  %4790 = vmatprep.subr.bf16.mxu1 %v6007_v4 }
 0x452   :  { %3676 = vmatprep.mubr.f32.mxu0 %v5077_v2  ;;  %3747 = vmatprep.mubr.f32.mxu1 %v5077_v2 }
 0x454   :  { %4760 = vmatpush1.bf16.msra.mxu0 %v6009_v51  ;;  %4792 = vmatpush1.bf16.msra.mxu1 %v6018_v53  ;;  %v3299_v51 = vld [vmem:[#allocation2 + $0x88] sm:$0xff] }
 0x455   :  { %4762 = vmatprep.subr.bf16.mxu0 %v6031_v38  ;;  %4794 = vmatprep.subr.bf16.mxu1 %v6043_v36 }
 0x458   :  { %4764 = vmatpush1.bf16.msra.mxu0 %v6045_v48  ;;  %4796 = vmatpush1.bf16.msra.mxu1 %v6057_v52 }
 0x459   :  { %4766 = vmatprep.subr.bf16.mxu0 %v6069_v12  ;;  %4798 = vmatprep.subr.bf16.mxu1 %v6071_v18  ;;  %v3301_v12 = vld [vmem:[#allocation2 + $0x98] sm:$0xff] }
 0x45c   :  { %4768 = vmatpush1.bf16.msra.mxu0 %v6083_v42  ;;  %4800 = vmatpush1.bf16.msra.mxu1 %v6096_v30  ;;  %v3300_v42 = vld [vmem:[#allocation2 + $0x90] sm:$0xff] }
 0x45d   :  { %4770 = vmatprep.subr.bf16.mxu0 %v6098_v32  ;;  %4802 = vmatprep.subr.bf16.mxu1 %v6110_v46 }
 0x460   :  { %4772 = vmatpush1.bf16.msra.mxu0 %v6131_v7  ;;  %4804 = vmatpush1.bf16.msra.mxu1 %v6138_v49 }
 0x461   :  { %4774 = vmatprep.subr.bf16.mxu0 %v6140_v55  ;;  %4806 = vmatprep.subr.bf16.mxu1 %v6152_v28 }
 0x464   :  { %4776 = vmatpush1.bf16.msra.mxu0 %v6170_v25  ;;  %4808 = vmatpush1.bf16.msra.mxu1 %v6174_v33 }
 0x465   :  { %4778 = vmatprep.subr.bf16.mxu0 %v6176_v60  ;;  %4810 = vmatprep.subr.bf16.mxu1 %v6188_v10 }
 0x468   :  { %4780 = vmatpush1.bf16.msra.mxu0 %v6206_v11  ;;  %4812 = vmatpush1.bf16.msra.mxu1 %v6210_v17 }
 0x469   :  { %4782 = vmatprep.subr.bf16.mxu0 %v6212_v26  ;;  %4814 = vmatprep.subr.bf16.mxu1 %v6221_v13 }
 0x46c   :  { %4784 = vmatpush1.bf16.msra.mxu0 %v6230_v19  ;;  %4816 = vmatpush1.bf16.msra.mxu1 %v6234_v45 }
 0x46d   :  { %4818 = vmatprep.subr.bf16.mxu0 %v6368_v54  ;;  %4850 = vmatprep.subr.bf16.mxu1 %v6379_v14 }
 0x522   :  { %v3433_v40 = vpop.f32.mrb[24].mxu0  ;;  %v3504_v62 = vpop.f32.mrb[24].mxu1 }
 0x523   :  { %v3509_v4 = vadd.f32 %v3433_v40, %v3298_v39  ;;  %v3435_v53 = vpop.f32.mrb[25].mxu0  ;;  %v3506_v38 = vpop.f32.mrb[25].mxu1  ;;  %v3511_v32 = vadd.f32 %v3504_v62, %v3300_v42  ;;  %v3815_v39 = vld [vmem:[%s6698_s2 + $0xb0] sm:$0xff]  ;;  %v3818_v62 = vld [vmem:[%s6698_s2 + $0xc8] sm:$0xff] }
 0x524   :  { %v3510_v36 = vadd.f32 %v3435_v53, %v3299_v51  ;;  %v3512_v18 = vadd.f32 %v3506_v38, %v3301_v12  ;;  %v3820_v51 = vld [vmem:[%s6698_s2 + $0xd8] sm:$0xff]  ;;  %v6471_v53 = vpack.c.bf16 %v3815_v39, %v3811_v22  ;;  %v3823_v42 = vld [vmem:[%s6698_s2 + $0xf0] sm:$0xff] }
 0x525   :  { %v4420_v48 = vmul.f32 -1.442695, %v3509_v4  ;;  %v3822_v4 = vld [vmem:[%s6698_s2 + $0xe8] sm:$0xff]  ;;  %v3852_v22 = vld [vmem:[%s6698_s2 + $0x1d8] sm:$0xff] }
 0x526   :  { %v4421_v52 = vmul.f32 -1.442695, %v3510_v36  ;;  %v4422_v30 = vmul.f32 -1.442695, %v3512_v18  ;;  %v6473_v38 = vpack.c.bf16 %v3822_v4, %v3818_v62  ;;  %v3824_v36 = vld [vmem:[%s6698_s2 + $0xf8] sm:$0xff]  ;;  %v3819_v18 = vld [vmem:[%s6698_s2 + $0xd0] sm:$0xff]  ;;  %v6614_v62 = vpack.c.bf16 %v3845_v41, %v3841_v43 }
 0x527   :  { %5013 = vpow2.f32 %v4420_v48  ;;  %v3817_v48 = vld [vmem:[%s6698_s2 + $0xc0] sm:$0xff]  ;;  %v6485_v12 = vpack.c.bf16 %v3824_v36, %v3820_v51  ;;  %v3856_v39 = vld [vmem:[%s6698_s2 + $0x1f8] sm:$0xff]  ;;  %v6618_v4 = vpack.c.bf16 %v3847_v56, %v3843_v29 }
 0x528   :  { %5015 = vpow2.f32 %v4421_v52  ;;  %v3821_v52 = vld [vmem:[%s6698_s2 + $0xe0] sm:$0xff] }
 0x529   :  { %5017 = vpow2.f32 %v4422_v30  ;;  %v3826_v30 = vld [vmem:[%s6698_s2 + $0x108] sm:$0xff]  ;;  %v3849_v36 = vld [vmem:[%s6698_s2 + $0x1c0] sm:$0xff] }
 0x52a   :  { %5019 = vtanh.f32 %v3511_v32  ;;  %v3830_v32 = vld [vmem:[%s6698_s2 + $0x128] sm:$0xff] }
 0x531   :  { %v5014_v46 = vpop.eup %5013 }
 0x532   :  { %v5016_v7 = vpop.eup %5015  ;;  %v3516_v49 = vadd.f32 1.0, %v5014_v46  ;;  %v3828_v46 = vld [vmem:[%s6698_s2 + $0x118] sm:$0xff] }
 0x533   :  { %v3522_v55 = vadd.f32 1.0, %v5016_v7  ;;  %v5018_v28 = vpop.eup %5017  ;;  %v3832_v7 = vld [vmem:[%s6698_s2 + $0x138] sm:$0xff] }
 0x534   :  { %5021 = vrcp.f32 %v3516_v49  ;;  %v5020_v25 = vpop.eup %5019  ;;  %v3529_v11 = vadd.f32 1.0, %v5018_v28  ;;  %v6506_v49 = vpack.c.bf16 %v3821_v52, %v3817_v48  ;;  %v6512_v28 = vpack.c.bf16 %v3830_v32, %v3826_v30  ;;  %v3853_v48 = vld [vmem:[%s6698_s2 + $0x1e0] sm:$0xff] }
 0x535   :  { %5023 = vrcp.f32 %v3522_v55  ;;  %v6510_v55 = vpack.c.bf16 %v3823_v42, %v3819_v18  ;;  %v6629_v52 = vpack.c.bf16 %v3856_v39, %v3852_v22  ;;  %v3851_v18 = vld [vmem:[%s6698_s2 + $0x1d0] sm:$0xff]  ;;  %v6638_v30 = vpack.c.bf16 %v3853_v48, %v3849_v36 }
 0x536   :  { %5025 = vrcp.f32 %v3529_v11  ;;  %v3831_v11 = vld [vmem:[%s6698_s2 + $0x130] sm:$0xff] }
 0x537   :  { %v3855_v42 = vld [vmem:[%s6698_s2 + $0x1f0] sm:$0xff] }
 0x538   :  { %v6642_v32 = vpack.c.bf16 %v3855_v42, %v3851_v18  ;;  %v4033_v18 = vld [vmem:[#allocation2 + $0xe0] sm:$0xff] }
 0x53e   :  { %v5022_v33 = vpop.eup %5021 }
 0x53f   :  { %v5024_v60 = vpop.eup %5023  ;;  %v3534_v10 = vmul.f32 %v5022_v33, %v5020_v25  ;;  %v3825_v25 = vld [vmem:[%s6698_s2 + $0x100] sm:$0xff] }
 0x540   :  { %v3533_v17 = vmul.f32 %v5024_v60, %v6318_v6  ;;  %v5026_v13 = vpop.eup %5025  ;;  %v3809_v6 = vld [vmem:[%s6698_s2 + $0x80] sm:$0xff]  ;;  %v3827_v60 = vld [vmem:[%s6698_s2 + $0x110] sm:$0xff] }
 0x541   :  { %v6458_v40 = vpack.c.bf16 %v3813_v0, %v3809_v6  ;;  %v3829_v33 = vld [vmem:[%s6698_s2 + $0x120] sm:$0xff]  ;;  %v6546_v63 = vpack.c.bf16 %v3831_v11, %v3827_v60  ;;  %v3850_v6 = vld [vmem:[%s6698_s2 + $0x1c8] sm:$0xff] }
 0x542   :  { %v6354_v26 = vadd.f32 %v3534_v10, %v3533_v17  ;;  %v6524_v10 = vpack.c.bf16 %v3832_v7, %v3828_v46  ;;  %v3834_v17 = vld [vmem:[%s6698_s2 + $0x148] sm:$0xff]  ;;  %v6542_v3 = vpack.c.bf16 %v3829_v33, %v3825_v25  ;;  %v3543_v46 = vld [vmem:[#allocation2 + $0xa0] sm:$0xff] }
 0x543   :  { %v3854_v0 = vld [vmem:[%s6698_s2 + $0x1e8] sm:$0xff] }
 0x544   :  { %5027 = vtanh.f32 %v6354_v26  ;;  %v6620_v51 = vpack.c.bf16 %v3854_v0, %v3850_v6  ;;  %v3544_v60 = vld [vmem:[#allocation2 + $0xa8] sm:$0xff] }
 0x54e   :  { %v5028_v19 = vpop.eup %5027 }
 0x54f   :  { %v3537_v45 = vmul.f32 %v5028_v19, %v5026_v13  ;;  %v3838_v13 = vld [vmem:[%s6698_s2 + $0x168] sm:$0xff]  ;;  %v3836_v19 = vld [vmem:[%s6698_s2 + $0x158] sm:$0xff] }
 0x550   :  { %v6548_v9 = vpack.c.bf16 %v3838_v13, %v3834_v17 }
 0x551   :  { %3541 = vst [vmem:[#allocation3 + $0x20] sm:$0xff] %v3537_v45  ;;  %3677 = vmatmul.mubr.f32.vlgmr.msra.gmra.mrb[26].mxu0 %v3537_v45  ;;  %3748 = vmatmul.mubr.f32.vlgmr.msra.gmra.mrb[26].mxu1 %v3537_v45  ;;  %v3840_v45 = vld [vmem:[%s6698_s2 + $0x178] sm:$0xff] }
 0x552   :  { %3921 = vmatprep.mubr.f32.mxu0 %v5077_v2  ;;  %3992 = vmatprep.mubr.f32.mxu1 %v5077_v2  ;;  %v6560_v23 = vpack.c.bf16 %v3840_v45, %v3836_v19 }
 0x553   :  { %4820 = vmatpush1.bf16.msra.mxu0 %v6381_v1  ;;  %4852 = vmatpush1.bf16.msra.mxu1 %v6393_v57 }
 0x554   :  { %4822 = vmatprep.subr.bf16.mxu0 %v6406_v27  ;;  %4854 = vmatprep.subr.bf16.mxu1 %v6408_v5 }
 0x557   :  { %4824 = vmatpush1.bf16.msra.mxu0 %v6420_v61  ;;  %4856 = vmatpush1.bf16.msra.mxu1 %v6433_v34 }
 0x558   :  { %4826 = vmatprep.subr.bf16.mxu0 %v6435_v16  ;;  %4858 = vmatprep.subr.bf16.mxu1 %v6446_v35 }
 0x55b   :  { %4828 = vmatpush1.bf16.msra.mxu0 %v6458_v40  ;;  %4860 = vmatpush1.bf16.msra.mxu1 %v6471_v53 }
 0x55c   :  { %4830 = vmatprep.subr.bf16.mxu0 %v6473_v38  ;;  %4862 = vmatprep.subr.bf16.mxu1 %v6485_v12 }
 0x55f   :  { %4832 = vmatpush1.bf16.msra.mxu0 %v6506_v49  ;;  %4864 = vmatpush1.bf16.msra.mxu1 %v6510_v55 }
 0x560   :  { %4834 = vmatprep.subr.bf16.mxu0 %v6512_v28  ;;  %4866 = vmatprep.subr.bf16.mxu1 %v6524_v10 }
 0x563   :  { %4836 = vmatpush1.bf16.msra.mxu0 %v6542_v3  ;;  %4868 = vmatpush1.bf16.msra.mxu1 %v6546_v63 }
 0x564   :  { %4838 = vmatprep.subr.bf16.mxu0 %v6548_v9  ;;  %4870 = vmatprep.subr.bf16.mxu1 %v6560_v23 }
 0x567   :  { %4840 = vmatpush1.bf16.msra.mxu0 %v6578_v31  ;;  %4872 = vmatpush1.bf16.msra.mxu1 %v6582_v20 }
 0x568   :  { %4842 = vmatprep.subr.bf16.mxu0 %v6584_v44  ;;  %4874 = vmatprep.subr.bf16.mxu1 %v6596_v37 }
 0x56b   :  { %4844 = vmatpush1.bf16.msra.mxu0 %v6614_v62  ;;  %4876 = vmatpush1.bf16.msra.mxu1 %v6618_v4 }
 0x56c   :  { %4846 = vmatprep.subr.bf16.mxu0 %v6620_v51  ;;  %4878 = vmatprep.subr.bf16.mxu1 %v6629_v52 }
 0x56f   :  { %4848 = vmatpush1.bf16.msra.mxu0 %v6638_v30  ;;  %4880 = vmatpush1.bf16.msra.mxu1 %v6642_v32 }
 0x570   :  { %4882 = vmatprep.subr.bf16.mxu0 %v6368_v54  ;;  %4914 = vmatprep.subr.bf16.mxu1 %v6379_v14 }
 0x624   :  { %v3678_v7 = vpop.f32.mrb[26].mxu0  ;;  %v3749_v25 = vpop.f32.mrb[26].mxu1 }
 0x625   :  { %v3754_v33 = vadd.f32 %v3678_v7, %v3543_v46  ;;  %v3680_v11 = vpop.f32.mrb[27].mxu0  ;;  %v3751_v17 = vpop.f32.mrb[27].mxu1  ;;  %v3756_v15 = vadd.f32 %v3749_v25, %v3545_v58  ;;  %v4034_v46 = vld [vmem:[#allocation2 + $0xe8] sm:$0xff] }
 0x626   :  { %v3755_v13 = vadd.f32 %v3680_v11, %v3544_v60  ;;  %v3757_v50 = vadd.f32 %v3751_v17, %v3546_v24  ;;  %v4036_v17 = vld [vmem:[#allocation2 + $0xf8] sm:$0xff] }
 0x627   :  { %v4423_v19 = vmul.f32 -1.442695, %v3754_v33 }
 0x628   :  { %v4424_v45 = vmul.f32 -1.442695, %v3755_v13  ;;  %v4425_v47 = vmul.f32 -1.442695, %v3757_v50 }
 0x629   :  { %5029 = vpow2.f32 %v4423_v19  ;;  %v4035_v19 = vld [vmem:[#allocation2 + $0xf0] sm:$0xff] }
 0x62a   :  { %5031 = vpow2.f32 %v4424_v45 }
 0x62b   :  { %5033 = vpow2.f32 %v4425_v47 }
 0x62c   :  { %5035 = vtanh.f32 %v3756_v15 }
 0x633   :  { %v5030_v54 = vpop.eup %5029 }
 0x634   :  { %v5032_v21 = vpop.eup %5031  ;;  %v3761_v14 = vadd.f32 1.0, %v5030_v54 }
 0x635   :  { %v3767_v8 = vadd.f32 1.0, %v5032_v21  ;;  %v5034_v59 = vpop.eup %5033 }
 0x636   :  { %5037 = vrcp.f32 %v3761_v14  ;;  %v5036_v43 = vpop.eup %5035  ;;  %v3774_v6 = vadd.f32 1.0, %v5034_v59 }
 0x637   :  { %5039 = vrcp.f32 %v3767_v8 }
 0x638   :  { %5041 = vrcp.f32 %v3774_v6 }
 0x640   :  { %v5038_v41 = vpop.eup %5037 }
 0x641   :  { %v5040_v29 = vpop.eup %5039  ;;  %v3779_v56 = vmul.f32 %v5038_v41, %v5036_v43 }
 0x642   :  { %v3778_v0 = vmul.f32 %v5040_v29, %v6354_v26  ;;  %v5042_v39 = vpop.eup %5041 }
 0x644   :  { %v6650_v22 = vadd.f32 %v3779_v56, %v3778_v0  ;;  %v4278_v56 = vld [vmem:[#allocation3 + $0x8] sm:$0x1]  ;;  %v4317_v0 = vld [vmem:[#allocation3 + $0x9] sm:$0x1] }
 0x646   :  { %5043 = vtanh.f32 %v6650_v22 }
 0x650   :  { %v5044_v36 = vpop.eup %5043 }
 0x651   :  { %v3782_v48 = vmul.f32 %v5044_v36, %v5042_v39  ;;  %v4279_v39 = vld [vmem:[#allocation3 + $0x10] sm:$0x1]  ;;  %v4293_v36 = vrot.slane %v4278_v56, 7 }
 0x653   :  { %3786 = vst [vmem:[#allocation3 + $0x28] sm:$0xff] %v3782_v48  ;;  %3922 = vmatmul.mubr.f32.vlgmr.msra.gmra.mrb[28].mxu0 %v3782_v48  ;;  %3993 = vmatmul.mubr.f32.vlgmr.msra.gmra.mrb[28].mxu1 %v3782_v48  ;;  %v4318_v48 = vld [vmem:[#allocation3 + $0x11] sm:$0x1] }
 0x654   :  { %4884 = vmatpush1.bf16.msra.mxu0 %v6381_v1  ;;  %4916 = vmatpush1.bf16.msra.mxu1 %v6393_v57 }
 0x655   :  { %4886 = vmatprep.subr.bf16.mxu0 %v6406_v27  ;;  %4918 = vmatprep.subr.bf16.mxu1 %v6408_v5  ;;  %v3789_v27 = vld [vmem:[#allocation2 + $0xc8] sm:$0xff] }
 0x656   :  { %4166 = vmatprep.mubr.f32.mxu0 %v5077_v2  ;;  %4237 = vmatprep.mubr.f32.mxu1 %v5077_v2  ;;  %v3788_v2 = vld [vmem:[#allocation2 + $0xc0] sm:$0xff] }
 0x658   :  { %4888 = vmatpush1.bf16.msra.mxu0 %v6420_v61  ;;  %4920 = vmatpush1.bf16.msra.mxu1 %v6433_v34 }
 0x659   :  { %4890 = vmatprep.subr.bf16.mxu0 %v6435_v16  ;;  %4922 = vmatprep.subr.bf16.mxu1 %v6446_v35 }
 0x65c   :  { %4892 = vmatpush1.bf16.msra.mxu0 %v6458_v40  ;;  %4924 = vmatpush1.bf16.msra.mxu1 %v6471_v53  ;;  %v3791_v40 = vld [vmem:[#allocation2 + $0xd8] sm:$0xff] }
 0x65d   :  { %4894 = vmatprep.subr.bf16.mxu0 %v6473_v38  ;;  %4926 = vmatprep.subr.bf16.mxu1 %v6485_v12  ;;  %v3790_v38 = vld [vmem:[#allocation2 + $0xd0] sm:$0xff] }
 0x660   :  { %4896 = vmatpush1.bf16.msra.mxu0 %v6506_v49  ;;  %4928 = vmatpush1.bf16.msra.mxu1 %v6510_v55 }
 0x661   :  { %4898 = vmatprep.subr.bf16.mxu0 %v6512_v28  ;;  %4930 = vmatprep.subr.bf16.mxu1 %v6524_v10 }
 0x664   :  { %4900 = vmatpush1.bf16.msra.mxu0 %v6542_v3  ;;  %4932 = vmatpush1.bf16.msra.mxu1 %v6546_v63 }
 0x665   :  { %4902 = vmatprep.subr.bf16.mxu0 %v6548_v9  ;;  %4934 = vmatprep.subr.bf16.mxu1 %v6560_v23 }
 0x668   :  { %4904 = vmatpush1.bf16.msra.mxu0 %v6578_v31  ;;  %4936 = vmatpush1.bf16.msra.mxu1 %v6582_v20 }
 0x669   :  { %4906 = vmatprep.subr.bf16.mxu0 %v6584_v44  ;;  %4938 = vmatprep.subr.bf16.mxu1 %v6596_v37 }
 0x66c   :  { %4908 = vmatpush1.bf16.msra.mxu0 %v6614_v62  ;;  %4940 = vmatpush1.bf16.msra.mxu1 %v6618_v4 }
 0x66d   :  { %4910 = vmatprep.subr.bf16.mxu0 %v6620_v51  ;;  %4942 = vmatprep.subr.bf16.mxu1 %v6629_v52 }
 0x670   :  { %4912 = vmatpush1.bf16.msra.mxu0 %v6638_v30  ;;  %4944 = vmatpush1.bf16.msra.mxu1 %v6642_v32 }
 0x726   :  { %v3923_v26 = vpop.f32.mrb[28].mxu0  ;;  %v3994_v1 = vpop.f32.mrb[28].mxu1 }
 0x727   :  { %v3999_v57 = vadd.f32 %v3923_v26, %v3788_v2  ;;  %v3925_v5 = vpop.f32.mrb[29].mxu0  ;;  %v3996_v61 = vpop.f32.mrb[29].mxu1  ;;  %v4001_v49 = vadd.f32 %v3994_v1, %v3790_v38  ;;  %v4277_v26 = vld [vmem:[#allocation3] sm:$0x1]  ;;  %v4332_v1 = vrot.slane %v4317_v0, 7 }
 0x728   :  { %v4000_v34 = vadd.f32 %v3925_v5, %v3789_v27  ;;  %v4002_v53 = vadd.f32 %v3996_v61, %v3791_v40  ;;  %v4319_v27 = vld [vmem:[#allocation3 + $0x19] sm:$0x1]  ;;  %v4316_v5 = vld [vmem:[#allocation3 + $0x1] sm:$0x1]  ;;  %v4296_v61 = vrot.slane %v4279_v39, 6  ;;  %v4295_v38 = vsel %vm4294_vm3, %v4293_v36, %v4277_v26 }
 0x729   :  { %v4426_v16 = vmul.f32 -1.442695, %v3999_v57  ;;  %v4280_v57 = vld [vmem:[#allocation3 + $0x18] sm:$0x1]  ;;  %v4282_v40 = vld [vmem:[#allocation3 + $0x28] sm:$0x1] }
 0x72a   :  { %v4427_v35 = vmul.f32 -1.442695, %v4000_v34  ;;  %v4428_v12 = vmul.f32 -1.442695, %v4002_v53  ;;  %v4281_v34 = vld [vmem:[#allocation3 + $0x20] sm:$0x1] }
 0x72b   :  { %5045 = vpow2.f32 %v4426_v16  ;;  %v4320_v16 = vld [vmem:[#allocation3 + $0x21] sm:$0x1]  ;;  %v4321_v53 = vld [vmem:[#allocation3 + $0x29] sm:$0x1] }
 0x72c   :  { %5047 = vpow2.f32 %v4427_v35  ;;  %v4334_v35 = vrot.slane %v4318_v48, 6 }
 0x72d   :  { %5049 = vpow2.f32 %v4428_v12  ;;  %v4299_v12 = vrot.slane %v4280_v57, 5 }
 0x72e   :  { %5051 = vtanh.f32 %v4001_v49  ;;  %v4336_v49 = vrot.slane %v4319_v27, 5 }
 0x735   :  { %v5046_v55 = vpop.eup %5045 }
 0x736   :  { %v5048_v28 = vpop.eup %5047  ;;  %v4006_v10 = vadd.f32 1.0, %v5046_v55 }
 0x737   :  { %v4012_v3 = vadd.f32 1.0, %v5048_v28  ;;  %v5050_v63 = vpop.eup %5049 }
 0x738   :  { %5053 = vrcp.f32 %v4006_v10  ;;  %v5052_v9 = vpop.eup %5051  ;;  %v4019_v44 = vadd.f32 1.0, %v5050_v63  ;;  %v4333_v10 = vsel %vm4294_vm3, %v4332_v1, %v4316_v5  ;;  %v4338_v63 = vrot.slane %v4320_v16, 4 }
 0x739   :  { %5055 = vrcp.f32 %v4012_v3  ;;  %v4302_v3 = vrot.slane %v4281_v34, 4 }
 0x73a   :  { %5057 = vrcp.f32 %v4019_v44 }
 0x742   :  { %v5054_v23 = vpop.eup %5053 }
 0x743   :  { %v5056_v31 = vpop.eup %5055  ;;  %v4024_v20 = vmul.f32 %v5054_v23, %v5052_v9  ;;  %v4298_v9 = vsel %vm4297_vm4, %v4296_v61, %v4295_v38  ;;  %v4305_v23 = vrot.slane %v4282_v40, 3 }
 0x744   :  { %v4023_v37 = vmul.f32 %v5056_v31, %v6650_v22  ;;  %v5058_v4 = vpop.eup %5057  ;;  %v4340_v31 = vrot.slane %v4321_v53, 3 }
 0x746   :  { %v4025_v62 = vadd.f32 %v4024_v20, %v4023_v37  ;;  %v4335_v20 = vsel %vm4297_vm4, %v4334_v35, %v4333_v10 }
 0x748   :  { %5059 = vtanh.f32 %v4025_v62 }
 0x752   :  { %v5060_v51 = vpop.eup %5059 }
 0x753   :  { %v4027_v52 = vmul.f32 %v5060_v51, %v5058_v4  ;;  %v4337_v4 = vsel %vm4300_vm5, %v4336_v49, %v4335_v20 }
 0x755   :  { %4031 = vst [vmem:[#allocation3 + $0x30] sm:$0xff] %v4027_v52  ;;  %4167 = vmatmul.mubr.f32.vlgmr.msra.gmra.mrb[30].mxu0 %v4027_v52  ;;  %4238 = vmatmul.mubr.f32.vlgmr.msra.gmra.mrb[30].mxu1 %v4027_v52  ;;  %v4339_v52 = vsel %vm4303_vm6, %v4338_v63, %v4337_v4 }
 0x75c   :  { %v4283_v55 = vld [vmem:[#allocation3 + $0x30] sm:$0x1]  ;;  %v4322_v28 = vld [vmem:[#allocation3 + $0x31] sm:$0x1] }
 0x75d   :  { %v4308_v44 = vrot.slane %v4283_v55, 2  ;;  %v4342_v37 = vrot.slane %v4322_v28, 2 }
 0x828   :  { %v4168_v42 = vpop.f32.mrb[30].mxu0  ;;  %v4239_v30 = vpop.f32.mrb[30].mxu1 }
 0x829   :  { %v4244_v32 = vadd.f32 %v4168_v42, %v4033_v18  ;;  %v4170_v7 = vpop.f32.mrb[31].mxu0  ;;  %v4241_v25 = vpop.f32.mrb[31].mxu1  ;;  %v4246_v24 = vadd.f32 %v4239_v30, %v4035_v19 }
 0x82a   :  { %v4245_v33 = vadd.f32 %v4170_v7, %v4034_v46  ;;  %v4247_v13 = vadd.f32 %v4241_v25, %v4036_v17 }
 0x82b   :  { %v4429_v60 = vmul.f32 -1.442695, %v4244_v32  ;;  %v4341_v32 = vsel %vm4306_vm7, %v4340_v31, %v4339_v52 }
 0x82c   :  { %v4430_v11 = vmul.f32 -1.442695, %v4245_v33  ;;  %v4431_v45 = vmul.f32 -1.442695, %v4247_v13  ;;  %v4343_v33 = vsel %vm4309_vm8, %v4342_v37, %v4341_v32 }
 0x82d   :  { %5061 = vpow2.f32 %v4429_v60 }
 0x82e   :  { %5063 = vpow2.f32 %v4430_v11 }
 0x82f   :  { %5065 = vpow2.f32 %v4431_v45 }
 0x830   :  { %5067 = vtanh.f32 %v4246_v24 }
 0x837   :  { %v5062_v50 = vpop.eup %5061 }
 0x838   :  { %v5064_v58 = vpop.eup %5063  ;;  %v4251_v47 = vadd.f32 1.0, %v5062_v50 }
 0x839   :  { %v4257_v15 = vadd.f32 1.0, %v5064_v58  ;;  %v5066_v54 = vpop.eup %5065 }
 0x83a   :  { %5069 = vrcp.f32 %v4251_v47  ;;  %v5068_v21 = vpop.eup %5067  ;;  %v4264_v43 = vadd.f32 1.0, %v5066_v54 }
 0x83b   :  { %5071 = vrcp.f32 %v4257_v15 }
 0x83c   :  { %5073 = vrcp.f32 %v4264_v43 }
 0x844   :  { %v5070_v14 = vpop.eup %5069 }
 0x845   :  { %v5072_v8 = vpop.eup %5071  ;;  %v4269_v59 = vmul.f32 %v5070_v14, %v5068_v21 }
 0x846   :  { %v4268_v41 = vmul.f32 %v5072_v8, %v4025_v62  ;;  %v5074_v6 = vpop.eup %5073  ;;  %v4301_v62 = vsel %vm4300_vm5, %v4299_v12, %v4298_v9 }
 0x847   :  { %v4304_v51 = vsel %vm4303_vm6, %v4302_v3, %v4301_v62 }
 0x848   :  { %v4270_v29 = vadd.f32 %v4269_v59, %v4268_v41  ;;  %v4307_v30 = vsel %vm4306_vm7, %v4305_v23, %v4304_v51 }
 0x849   :  { %v4310_v25 = vsel %vm4309_vm8, %v4308_v44, %v4307_v30 }
 0x84a   :  { %5075 = vtanh.f32 %v4270_v29 }
 0x854   :  { %v5076_v22 = vpop.eup %5075 }
 0x855   :  { %v4272_v2 = vmul.f32 %v5076_v22, %v5074_v6 }
 0x857   :  { %4276 = vst [vmem:[#allocation3 + $0x38] sm:$0xff] %v4272_v2 }
 0x85e   :  { %v4284_v18 = vld [vmem:[#allocation3 + $0x38] sm:$0x1]  ;;  %v4323_v42 = vld [vmem:[#allocation3 + $0x39] sm:$0x1] }
 0x85f   :  { %v4311_v46 = vrot.slane %v4284_v18, 1  ;;  %v4344_v7 = vrot.slane %v4323_v42, 1 }
 0x861   :  { %v4313_v60 = vsel %vm4312_vm9, %v4311_v46, %v4310_v25  ;;  %v4345_v11 = vsel %vm4312_vm9, %v4344_v7, %v4343_v33 }
 0x862   :  { %4315 = vst [vmem:[%s6700_s4] sm:$0xff] %v4313_v60  ;;  %4432 = vst [vmem:[%s6700_s4 + $0x8] sm:$0xff] %v4345_v11 }

</bundles_post_ra>
